<compile_context>
chip_gen: v6e
topology: v6e:2x2x1
jax: 0.10.0
libtpu: 0.0.40
codegen_flags: <defaults>
</compile_context>

<pallas_src>
import jax
import jax.numpy as jnp
from jax.experimental import pallas as pl
from jax.experimental.pallas import tpu as pltpu


def _user_embedding_kernel(wmask_ref, smask_ref, att_ref, wu_ref, ws_ref,
                           b_ref, user0_ref, out_ref, sess_sc, proj_sc):
    # wmask_ref : [TB, S, I, 1] f32  (interaction_mask * 1/valid_count)
    # smask_ref : [S, TB, 1]    f32  (session-exists mask, session-major)
    # att_ref   : [TB, S, I, D] bf16/f32
    # wu_ref    : [D, D] bf16   user half of gating W.T
    # ws_ref    : [D, D] bf16   session half of gating W.T
    # b_ref     : [1, D] f32
    # user0_ref : [TB, D] f32
    # out_ref   : [TB, D] f32
    # sess_sc   : [S, TB, D] f32 scratch (masked-mean session embeddings)
    # proj_sc   : [S, TB, D] f32 scratch (hoisted ws @ sess + bias)
    TB, S, I, D = att_ref.shape
    f32 = jnp.float32
    ws = ws_ref[...]
    bias = b_ref[...]

    # ---- Phase 1: masked mean over interactions + hoisted session-side
    # projection, staged per-session into VMEM scratch. Live values stay
    # [TB, D]; no [TB,S,I,D] f32 materialization / spill.
    for s in range(S):
        acc = att_ref[:, s, 0, :].astype(f32) * wmask_ref[:, s, 0, :]
        for i in range(1, I):
            acc = acc + att_ref[:, s, i, :].astype(f32) * wmask_ref[:, s, i, :]
        sess_sc[s] = acc
        proj_sc[s] = jnp.dot(acc.astype(jnp.bfloat16), ws,
                             preferred_element_type=f32) + bias

    # ---- Phase 2: serial gated recurrence over sessions.
    wu = wu_ref[...]

    def step(s, user):
        sess = sess_sc[s]                                  # [TB, D] contiguous
        proj = proj_sc[s]                                  # [TB, D]
        sx = smask_ref[s]                                  # [TB, 1]
        logits = jnp.dot(user.astype(jnp.bfloat16), wu,
                         preferred_element_type=f32) + proj
        gate = jax.nn.sigmoid(logits)
        # Fold the session-exists select into the gate (equivalent to the
        # reference two-step update).
        eff = gate * sx + (1.0 - sx)
        return eff * user + (1.0 - eff) * sess

    user = user0_ref[...]
    if S <= 32:
        for s in range(S):                 # full unroll: LLO visibility
            user = step(s, user)
    else:
        user = jax.lax.fori_loop(0, S, step, user, unroll=4)

    out_ref[...] = user.astype(out_ref.dtype)


def prepare_gating_params(gating_weight, gating_bias):
    """Split / transpose / cast the gating Linear params once (cacheable)."""
    D = gating_weight.shape[0]
    wt = gating_weight.T                                   # [2D, D]
    wu = wt[:D, :].astype(jnp.bfloat16)                    # user half
    ws = wt[D:, :].astype(jnp.bfloat16)                    # session half
    b2d = gating_bias.reshape(1, D).astype(jnp.float32)
    return wu, ws, b2d


def _vmem_capacity_bytes():
    try:
        return int(pltpu.get_tpu_info().vmem_capacity_bytes)
    except Exception:
        return 64 * 1024 * 1024        # conservative fallback (v7x per-core)


def _pick_batch_tile(B, S, I, D, att_itemsize, vmem_limit_bytes, batch_tile):
    """Batch-tile size from a VMEM budget (or an explicit override)."""
    if batch_tile is not None:
        cap = max(1, int(batch_tile))
    else:
        tile_budget = int(0.45 * vmem_limit_bytes)
        fixed = 4 * D * D * 2 + 2 * D * 4 + (2 << 20)      # weights + slack
        per_row = (2 * S * I * D * att_itemsize            # 2x-buffered att
                   + 2 * S * I * 4                         # 2x-buffered wmask
                   + 2 * S * 4                             # smask
                   + 4 * D * 4                             # user0 + out
                   + 2 * S * D * 4)                        # sess/proj scratch
        cap = max(tile_budget - fixed, 0) // per_row
        cap = max(8, min((cap // 8) * 8, 512))
    if B <= cap:
        if B >= 256:
            # Split into 2 tiles so the single "parallel" grid axis can be
            # sharded across both TensorCores (v7x) with matmul M >= 128.
            return ((-(-B // 2)) + 7) // 8 * 8
        return B                        # exact single tile, no padding
    return max(8, (cap // 8) * 8)


def user_embedding_updater(attention_output, interaction_mask, session_mask,
                           gating_weight, gating_bias, initial_embedding,
                           prev_user_embedding=None, *, batch_tile=None,
                           prepared_params=None):
    """JAX wrapper matching UserEmbeddingUpdater.forward semantics.

    attention_output : [B, S, I, D] float
    interaction_mask : [B, S, I]    (0/1)
    session_mask     : [B, S]       (0/1)
    gating_weight    : [D, 2D]      (nn.Linear weight)
    gating_bias      : [D]
    initial_embedding: [D]
    prev_user_embedding : [B, D] or None
    returns          : [B, D] float32
    """
    B, S, I, D = attention_output.shape
    f32 = jnp.float32

    if prepared_params is None:
        wu, ws, b2d = prepare_gating_params(gating_weight, gating_bias)
    else:
        wu, ws, b2d = prepared_params

    # HBM-read-bound on attention_output: ship it as bf16 (accumulation in
    # the kernel stays f32).
    att = attention_output
    if att.dtype == jnp.float32:
        att = att.astype(jnp.bfloat16)

    imask = interaction_mask.astype(f32)
    inv_valid = 1.0 / jnp.maximum(jnp.sum(imask, axis=2, keepdims=True), 1.0)
    wmask = (imask * inv_valid)[..., None]                       # [B,S,I,1]
    smask = jnp.transpose(session_mask.astype(f32))[..., None]   # [S,B,1]

    if prev_user_embedding is None:
        user0 = jnp.broadcast_to(initial_embedding.reshape(1, D).astype(f32),
                                 (B, D))
    else:
        user0 = prev_user_embedding.astype(f32)

    vmem_cap = _vmem_capacity_bytes()
    vmem_limit = min(int(0.75 * vmem_cap), 112 * 1024 * 1024)
    TB = _pick_batch_tile(B, S, I, D, att.dtype.itemsize, vmem_limit,
                          batch_tile)
    nb = pl.cdiv(B, TB)
    Bp = nb * TB

    # Pad only the small per-batch arrays; attention_output stays unpadded
    # (no extra full-tensor HBM copy). Tail-tile garbage rows only affect
    # output rows that the ragged output block never writes.
    if Bp != B:
        wmask = jnp.pad(wmask, ((0, Bp - B), (0, 0), (0, 0), (0, 0)))
        smask = jnp.pad(smask, ((0, 0), (0, Bp - B), (0, 0)))
        user0 = jnp.pad(user0, ((0, Bp - B), (0, 0)))

    out = pl.pallas_call(
        _user_embedding_kernel,
        out_shape=jax.ShapeDtypeStruct((B, D), f32),
        grid=(nb,),
        in_specs=[
            pl.BlockSpec((TB, S, I, 1), lambda i: (i, 0, 0, 0)),   # wmask
            pl.BlockSpec((S, TB, 1), lambda i: (0, i, 0)),         # smask
            pl.BlockSpec((TB, S, I, D), lambda i: (i, 0, 0, 0)),   # attention
            pl.BlockSpec((D, D), lambda i: (0, 0)),                # wu
            pl.BlockSpec((D, D), lambda i: (0, 0)),                # ws
            pl.BlockSpec((1, D), lambda i: (0, 0)),                # bias
            pl.BlockSpec((TB, D), lambda i: (i, 0)),               # user0
        ],
        out_specs=pl.BlockSpec((TB, D), lambda i: (i, 0)),
        scratch_shapes=[
            pltpu.VMEM((S, TB, D), jnp.float32),    # session embeddings
            pltpu.VMEM((S, TB, D), jnp.float32),    # hoisted ws projection
        ],
        compiler_params=pltpu.CompilerParams(
            dimension_semantics=("parallel",),
            vmem_limit_bytes=vmem_limit,
        ),
    )(wmask, smask, att, wu, ws, b2d, user0)
    return out


def _reference(attention_output, interaction_mask, session_mask,
               gating_weight, gating_bias, initial_embedding,
               prev_user_embedding=None):
    """Pure-JAX f32 reference mirroring the PyTorch module."""
    B, S, I, D = attention_output.shape
    att = attention_output.astype(jnp.float32)
    imask = interaction_mask.astype(jnp.float32)
    masked = att * imask[..., None]
    valid = jnp.maximum(imask.sum(axis=2), 1.0)[..., None]
    session_emb = masked.sum(axis=2) / valid
    if prev_user_embedding is None:
        user = jnp.broadcast_to(initial_embedding[None, :], (B, D))
    else:
        user = prev_user_embedding
    for s in range(S):
        sess = session_emb[:, s, :]
        sexist = session_mask[:, s][:, None]
        combined = jnp.concatenate([user, sess], axis=-1)
        gate = jax.nn.sigmoid(combined @ gating_weight.T + gating_bias)
        updated = gate * user + (1 - gate) * sess
        user = updated * sexist + user * (1 - sexist)
    return user


if __name__ == "__main__":
    # batch, max_session, max_interaction, embedding_dim
    B, S, I, D = 4, 4, 8, 128

    key = jax.random.PRNGKey(0)
    k_att, k_im, k_sm, k_w, k_b, k_init, k_prev, k2 = jax.random.split(key, 8)

    attention_output = jax.random.normal(k_att, (B, S, I, D), dtype=jnp.float32)
    interaction_mask = (jax.random.uniform(k_im, (B, S, I)) > 0.3).astype(jnp.float32)
    session_mask = (jax.random.uniform(k_sm, (B, S)) > 0.2).astype(jnp.float32)

    bound = 1.0 / jnp.sqrt(2.0 * D)
    gating_weight = jax.random.uniform(k_w, (D, 2 * D), minval=-bound,
                                       maxval=bound, dtype=jnp.float32)
    gating_bias = jax.random.uniform(k_b, (D,), minval=-bound, maxval=bound,
                                     dtype=jnp.float32)
    initial_embedding = jax.random.normal(k_init, (D,), dtype=jnp.float32)

    # bf16 attention + bf16 matmul operands -> loosened tolerance vs f32 ref.
    TOL = 5e-2

    # --- Test 1: no previous user embedding (single-tile path) ---
    out = user_embedding_updater(attention_output, interaction_mask,
                                 session_mask, gating_weight, gating_bias,
                                 initial_embedding, prev_user_embedding=None)
    out = jax.block_until_ready(out)
    ref = _reference(attention_output, interaction_mask, session_mask,
                     gating_weight, gating_bias, initial_embedding, None)
    assert out.shape == (B, D)
    err = float(jnp.max(jnp.abs(out - ref)))
    assert err < TOL, f"mismatch (no prev): max abs err {err}"

    # --- Test 2: with a previous user embedding ---
    prev = 0.5 * jax.random.normal(k_prev, (B, D), dtype=jnp.float32)
    out2 = jax.block_until_ready(
        user_embedding_updater(attention_output, interaction_mask, session_mask,
                               gating_weight, gating_bias, initial_embedding,
                               prev_user_embedding=prev))
    ref2 = _reference(attention_output, interaction_mask, session_mask,
                      gating_weight, gating_bias, initial_embedding, prev)
    err2 = float(jnp.max(jnp.abs(out2 - ref2)))
    assert err2 < TOL, f"mismatch (with prev): max abs err {err2}"

    # --- Test 3: multi-tile grid with a ragged tail (B=20, TB=8 -> grid=3,
    # last tile has 4 valid rows; attention stays unpadded). Test-only tile. ---
    B3 = 20
    ka, kb_, kc = jax.random.split(k2, 3)
    att3 = jax.random.normal(ka, (B3, S, I, D), dtype=jnp.float32)
    im3 = (jax.random.uniform(kb_, (B3, S, I)) > 0.3).astype(jnp.float32)
    sm3 = (jax.random.uniform(kc, (B3, S)) > 0.2).astype(jnp.float32)
    out3 = jax.block_until_ready(
        user_embedding_updater(att3, im3, sm3, gating_weight, gating_bias,
                               initial_embedding, prev_user_embedding=None,
                               batch_tile=8))
    ref3 = _reference(att3, im3, sm3, gating_weight, gating_bias,
                      initial_embedding, None)
    assert out3.shape == (B3, D)
    err3 = float(jnp.max(jnp.abs(out3 - ref3)))
    assert err3 < TOL, f"mismatch (tiled/ragged): max abs err {err3}"

    print("KERNEL_OK")
</pallas_src>

<mosaic_0001>
module attributes {stable_mosaic.version = 11 : i64} {
  func.func @_user_embedding_kernel(%arg0: i32, %arg1: memref<4x4x8x1xf32, #tpu.memory_space<vmem>>, %arg2: memref<4x4x1xf32, #tpu.memory_space<vmem>>, %arg3: memref<4x4x8x128xbf16, #tpu.memory_space<vmem>>, %arg4: memref<128x128xbf16, #tpu.memory_space<vmem>>, %arg5: memref<128x128xbf16, #tpu.memory_space<vmem>>, %arg6: memref<1x128xf32, #tpu.memory_space<vmem>>, %arg7: memref<4x128xf32, #tpu.memory_space<vmem>>, %arg8: memref<4x128xf32, #tpu.memory_space<vmem>>, %arg9: memref<4x4x128xf32, #tpu.memory_space<vmem>>, %arg10: memref<4x4x128xf32, #tpu.memory_space<vmem>>) attributes {dimension_semantics = [#tpu.dimension_semantics<parallel>], iteration_bounds = array<i64: 1>, scalar_prefetch = 0 : i64, scratch_operands = 2 : i64, tpu.core_type = #tpu.core_type<tc>, window_params = [{transform_indices = @transform_0, window_bounds = array<i64: 4, 4, 8, 1>}, {transform_indices = @transform_1, window_bounds = array<i64: 4, 4, 1>}, {transform_indices = @transform_2, window_bounds = array<i64: 4, 4, 8, 128>}, {pipeline_mode = #tpu.pipeline_mode<synchronous>, transform_indices = @transform_3, window_bounds = array<i64: 128, 128>}, {pipeline_mode = #tpu.pipeline_mode<synchronous>, transform_indices = @transform_4, window_bounds = array<i64: 128, 128>}, {pipeline_mode = #tpu.pipeline_mode<synchronous>, transform_indices = @transform_5, window_bounds = array<i64: 1, 128>}, {transform_indices = @transform_6, window_bounds = array<i64: 4, 128>}, {transform_indices = @transform_7, window_bounds = array<i64: 4, 128>}]} {
    %c0 = arith.constant 0 : index
    %c0_0 = arith.constant 0 : index
    %0 = vector.load %arg5[%c0, %c0_0] : memref<128x128xbf16, #tpu.memory_space<vmem>>, vector<128x128xbf16>
    %c0_1 = arith.constant 0 : index
    %c0_2 = arith.constant 0 : index
    %1 = vector.load %arg6[%c0_1, %c0_2] : memref<1x128xf32, #tpu.memory_space<vmem>>, vector<1x128xf32>
    %c0_3 = arith.constant 0 : index
    %c0_4 = arith.constant 0 : index
    %c0_5 = arith.constant 0 : index
    %c0_6 = arith.constant 0 : index
    %2 = vector.load %arg3[%c0_3, %c0_4, %c0_5, %c0_6] : memref<4x4x8x128xbf16, #tpu.memory_space<vmem>>, vector<4x1x1x128xbf16>
    %3 = vector.shape_cast %2 : vector<4x1x1x128xbf16> to vector<4x128xbf16>
    %4 = arith.extf %3 : vector<4x128xbf16> to vector<4x128xf32>
    %c0_7 = arith.constant 0 : index
    %c0_8 = arith.constant 0 : index
    %c0_9 = arith.constant 0 : index
    %c0_10 = arith.constant 0 : index
    %5 = vector.load %arg1[%c0_7, %c0_8, %c0_9, %c0_10] : memref<4x4x8x1xf32, #tpu.memory_space<vmem>>, vector<4x1x1x1xf32>
    %6 = vector.shape_cast %5 : vector<4x1x1x1xf32> to vector<4x1xf32>
    %7 = vector.broadcast %6 : vector<4x1xf32> to vector<4x128xf32>
    %8 = arith.mulf %4, %7 : vector<4x128xf32>
    %c0_11 = arith.constant 0 : index
    %c0_12 = arith.constant 0 : index
    %c1 = arith.constant 1 : index
    %c0_13 = arith.constant 0 : index
    %9 = vector.load %arg3[%c0_11, %c0_12, %c1, %c0_13] : memref<4x4x8x128xbf16, #tpu.memory_space<vmem>>, vector<4x1x1x128xbf16>
    %10 = vector.shape_cast %9 : vector<4x1x1x128xbf16> to vector<4x128xbf16>
    %11 = arith.extf %10 : vector<4x128xbf16> to vector<4x128xf32>
    %c0_14 = arith.constant 0 : index
    %c0_15 = arith.constant 0 : index
    %c1_16 = arith.constant 1 : index
    %c0_17 = arith.constant 0 : index
    %12 = vector.load %arg1[%c0_14, %c0_15, %c1_16, %c0_17] : memref<4x4x8x1xf32, #tpu.memory_space<vmem>>, vector<4x1x1x1xf32>
    %13 = vector.shape_cast %12 : vector<4x1x1x1xf32> to vector<4x1xf32>
    %14 = vector.broadcast %13 : vector<4x1xf32> to vector<4x128xf32>
    %15 = arith.mulf %11, %14 : vector<4x128xf32>
    %16 = arith.addf %8, %15 : vector<4x128xf32>
    %c0_18 = arith.constant 0 : index
    %c0_19 = arith.constant 0 : index
    %c2 = arith.constant 2 : index
    %c0_20 = arith.constant 0 : index
    %17 = vector.load %arg3[%c0_18, %c0_19, %c2, %c0_20] : memref<4x4x8x128xbf16, #tpu.memory_space<vmem>>, vector<4x1x1x128xbf16>
    %18 = vector.shape_cast %17 : vector<4x1x1x128xbf16> to vector<4x128xbf16>
    %19 = arith.extf %18 : vector<4x128xbf16> to vector<4x128xf32>
    %c0_21 = arith.constant 0 : index
    %c0_22 = arith.constant 0 : index
    %c2_23 = arith.constant 2 : index
    %c0_24 = arith.constant 0 : index
    %20 = vector.load %arg1[%c0_21, %c0_22, %c2_23, %c0_24] : memref<4x4x8x1xf32, #tpu.memory_space<vmem>>, vector<4x1x1x1xf32>
    %21 = vector.shape_cast %20 : vector<4x1x1x1xf32> to vector<4x1xf32>
    %22 = vector.broadcast %21 : vector<4x1xf32> to vector<4x128xf32>
    %23 = arith.mulf %19, %22 : vector<4x128xf32>
    %24 = arith.addf %16, %23 : vector<4x128xf32>
    %c0_25 = arith.constant 0 : index
    %c0_26 = arith.constant 0 : index
    %c3 = arith.constant 3 : index
    %c0_27 = arith.constant 0 : index
    %25 = vector.load %arg3[%c0_25, %c0_26, %c3, %c0_27] : memref<4x4x8x128xbf16, #tpu.memory_space<vmem>>, vector<4x1x1x128xbf16>
    %26 = vector.shape_cast %25 : vector<4x1x1x128xbf16> to vector<4x128xbf16>
    %27 = arith.extf %26 : vector<4x128xbf16> to vector<4x128xf32>
    %c0_28 = arith.constant 0 : index
    %c0_29 = arith.constant 0 : index
    %c3_30 = arith.constant 3 : index
    %c0_31 = arith.constant 0 : index
    %28 = vector.load %arg1[%c0_28, %c0_29, %c3_30, %c0_31] : memref<4x4x8x1xf32, #tpu.memory_space<vmem>>, vector<4x1x1x1xf32>
    %29 = vector.shape_cast %28 : vector<4x1x1x1xf32> to vector<4x1xf32>
    %30 = vector.broadcast %29 : vector<4x1xf32> to vector<4x128xf32>
    %31 = arith.mulf %27, %30 : vector<4x128xf32>
    %32 = arith.addf %24, %31 : vector<4x128xf32>
    %c0_32 = arith.constant 0 : index
    %c0_33 = arith.constant 0 : index
    %c4 = arith.constant 4 : index
    %c0_34 = arith.constant 0 : index
    %33 = vector.load %arg3[%c0_32, %c0_33, %c4, %c0_34] : memref<4x4x8x128xbf16, #tpu.memory_space<vmem>>, vector<4x1x1x128xbf16>
    %34 = vector.shape_cast %33 : vector<4x1x1x128xbf16> to vector<4x128xbf16>
    %35 = arith.extf %34 : vector<4x128xbf16> to vector<4x128xf32>
    %c0_35 = arith.constant 0 : index
    %c0_36 = arith.constant 0 : index
    %c4_37 = arith.constant 4 : index
    %c0_38 = arith.constant 0 : index
    %36 = vector.load %arg1[%c0_35, %c0_36, %c4_37, %c0_38] : memref<4x4x8x1xf32, #tpu.memory_space<vmem>>, vector<4x1x1x1xf32>
    %37 = vector.shape_cast %36 : vector<4x1x1x1xf32> to vector<4x1xf32>
    %38 = vector.broadcast %37 : vector<4x1xf32> to vector<4x128xf32>
    %39 = arith.mulf %35, %38 : vector<4x128xf32>
    %40 = arith.addf %32, %39 : vector<4x128xf32>
    %c0_39 = arith.constant 0 : index
    %c0_40 = arith.constant 0 : index
    %c5 = arith.constant 5 : index
    %c0_41 = arith.constant 0 : index
    %41 = vector.load %arg3[%c0_39, %c0_40, %c5, %c0_41] : memref<4x4x8x128xbf16, #tpu.memory_space<vmem>>, vector<4x1x1x128xbf16>
    %42 = vector.shape_cast %41 : vector<4x1x1x128xbf16> to vector<4x128xbf16>
    %43 = arith.extf %42 : vector<4x128xbf16> to vector<4x128xf32>
    %c0_42 = arith.constant 0 : index
    %c0_43 = arith.constant 0 : index
    %c5_44 = arith.constant 5 : index
    %c0_45 = arith.constant 0 : index
    %44 = vector.load %arg1[%c0_42, %c0_43, %c5_44, %c0_45] : memref<4x4x8x1xf32, #tpu.memory_space<vmem>>, vector<4x1x1x1xf32>
    %45 = vector.shape_cast %44 : vector<4x1x1x1xf32> to vector<4x1xf32>
    %46 = vector.broadcast %45 : vector<4x1xf32> to vector<4x128xf32>
    %47 = arith.mulf %43, %46 : vector<4x128xf32>
    %48 = arith.addf %40, %47 : vector<4x128xf32>
    %c0_46 = arith.constant 0 : index
    %c0_47 = arith.constant 0 : index
    %c6 = arith.constant 6 : index
    %c0_48 = arith.constant 0 : index
    %49 = vector.load %arg3[%c0_46, %c0_47, %c6, %c0_48] : memref<4x4x8x128xbf16, #tpu.memory_space<vmem>>, vector<4x1x1x128xbf16>
    %50 = vector.shape_cast %49 : vector<4x1x1x128xbf16> to vector<4x128xbf16>
    %51 = arith.extf %50 : vector<4x128xbf16> to vector<4x128xf32>
    %c0_49 = arith.constant 0 : index
    %c0_50 = arith.constant 0 : index
    %c6_51 = arith.constant 6 : index
    %c0_52 = arith.constant 0 : index
    %52 = vector.load %arg1[%c0_49, %c0_50, %c6_51, %c0_52] : memref<4x4x8x1xf32, #tpu.memory_space<vmem>>, vector<4x1x1x1xf32>
    %53 = vector.shape_cast %52 : vector<4x1x1x1xf32> to vector<4x1xf32>
    %54 = vector.broadcast %53 : vector<4x1xf32> to vector<4x128xf32>
    %55 = arith.mulf %51, %54 : vector<4x128xf32>
    %56 = arith.addf %48, %55 : vector<4x128xf32>
    %c0_53 = arith.constant 0 : index
    %c0_54 = arith.constant 0 : index
    %c7 = arith.constant 7 : index
    %c0_55 = arith.constant 0 : index
    %57 = vector.load %arg3[%c0_53, %c0_54, %c7, %c0_55] : memref<4x4x8x128xbf16, #tpu.memory_space<vmem>>, vector<4x1x1x128xbf16>
    %58 = vector.shape_cast %57 : vector<4x1x1x128xbf16> to vector<4x128xbf16>
    %59 = arith.extf %58 : vector<4x128xbf16> to vector<4x128xf32>
    %c0_56 = arith.constant 0 : index
    %c0_57 = arith.constant 0 : index
    %c7_58 = arith.constant 7 : index
    %c0_59 = arith.constant 0 : index
    %60 = vector.load %arg1[%c0_56, %c0_57, %c7_58, %c0_59] : memref<4x4x8x1xf32, #tpu.memory_space<vmem>>, vector<4x1x1x1xf32>
    %61 = vector.shape_cast %60 : vector<4x1x1x1xf32> to vector<4x1xf32>
    %62 = vector.broadcast %61 : vector<4x1xf32> to vector<4x128xf32>
    %63 = arith.mulf %59, %62 : vector<4x128xf32>
    %64 = arith.addf %56, %63 : vector<4x128xf32>
    %c0_60 = arith.constant 0 : index
    %c0_61 = arith.constant 0 : index
    %c0_62 = arith.constant 0 : index
    %65 = vector.load %arg9[%c0_60, %c0_61, %c0_62] : memref<4x4x128xf32, #tpu.memory_space<vmem>>, vector<1x4x128xf32>
    %66 = vector.shape_cast %65 : vector<1x4x128xf32> to vector<4x128xf32>
    %67 = vector.shape_cast %64 : vector<4x128xf32> to vector<1x4x128xf32>
    tpu.vector_store %arg9[%c0_60, %c0_61, %c0_62], %67 {strides = array<i32>} : memref<4x4x128xf32, #tpu.memory_space<vmem>>, vector<1x4x128xf32>,
    %68 = arith.truncf %64 : vector<4x128xf32> to vector<4x128xbf16>
    %cst = arith.constant dense<0.000000e+00> : vector<4x128xf32>
    %69 = tpu.matmul %68, %0, %cst {dimension_numbers = #tpu.dot_dimension_numbers<[1], [0], [0], [1], [0, 0, 1, 1], [], []>} : vector<4x128xbf16>, vector<128x128xbf16>, vector<4x128xf32> -> vector<4x128xf32>
    %70 = vector.broadcast %1 : vector<1x128xf32> to vector<4x128xf32>
    %71 = arith.addf %69, %70 : vector<4x128xf32>
    %c0_63 = arith.constant 0 : index
    %c0_64 = arith.constant 0 : index
    %c0_65 = arith.constant 0 : index
    %72 = vector.load %arg10[%c0_63, %c0_64, %c0_65] : memref<4x4x128xf32, #tpu.memory_space<vmem>>, vector<1x4x128xf32>
    %73 = vector.shape_cast %72 : vector<1x4x128xf32> to vector<4x128xf32>
    %74 = vector.shape_cast %71 : vector<4x128xf32> to vector<1x4x128xf32>
    tpu.vector_store %arg10[%c0_63, %c0_64, %c0_65], %74 {strides = array<i32>} : memref<4x4x128xf32, #tpu.memory_space<vmem>>, vector<1x4x128xf32>,
    %c0_66 = arith.constant 0 : index
    %c1_67 = arith.constant 1 : index
    %c0_68 = arith.constant 0 : index
    %c0_69 = arith.constant 0 : index
    %75 = vector.load %arg3[%c0_66, %c1_67, %c0_68, %c0_69] : memref<4x4x8x128xbf16, #tpu.memory_space<vmem>>, vector<4x1x1x128xbf16>
    %76 = vector.shape_cast %75 : vector<4x1x1x128xbf16> to vector<4x128xbf16>
    %77 = arith.extf %76 : vector<4x128xbf16> to vector<4x128xf32>
    %c0_70 = arith.constant 0 : index
    %c1_71 = arith.constant 1 : index
    %c0_72 = arith.constant 0 : index
    %c0_73 = arith.constant 0 : index
    %78 = vector.load %arg1[%c0_70, %c1_71, %c0_72, %c0_73] : memref<4x4x8x1xf32, #tpu.memory_space<vmem>>, vector<4x1x1x1xf32>
    %79 = vector.shape_cast %78 : vector<4x1x1x1xf32> to vector<4x1xf32>
    %80 = vector.broadcast %79 : vector<4x1xf32> to vector<4x128xf32>
    %81 = arith.mulf %77, %80 : vector<4x128xf32>
    %c0_74 = arith.constant 0 : index
    %c1_75 = arith.constant 1 : index
    %c1_76 = arith.constant 1 : index
    %c0_77 = arith.constant 0 : index
    %82 = vector.load %arg3[%c0_74, %c1_75, %c1_76, %c0_77] : memref<4x4x8x128xbf16, #tpu.memory_space<vmem>>, vector<4x1x1x128xbf16>
    %83 = vector.shape_cast %82 : vector<4x1x1x128xbf16> to vector<4x128xbf16>
    %84 = arith.extf %83 : vector<4x128xbf16> to vector<4x128xf32>
    %c0_78 = arith.constant 0 : index
    %c1_79 = arith.constant 1 : index
    %c1_80 = arith.constant 1 : index
    %c0_81 = arith.constant 0 : index
    %85 = vector.load %arg1[%c0_78, %c1_79, %c1_80, %c0_81] : memref<4x4x8x1xf32, #tpu.memory_space<vmem>>, vector<4x1x1x1xf32>
    %86 = vector.shape_cast %85 : vector<4x1x1x1xf32> to vector<4x1xf32>
    %87 = vector.broadcast %86 : vector<4x1xf32> to vector<4x128xf32>
    %88 = arith.mulf %84, %87 : vector<4x128xf32>
    %89 = arith.addf %81, %88 : vector<4x128xf32>
    %c0_82 = arith.constant 0 : index
    %c1_83 = arith.constant 1 : index
    %c2_84 = arith.constant 2 : index
    %c0_85 = arith.constant 0 : index
    %90 = vector.load %arg3[%c0_82, %c1_83, %c2_84, %c0_85] : memref<4x4x8x128xbf16, #tpu.memory_space<vmem>>, vector<4x1x1x128xbf16>
    %91 = vector.shape_cast %90 : vector<4x1x1x128xbf16> to vector<4x128xbf16>
    %92 = arith.extf %91 : vector<4x128xbf16> to vector<4x128xf32>
    %c0_86 = arith.constant 0 : index
    %c1_87 = arith.constant 1 : index
    %c2_88 = arith.constant 2 : index
    %c0_89 = arith.constant 0 : index
    %93 = vector.load %arg1[%c0_86, %c1_87, %c2_88, %c0_89] : memref<4x4x8x1xf32, #tpu.memory_space<vmem>>, vector<4x1x1x1xf32>
    %94 = vector.shape_cast %93 : vector<4x1x1x1xf32> to vector<4x1xf32>
    %95 = vector.broadcast %94 : vector<4x1xf32> to vector<4x128xf32>
    %96 = arith.mulf %92, %95 : vector<4x128xf32>
    %97 = arith.addf %89, %96 : vector<4x128xf32>
    %c0_90 = arith.constant 0 : index
    %c1_91 = arith.constant 1 : index
    %c3_92 = arith.constant 3 : index
    %c0_93 = arith.constant 0 : index
    %98 = vector.load %arg3[%c0_90, %c1_91, %c3_92, %c0_93] : memref<4x4x8x128xbf16, #tpu.memory_space<vmem>>, vector<4x1x1x128xbf16>
    %99 = vector.shape_cast %98 : vector<4x1x1x128xbf16> to vector<4x128xbf16>
    %100 = arith.extf %99 : vector<4x128xbf16> to vector<4x128xf32>
    %c0_94 = arith.constant 0 : index
    %c1_95 = arith.constant 1 : index
    %c3_96 = arith.constant 3 : index
    %c0_97 = arith.constant 0 : index
    %101 = vector.load %arg1[%c0_94, %c1_95, %c3_96, %c0_97] : memref<4x4x8x1xf32, #tpu.memory_space<vmem>>, vector<4x1x1x1xf32>
    %102 = vector.shape_cast %101 : vector<4x1x1x1xf32> to vector<4x1xf32>
    %103 = vector.broadcast %102 : vector<4x1xf32> to vector<4x128xf32>
    %104 = arith.mulf %100, %103 : vector<4x128xf32>
    %105 = arith.addf %97, %104 : vector<4x128xf32>
    %c0_98 = arith.constant 0 : index
    %c1_99 = arith.constant 1 : index
    %c4_100 = arith.constant 4 : index
    %c0_101 = arith.constant 0 : index
    %106 = vector.load %arg3[%c0_98, %c1_99, %c4_100, %c0_101] : memref<4x4x8x128xbf16, #tpu.memory_space<vmem>>, vector<4x1x1x128xbf16>
    %107 = vector.shape_cast %106 : vector<4x1x1x128xbf16> to vector<4x128xbf16>
    %108 = arith.extf %107 : vector<4x128xbf16> to vector<4x128xf32>
    %c0_102 = arith.constant 0 : index
    %c1_103 = arith.constant 1 : index
    %c4_104 = arith.constant 4 : index
    %c0_105 = arith.constant 0 : index
    %109 = vector.load %arg1[%c0_102, %c1_103, %c4_104, %c0_105] : memref<4x4x8x1xf32, #tpu.memory_space<vmem>>, vector<4x1x1x1xf32>
    %110 = vector.shape_cast %109 : vector<4x1x1x1xf32> to vector<4x1xf32>
    %111 = vector.broadcast %110 : vector<4x1xf32> to vector<4x128xf32>
    %112 = arith.mulf %108, %111 : vector<4x128xf32>
    %113 = arith.addf %105, %112 : vector<4x128xf32>
    %c0_106 = arith.constant 0 : index
    %c1_107 = arith.constant 1 : index
    %c5_108 = arith.constant 5 : index
    %c0_109 = arith.constant 0 : index
    %114 = vector.load %arg3[%c0_106, %c1_107, %c5_108, %c0_109] : memref<4x4x8x128xbf16, #tpu.memory_space<vmem>>, vector<4x1x1x128xbf16>
    %115 = vector.shape_cast %114 : vector<4x1x1x128xbf16> to vector<4x128xbf16>
    %116 = arith.extf %115 : vector<4x128xbf16> to vector<4x128xf32>
    %c0_110 = arith.constant 0 : index
    %c1_111 = arith.constant 1 : index
    %c5_112 = arith.constant 5 : index
    %c0_113 = arith.constant 0 : index
    %117 = vector.load %arg1[%c0_110, %c1_111, %c5_112, %c0_113] : memref<4x4x8x1xf32, #tpu.memory_space<vmem>>, vector<4x1x1x1xf32>
    %118 = vector.shape_cast %117 : vector<4x1x1x1xf32> to vector<4x1xf32>
    %119 = vector.broadcast %118 : vector<4x1xf32> to vector<4x128xf32>
    %120 = arith.mulf %116, %119 : vector<4x128xf32>
    %121 = arith.addf %113, %120 : vector<4x128xf32>
    %c0_114 = arith.constant 0 : index
    %c1_115 = arith.constant 1 : index
    %c6_116 = arith.constant 6 : index
    %c0_117 = arith.constant 0 : index
    %122 = vector.load %arg3[%c0_114, %c1_115, %c6_116, %c0_117] : memref<4x4x8x128xbf16, #tpu.memory_space<vmem>>, vector<4x1x1x128xbf16>
    %123 = vector.shape_cast %122 : vector<4x1x1x128xbf16> to vector<4x128xbf16>
    %124 = arith.extf %123 : vector<4x128xbf16> to vector<4x128xf32>
    %c0_118 = arith.constant 0 : index
    %c1_119 = arith.constant 1 : index
    %c6_120 = arith.constant 6 : index
    %c0_121 = arith.constant 0 : index
    %125 = vector.load %arg1[%c0_118, %c1_119, %c6_120, %c0_121] : memref<4x4x8x1xf32, #tpu.memory_space<vmem>>, vector<4x1x1x1xf32>
    %126 = vector.shape_cast %125 : vector<4x1x1x1xf32> to vector<4x1xf32>
    %127 = vector.broadcast %126 : vector<4x1xf32> to vector<4x128xf32>
    %128 = arith.mulf %124, %127 : vector<4x128xf32>
    %129 = arith.addf %121, %128 : vector<4x128xf32>
    %c0_122 = arith.constant 0 : index
    %c1_123 = arith.constant 1 : index
    %c7_124 = arith.constant 7 : index
    %c0_125 = arith.constant 0 : index
    %130 = vector.load %arg3[%c0_122, %c1_123, %c7_124, %c0_125] : memref<4x4x8x128xbf16, #tpu.memory_space<vmem>>, vector<4x1x1x128xbf16>
    %131 = vector.shape_cast %130 : vector<4x1x1x128xbf16> to vector<4x128xbf16>
    %132 = arith.extf %131 : vector<4x128xbf16> to vector<4x128xf32>
    %c0_126 = arith.constant 0 : index
    %c1_127 = arith.constant 1 : index
    %c7_128 = arith.constant 7 : index
    %c0_129 = arith.constant 0 : index
    %133 = vector.load %arg1[%c0_126, %c1_127, %c7_128, %c0_129] : memref<4x4x8x1xf32, #tpu.memory_space<vmem>>, vector<4x1x1x1xf32>
    %134 = vector.shape_cast %133 : vector<4x1x1x1xf32> to vector<4x1xf32>
    %135 = vector.broadcast %134 : vector<4x1xf32> to vector<4x128xf32>
    %136 = arith.mulf %132, %135 : vector<4x128xf32>
    %137 = arith.addf %129, %136 : vector<4x128xf32>
    %c1_130 = arith.constant 1 : index
    %c0_131 = arith.constant 0 : index
    %c0_132 = arith.constant 0 : index
    %138 = vector.load %arg9[%c1_130, %c0_131, %c0_132] : memref<4x4x128xf32, #tpu.memory_space<vmem>>, vector<1x4x128xf32>
    %139 = vector.shape_cast %138 : vector<1x4x128xf32> to vector<4x128xf32>
    %140 = vector.shape_cast %137 : vector<4x128xf32> to vector<1x4x128xf32>
    tpu.vector_store %arg9[%c1_130, %c0_131, %c0_132], %140 {strides = array<i32>} : memref<4x4x128xf32, #tpu.memory_space<vmem>>, vector<1x4x128xf32>,
    %141 = arith.truncf %137 : vector<4x128xf32> to vector<4x128xbf16>
    %cst_133 = arith.constant dense<0.000000e+00> : vector<4x128xf32>
    %142 = tpu.matmul %141, %0, %cst_133 {dimension_numbers = #tpu.dot_dimension_numbers<[1], [0], [0], [1], [0, 0, 1, 1], [], []>} : vector<4x128xbf16>, vector<128x128xbf16>, vector<4x128xf32> -> vector<4x128xf32>
    %143 = vector.broadcast %1 : vector<1x128xf32> to vector<4x128xf32>
    %144 = arith.addf %142, %143 : vector<4x128xf32>
    %c1_134 = arith.constant 1 : index
    %c0_135 = arith.constant 0 : index
    %c0_136 = arith.constant 0 : index
    %145 = vector.load %arg10[%c1_134, %c0_135, %c0_136] : memref<4x4x128xf32, #tpu.memory_space<vmem>>, vector<1x4x128xf32>
    %146 = vector.shape_cast %145 : vector<1x4x128xf32> to vector<4x128xf32>
    %147 = vector.shape_cast %144 : vector<4x128xf32> to vector<1x4x128xf32>
    tpu.vector_store %arg10[%c1_134, %c0_135, %c0_136], %147 {strides = array<i32>} : memref<4x4x128xf32, #tpu.memory_space<vmem>>, vector<1x4x128xf32>,
    %c0_137 = arith.constant 0 : index
    %c2_138 = arith.constant 2 : index
    %c0_139 = arith.constant 0 : index
    %c0_140 = arith.constant 0 : index
    %148 = vector.load %arg3[%c0_137, %c2_138, %c0_139, %c0_140] : memref<4x4x8x128xbf16, #tpu.memory_space<vmem>>, vector<4x1x1x128xbf16>
    %149 = vector.shape_cast %148 : vector<4x1x1x128xbf16> to vector<4x128xbf16>
    %150 = arith.extf %149 : vector<4x128xbf16> to vector<4x128xf32>
    %c0_141 = arith.constant 0 : index
    %c2_142 = arith.constant 2 : index
    %c0_143 = arith.constant 0 : index
    %c0_144 = arith.constant 0 : index
    %151 = vector.load %arg1[%c0_141, %c2_142, %c0_143, %c0_144] : memref<4x4x8x1xf32, #tpu.memory_space<vmem>>, vector<4x1x1x1xf32>
    %152 = vector.shape_cast %151 : vector<4x1x1x1xf32> to vector<4x1xf32>
    %153 = vector.broadcast %152 : vector<4x1xf32> to vector<4x128xf32>
    %154 = arith.mulf %150, %153 : vector<4x128xf32>
    %c0_145 = arith.constant 0 : index
    %c2_146 = arith.constant 2 : index
    %c1_147 = arith.constant 1 : index
    %c0_148 = arith.constant 0 : index
    %155 = vector.load %arg3[%c0_145, %c2_146, %c1_147, %c0_148] : memref<4x4x8x128xbf16, #tpu.memory_space<vmem>>, vector<4x1x1x128xbf16>
    %156 = vector.shape_cast %155 : vector<4x1x1x128xbf16> to vector<4x128xbf16>
    %157 = arith.extf %156 : vector<4x128xbf16> to vector<4x128xf32>
    %c0_149 = arith.constant 0 : index
    %c2_150 = arith.constant 2 : index
    %c1_151 = arith.constant 1 : index
    %c0_152 = arith.constant 0 : index
    %158 = vector.load %arg1[%c0_149, %c2_150, %c1_151, %c0_152] : memref<4x4x8x1xf32, #tpu.memory_space<vmem>>, vector<4x1x1x1xf32>
    %159 = vector.shape_cast %158 : vector<4x1x1x1xf32> to vector<4x1xf32>
    %160 = vector.broadcast %159 : vector<4x1xf32> to vector<4x128xf32>
    %161 = arith.mulf %157, %160 : vector<4x128xf32>
    %162 = arith.addf %154, %161 : vector<4x128xf32>
    %c0_153 = arith.constant 0 : index
    %c2_154 = arith.constant 2 : index
    %c2_155 = arith.constant 2 : index
    %c0_156 = arith.constant 0 : index
    %163 = vector.load %arg3[%c0_153, %c2_154, %c2_155, %c0_156] : memref<4x4x8x128xbf16, #tpu.memory_space<vmem>>, vector<4x1x1x128xbf16>
    %164 = vector.shape_cast %163 : vector<4x1x1x128xbf16> to vector<4x128xbf16>
    %165 = arith.extf %164 : vector<4x128xbf16> to vector<4x128xf32>
    %c0_157 = arith.constant 0 : index
    %c2_158 = arith.constant 2 : index
    %c2_159 = arith.constant 2 : index
    %c0_160 = arith.constant 0 : index
    %166 = vector.load %arg1[%c0_157, %c2_158, %c2_159, %c0_160] : memref<4x4x8x1xf32, #tpu.memory_space<vmem>>, vector<4x1x1x1xf32>
    %167 = vector.shape_cast %166 : vector<4x1x1x1xf32> to vector<4x1xf32>
    %168 = vector.broadcast %167 : vector<4x1xf32> to vector<4x128xf32>
    %169 = arith.mulf %165, %168 : vector<4x128xf32>
    %170 = arith.addf %162, %169 : vector<4x128xf32>
    %c0_161 = arith.constant 0 : index
    %c2_162 = arith.constant 2 : index
    %c3_163 = arith.constant 3 : index
    %c0_164 = arith.constant 0 : index
    %171 = vector.load %arg3[%c0_161, %c2_162, %c3_163, %c0_164] : memref<4x4x8x128xbf16, #tpu.memory_space<vmem>>, vector<4x1x1x128xbf16>
    %172 = vector.shape_cast %171 : vector<4x1x1x128xbf16> to vector<4x128xbf16>
    %173 = arith.extf %172 : vector<4x128xbf16> to vector<4x128xf32>
    %c0_165 = arith.constant 0 : index
    %c2_166 = arith.constant 2 : index
    %c3_167 = arith.constant 3 : index
    %c0_168 = arith.constant 0 : index
    %174 = vector.load %arg1[%c0_165, %c2_166, %c3_167, %c0_168] : memref<4x4x8x1xf32, #tpu.memory_space<vmem>>, vector<4x1x1x1xf32>
    %175 = vector.shape_cast %174 : vector<4x1x1x1xf32> to vector<4x1xf32>
    %176 = vector.broadcast %175 : vector<4x1xf32> to vector<4x128xf32>
    %177 = arith.mulf %173, %176 : vector<4x128xf32>
    %178 = arith.addf %170, %177 : vector<4x128xf32>
    %c0_169 = arith.constant 0 : index
    %c2_170 = arith.constant 2 : index
    %c4_171 = arith.constant 4 : index
    %c0_172 = arith.constant 0 : index
    %179 = vector.load %arg3[%c0_169, %c2_170, %c4_171, %c0_172] : memref<4x4x8x128xbf16, #tpu.memory_space<vmem>>, vector<4x1x1x128xbf16>
    %180 = vector.shape_cast %179 : vector<4x1x1x128xbf16> to vector<4x128xbf16>
    %181 = arith.extf %180 : vector<4x128xbf16> to vector<4x128xf32>
    %c0_173 = arith.constant 0 : index
    %c2_174 = arith.constant 2 : index
    %c4_175 = arith.constant 4 : index
    %c0_176 = arith.constant 0 : index
    %182 = vector.load %arg1[%c0_173, %c2_174, %c4_175, %c0_176] : memref<4x4x8x1xf32, #tpu.memory_space<vmem>>, vector<4x1x1x1xf32>
    %183 = vector.shape_cast %182 : vector<4x1x1x1xf32> to vector<4x1xf32>
    %184 = vector.broadcast %183 : vector<4x1xf32> to vector<4x128xf32>
    %185 = arith.mulf %181, %184 : vector<4x128xf32>
    %186 = arith.addf %178, %185 : vector<4x128xf32>
    %c0_177 = arith.constant 0 : index
    %c2_178 = arith.constant 2 : index
    %c5_179 = arith.constant 5 : index
    %c0_180 = arith.constant 0 : index
    %187 = vector.load %arg3[%c0_177, %c2_178, %c5_179, %c0_180] : memref<4x4x8x128xbf16, #tpu.memory_space<vmem>>, vector<4x1x1x128xbf16>
    %188 = vector.shape_cast %187 : vector<4x1x1x128xbf16> to vector<4x128xbf16>
    %189 = arith.extf %188 : vector<4x128xbf16> to vector<4x128xf32>
    %c0_181 = arith.constant 0 : index
    %c2_182 = arith.constant 2 : index
    %c5_183 = arith.constant 5 : index
    %c0_184 = arith.constant 0 : index
    %190 = vector.load %arg1[%c0_181, %c2_182, %c5_183, %c0_184] : memref<4x4x8x1xf32, #tpu.memory_space<vmem>>, vector<4x1x1x1xf32>
    %191 = vector.shape_cast %190 : vector<4x1x1x1xf32> to vector<4x1xf32>
    %192 = vector.broadcast %191 : vector<4x1xf32> to vector<4x128xf32>
    %193 = arith.mulf %189, %192 : vector<4x128xf32>
    %194 = arith.addf %186, %193 : vector<4x128xf32>
    %c0_185 = arith.constant 0 : index
    %c2_186 = arith.constant 2 : index
    %c6_187 = arith.constant 6 : index
    %c0_188 = arith.constant 0 : index
    %195 = vector.load %arg3[%c0_185, %c2_186, %c6_187, %c0_188] : memref<4x4x8x128xbf16, #tpu.memory_space<vmem>>, vector<4x1x1x128xbf16>
    %196 = vector.shape_cast %195 : vector<4x1x1x128xbf16> to vector<4x128xbf16>
    %197 = arith.extf %196 : vector<4x128xbf16> to vector<4x128xf32>
    %c0_189 = arith.constant 0 : index
    %c2_190 = arith.constant 2 : index
    %c6_191 = arith.constant 6 : index
    %c0_192 = arith.constant 0 : index
    %198 = vector.load %arg1[%c0_189, %c2_190, %c6_191, %c0_192] : memref<4x4x8x1xf32, #tpu.memory_space<vmem>>, vector<4x1x1x1xf32>
    %199 = vector.shape_cast %198 : vector<4x1x1x1xf32> to vector<4x1xf32>
    %200 = vector.broadcast %199 : vector<4x1xf32> to vector<4x128xf32>
    %201 = arith.mulf %197, %200 : vector<4x128xf32>
    %202 = arith.addf %194, %201 : vector<4x128xf32>
    %c0_193 = arith.constant 0 : index
    %c2_194 = arith.constant 2 : index
    %c7_195 = arith.constant 7 : index
    %c0_196 = arith.constant 0 : index
    %203 = vector.load %arg3[%c0_193, %c2_194, %c7_195, %c0_196] : memref<4x4x8x128xbf16, #tpu.memory_space<vmem>>, vector<4x1x1x128xbf16>
    %204 = vector.shape_cast %203 : vector<4x1x1x128xbf16> to vector<4x128xbf16>
    %205 = arith.extf %204 : vector<4x128xbf16> to vector<4x128xf32>
    %c0_197 = arith.constant 0 : index
    %c2_198 = arith.constant 2 : index
    %c7_199 = arith.constant 7 : index
    %c0_200 = arith.constant 0 : index
    %206 = vector.load %arg1[%c0_197, %c2_198, %c7_199, %c0_200] : memref<4x4x8x1xf32, #tpu.memory_space<vmem>>, vector<4x1x1x1xf32>
    %207 = vector.shape_cast %206 : vector<4x1x1x1xf32> to vector<4x1xf32>
    %208 = vector.broadcast %207 : vector<4x1xf32> to vector<4x128xf32>
    %209 = arith.mulf %205, %208 : vector<4x128xf32>
    %210 = arith.addf %202, %209 : vector<4x128xf32>
    %c2_201 = arith.constant 2 : index
    %c0_202 = arith.constant 0 : index
    %c0_203 = arith.constant 0 : index
    %211 = vector.load %arg9[%c2_201, %c0_202, %c0_203] : memref<4x4x128xf32, #tpu.memory_space<vmem>>, vector<1x4x128xf32>
    %212 = vector.shape_cast %211 : vector<1x4x128xf32> to vector<4x128xf32>
    %213 = vector.shape_cast %210 : vector<4x128xf32> to vector<1x4x128xf32>
    tpu.vector_store %arg9[%c2_201, %c0_202, %c0_203], %213 {strides = array<i32>} : memref<4x4x128xf32, #tpu.memory_space<vmem>>, vector<1x4x128xf32>,
    %214 = arith.truncf %210 : vector<4x128xf32> to vector<4x128xbf16>
    %cst_204 = arith.constant dense<0.000000e+00> : vector<4x128xf32>
    %215 = tpu.matmul %214, %0, %cst_204 {dimension_numbers = #tpu.dot_dimension_numbers<[1], [0], [0], [1], [0, 0, 1, 1], [], []>} : vector<4x128xbf16>, vector<128x128xbf16>, vector<4x128xf32> -> vector<4x128xf32>
    %216 = vector.broadcast %1 : vector<1x128xf32> to vector<4x128xf32>
    %217 = arith.addf %215, %216 : vector<4x128xf32>
    %c2_205 = arith.constant 2 : index
    %c0_206 = arith.constant 0 : index
    %c0_207 = arith.constant 0 : index
    %218 = vector.load %arg10[%c2_205, %c0_206, %c0_207] : memref<4x4x128xf32, #tpu.memory_space<vmem>>, vector<1x4x128xf32>
    %219 = vector.shape_cast %218 : vector<1x4x128xf32> to vector<4x128xf32>
    %220 = vector.shape_cast %217 : vector<4x128xf32> to vector<1x4x128xf32>
    tpu.vector_store %arg10[%c2_205, %c0_206, %c0_207], %220 {strides = array<i32>} : memref<4x4x128xf32, #tpu.memory_space<vmem>>, vector<1x4x128xf32>,
    %c0_208 = arith.constant 0 : index
    %c3_209 = arith.constant 3 : index
    %c0_210 = arith.constant 0 : index
    %c0_211 = arith.constant 0 : index
    %221 = vector.load %arg3[%c0_208, %c3_209, %c0_210, %c0_211] : memref<4x4x8x128xbf16, #tpu.memory_space<vmem>>, vector<4x1x1x128xbf16>
    %222 = vector.shape_cast %221 : vector<4x1x1x128xbf16> to vector<4x128xbf16>
    %223 = arith.extf %222 : vector<4x128xbf16> to vector<4x128xf32>
    %c0_212 = arith.constant 0 : index
    %c3_213 = arith.constant 3 : index
    %c0_214 = arith.constant 0 : index
    %c0_215 = arith.constant 0 : index
    %224 = vector.load %arg1[%c0_212, %c3_213, %c0_214, %c0_215] : memref<4x4x8x1xf32, #tpu.memory_space<vmem>>, vector<4x1x1x1xf32>
    %225 = vector.shape_cast %224 : vector<4x1x1x1xf32> to vector<4x1xf32>
    %226 = vector.broadcast %225 : vector<4x1xf32> to vector<4x128xf32>
    %227 = arith.mulf %223, %226 : vector<4x128xf32>
    %c0_216 = arith.constant 0 : index
    %c3_217 = arith.constant 3 : index
    %c1_218 = arith.constant 1 : index
    %c0_219 = arith.constant 0 : index
    %228 = vector.load %arg3[%c0_216, %c3_217, %c1_218, %c0_219] : memref<4x4x8x128xbf16, #tpu.memory_space<vmem>>, vector<4x1x1x128xbf16>
    %229 = vector.shape_cast %228 : vector<4x1x1x128xbf16> to vector<4x128xbf16>
    %230 = arith.extf %229 : vector<4x128xbf16> to vector<4x128xf32>
    %c0_220 = arith.constant 0 : index
    %c3_221 = arith.constant 3 : index
    %c1_222 = arith.constant 1 : index
    %c0_223 = arith.constant 0 : index
    %231 = vector.load %arg1[%c0_220, %c3_221, %c1_222, %c0_223] : memref<4x4x8x1xf32, #tpu.memory_space<vmem>>, vector<4x1x1x1xf32>
    %232 = vector.shape_cast %231 : vector<4x1x1x1xf32> to vector<4x1xf32>
    %233 = vector.broadcast %232 : vector<4x1xf32> to vector<4x128xf32>
    %234 = arith.mulf %230, %233 : vector<4x128xf32>
    %235 = arith.addf %227, %234 : vector<4x128xf32>
    %c0_224 = arith.constant 0 : index
    %c3_225 = arith.constant 3 : index
    %c2_226 = arith.constant 2 : index
    %c0_227 = arith.constant 0 : index
    %236 = vector.load %arg3[%c0_224, %c3_225, %c2_226, %c0_227] : memref<4x4x8x128xbf16, #tpu.memory_space<vmem>>, vector<4x1x1x128xbf16>
    %237 = vector.shape_cast %236 : vector<4x1x1x128xbf16> to vector<4x128xbf16>
    %238 = arith.extf %237 : vector<4x128xbf16> to vector<4x128xf32>
    %c0_228 = arith.constant 0 : index
    %c3_229 = arith.constant 3 : index
    %c2_230 = arith.constant 2 : index
    %c0_231 = arith.constant 0 : index
    %239 = vector.load %arg1[%c0_228, %c3_229, %c2_230, %c0_231] : memref<4x4x8x1xf32, #tpu.memory_space<vmem>>, vector<4x1x1x1xf32>
    %240 = vector.shape_cast %239 : vector<4x1x1x1xf32> to vector<4x1xf32>
    %241 = vector.broadcast %240 : vector<4x1xf32> to vector<4x128xf32>
    %242 = arith.mulf %238, %241 : vector<4x128xf32>
    %243 = arith.addf %235, %242 : vector<4x128xf32>
    %c0_232 = arith.constant 0 : index
    %c3_233 = arith.constant 3 : index
    %c3_234 = arith.constant 3 : index
    %c0_235 = arith.constant 0 : index
    %244 = vector.load %arg3[%c0_232, %c3_233, %c3_234, %c0_235] : memref<4x4x8x128xbf16, #tpu.memory_space<vmem>>, vector<4x1x1x128xbf16>
    %245 = vector.shape_cast %244 : vector<4x1x1x128xbf16> to vector<4x128xbf16>
    %246 = arith.extf %245 : vector<4x128xbf16> to vector<4x128xf32>
    %c0_236 = arith.constant 0 : index
    %c3_237 = arith.constant 3 : index
    %c3_238 = arith.constant 3 : index
    %c0_239 = arith.constant 0 : index
    %247 = vector.load %arg1[%c0_236, %c3_237, %c3_238, %c0_239] : memref<4x4x8x1xf32, #tpu.memory_space<vmem>>, vector<4x1x1x1xf32>
    %248 = vector.shape_cast %247 : vector<4x1x1x1xf32> to vector<4x1xf32>
    %249 = vector.broadcast %248 : vector<4x1xf32> to vector<4x128xf32>
    %250 = arith.mulf %246, %249 : vector<4x128xf32>
    %251 = arith.addf %243, %250 : vector<4x128xf32>
    %c0_240 = arith.constant 0 : index
    %c3_241 = arith.constant 3 : index
    %c4_242 = arith.constant 4 : index
    %c0_243 = arith.constant 0 : index
    %252 = vector.load %arg3[%c0_240, %c3_241, %c4_242, %c0_243] : memref<4x4x8x128xbf16, #tpu.memory_space<vmem>>, vector<4x1x1x128xbf16>
    %253 = vector.shape_cast %252 : vector<4x1x1x128xbf16> to vector<4x128xbf16>
    %254 = arith.extf %253 : vector<4x128xbf16> to vector<4x128xf32>
    %c0_244 = arith.constant 0 : index
    %c3_245 = arith.constant 3 : index
    %c4_246 = arith.constant 4 : index
    %c0_247 = arith.constant 0 : index
    %255 = vector.load %arg1[%c0_244, %c3_245, %c4_246, %c0_247] : memref<4x4x8x1xf32, #tpu.memory_space<vmem>>, vector<4x1x1x1xf32>
    %256 = vector.shape_cast %255 : vector<4x1x1x1xf32> to vector<4x1xf32>
    %257 = vector.broadcast %256 : vector<4x1xf32> to vector<4x128xf32>
    %258 = arith.mulf %254, %257 : vector<4x128xf32>
    %259 = arith.addf %251, %258 : vector<4x128xf32>
    %c0_248 = arith.constant 0 : index
    %c3_249 = arith.constant 3 : index
    %c5_250 = arith.constant 5 : index
    %c0_251 = arith.constant 0 : index
    %260 = vector.load %arg3[%c0_248, %c3_249, %c5_250, %c0_251] : memref<4x4x8x128xbf16, #tpu.memory_space<vmem>>, vector<4x1x1x128xbf16>
    %261 = vector.shape_cast %260 : vector<4x1x1x128xbf16> to vector<4x128xbf16>
    %262 = arith.extf %261 : vector<4x128xbf16> to vector<4x128xf32>
    %c0_252 = arith.constant 0 : index
    %c3_253 = arith.constant 3 : index
    %c5_254 = arith.constant 5 : index
    %c0_255 = arith.constant 0 : index
    %263 = vector.load %arg1[%c0_252, %c3_253, %c5_254, %c0_255] : memref<4x4x8x1xf32, #tpu.memory_space<vmem>>, vector<4x1x1x1xf32>
    %264 = vector.shape_cast %263 : vector<4x1x1x1xf32> to vector<4x1xf32>
    %265 = vector.broadcast %264 : vector<4x1xf32> to vector<4x128xf32>
    %266 = arith.mulf %262, %265 : vector<4x128xf32>
    %267 = arith.addf %259, %266 : vector<4x128xf32>
    %c0_256 = arith.constant 0 : index
    %c3_257 = arith.constant 3 : index
    %c6_258 = arith.constant 6 : index
    %c0_259 = arith.constant 0 : index
    %268 = vector.load %arg3[%c0_256, %c3_257, %c6_258, %c0_259] : memref<4x4x8x128xbf16, #tpu.memory_space<vmem>>, vector<4x1x1x128xbf16>
    %269 = vector.shape_cast %268 : vector<4x1x1x128xbf16> to vector<4x128xbf16>
    %270 = arith.extf %269 : vector<4x128xbf16> to vector<4x128xf32>
    %c0_260 = arith.constant 0 : index
    %c3_261 = arith.constant 3 : index
    %c6_262 = arith.constant 6 : index
    %c0_263 = arith.constant 0 : index
    %271 = vector.load %arg1[%c0_260, %c3_261, %c6_262, %c0_263] : memref<4x4x8x1xf32, #tpu.memory_space<vmem>>, vector<4x1x1x1xf32>
    %272 = vector.shape_cast %271 : vector<4x1x1x1xf32> to vector<4x1xf32>
    %273 = vector.broadcast %272 : vector<4x1xf32> to vector<4x128xf32>
    %274 = arith.mulf %270, %273 : vector<4x128xf32>
    %275 = arith.addf %267, %274 : vector<4x128xf32>
    %c0_264 = arith.constant 0 : index
    %c3_265 = arith.constant 3 : index
    %c7_266 = arith.constant 7 : index
    %c0_267 = arith.constant 0 : index
    %276 = vector.load %arg3[%c0_264, %c3_265, %c7_266, %c0_267] : memref<4x4x8x128xbf16, #tpu.memory_space<vmem>>, vector<4x1x1x128xbf16>
    %277 = vector.shape_cast %276 : vector<4x1x1x128xbf16> to vector<4x128xbf16>
    %278 = arith.extf %277 : vector<4x128xbf16> to vector<4x128xf32>
    %c0_268 = arith.constant 0 : index
    %c3_269 = arith.constant 3 : index
    %c7_270 = arith.constant 7 : index
    %c0_271 = arith.constant 0 : index
    %279 = vector.load %arg1[%c0_268, %c3_269, %c7_270, %c0_271] : memref<4x4x8x1xf32, #tpu.memory_space<vmem>>, vector<4x1x1x1xf32>
    %280 = vector.shape_cast %279 : vector<4x1x1x1xf32> to vector<4x1xf32>
    %281 = vector.broadcast %280 : vector<4x1xf32> to vector<4x128xf32>
    %282 = arith.mulf %278, %281 : vector<4x128xf32>
    %283 = arith.addf %275, %282 : vector<4x128xf32>
    %c3_272 = arith.constant 3 : index
    %c0_273 = arith.constant 0 : index
    %c0_274 = arith.constant 0 : index
    %284 = vector.load %arg9[%c3_272, %c0_273, %c0_274] : memref<4x4x128xf32, #tpu.memory_space<vmem>>, vector<1x4x128xf32>
    %285 = vector.shape_cast %284 : vector<1x4x128xf32> to vector<4x128xf32>
    %286 = vector.shape_cast %283 : vector<4x128xf32> to vector<1x4x128xf32>
    tpu.vector_store %arg9[%c3_272, %c0_273, %c0_274], %286 {strides = array<i32>} : memref<4x4x128xf32, #tpu.memory_space<vmem>>, vector<1x4x128xf32>,
    %287 = arith.truncf %283 : vector<4x128xf32> to vector<4x128xbf16>
    %cst_275 = arith.constant dense<0.000000e+00> : vector<4x128xf32>
    %288 = tpu.matmul %287, %0, %cst_275 {dimension_numbers = #tpu.dot_dimension_numbers<[1], [0], [0], [1], [0, 0, 1, 1], [], []>} : vector<4x128xbf16>, vector<128x128xbf16>, vector<4x128xf32> -> vector<4x128xf32>
    %289 = vector.broadcast %1 : vector<1x128xf32> to vector<4x128xf32>
    %290 = arith.addf %288, %289 : vector<4x128xf32>
    %c3_276 = arith.constant 3 : index
    %c0_277 = arith.constant 0 : index
    %c0_278 = arith.constant 0 : index
    %291 = vector.load %arg10[%c3_276, %c0_277, %c0_278] : memref<4x4x128xf32, #tpu.memory_space<vmem>>, vector<1x4x128xf32>
    %292 = vector.shape_cast %291 : vector<1x4x128xf32> to vector<4x128xf32>
    %293 = vector.shape_cast %290 : vector<4x128xf32> to vector<1x4x128xf32>
    tpu.vector_store %arg10[%c3_276, %c0_277, %c0_278], %293 {strides = array<i32>} : memref<4x4x128xf32, #tpu.memory_space<vmem>>, vector<1x4x128xf32>,
    %c0_279 = arith.constant 0 : index
    %c0_280 = arith.constant 0 : index
    %294 = vector.load %arg4[%c0_279, %c0_280] : memref<128x128xbf16, #tpu.memory_space<vmem>>, vector<128x128xbf16>
    %c0_281 = arith.constant 0 : index
    %c0_282 = arith.constant 0 : index
    %295 = vector.load %arg7[%c0_281, %c0_282] : memref<4x128xf32, #tpu.memory_space<vmem>>, vector<4x128xf32>
    %c0_283 = arith.constant 0 : index
    %c0_284 = arith.constant 0 : index
    %c0_285 = arith.constant 0 : index
    %296 = vector.load %arg9[%c0_283, %c0_284, %c0_285] : memref<4x4x128xf32, #tpu.memory_space<vmem>>, vector<1x4x128xf32>
    %297 = vector.shape_cast %296 : vector<1x4x128xf32> to vector<4x128xf32>
    %c0_286 = arith.constant 0 : index
    %c0_287 = arith.constant 0 : index
    %c0_288 = arith.constant 0 : index
    %298 = vector.load %arg10[%c0_286, %c0_287, %c0_288] : memref<4x4x128xf32, #tpu.memory_space<vmem>>, vector<1x4x128xf32>
    %299 = vector.shape_cast %298 : vector<1x4x128xf32> to vector<4x128xf32>
    %c0_289 = arith.constant 0 : index
    %c0_290 = arith.constant 0 : index
    %c0_291 = arith.constant 0 : index
    %300 = vector.load %arg2[%c0_289, %c0_290, %c0_291] : memref<4x4x1xf32, #tpu.memory_space<vmem>>, vector<1x4x1xf32>
    %301 = vector.shape_cast %300 : vector<1x4x1xf32> to vector<4x1xf32>
    %302 = arith.truncf %295 : vector<4x128xf32> to vector<4x128xbf16>
    %cst_292 = arith.constant dense<0.000000e+00> : vector<4x128xf32>
    %303 = tpu.matmul %302, %294, %cst_292 {dimension_numbers = #tpu.dot_dimension_numbers<[1], [0], [0], [1], [0, 0, 1, 1], [], []>} : vector<4x128xbf16>, vector<128x128xbf16>, vector<4x128xf32> -> vector<4x128xf32>
    %304 = arith.addf %303, %299 : vector<4x128xf32>
    %305 = arith.negf %304 : vector<4x128xf32>
    %306 = math.exp %305 : vector<4x128xf32>
    %cst_293 = arith.constant 1.000000e+00 : f32
    %307 = vector.broadcast %cst_293 : f32 to vector<4x128xf32>
    %308 = arith.addf %307, %306 : vector<4x128xf32>
    %309 = arith.divf %307, %308 : vector<4x128xf32>
    %310 = vector.broadcast %301 : vector<4x1xf32> to vector<4x128xf32>
    %311 = arith.mulf %309, %310 : vector<4x128xf32>
    %cst_294 = arith.constant 1.000000e+00 : f32
    %312 = vector.broadcast %cst_294 : f32 to vector<4x1xf32>
    %313 = arith.subf %312, %301 : vector<4x1xf32>
    %314 = vector.broadcast %313 : vector<4x1xf32> to vector<4x128xf32>
    %315 = arith.addf %311, %314 : vector<4x128xf32>
    %316 = arith.mulf %315, %295 : vector<4x128xf32>
    %cst_295 = arith.constant 1.000000e+00 : f32
    %317 = vector.broadcast %cst_295 : f32 to vector<4x128xf32>
    %318 = arith.subf %317, %315 : vector<4x128xf32>
    %319 = arith.mulf %318, %297 : vector<4x128xf32>
    %320 = arith.addf %316, %319 : vector<4x128xf32>
    %c1_296 = arith.constant 1 : index
    %c0_297 = arith.constant 0 : index
    %c0_298 = arith.constant 0 : index
    %321 = vector.load %arg9[%c1_296, %c0_297, %c0_298] : memref<4x4x128xf32, #tpu.memory_space<vmem>>, vector<1x4x128xf32>
    %322 = vector.shape_cast %321 : vector<1x4x128xf32> to vector<4x128xf32>
    %c1_299 = arith.constant 1 : index
    %c0_300 = arith.constant 0 : index
    %c0_301 = arith.constant 0 : index
    %323 = vector.load %arg10[%c1_299, %c0_300, %c0_301] : memref<4x4x128xf32, #tpu.memory_space<vmem>>, vector<1x4x128xf32>
    %324 = vector.shape_cast %323 : vector<1x4x128xf32> to vector<4x128xf32>
    %c1_302 = arith.constant 1 : index
    %c0_303 = arith.constant 0 : index
    %c0_304 = arith.constant 0 : index
    %325 = vector.load %arg2[%c1_302, %c0_303, %c0_304] : memref<4x4x1xf32, #tpu.memory_space<vmem>>, vector<1x4x1xf32>
    %326 = vector.shape_cast %325 : vector<1x4x1xf32> to vector<4x1xf32>
    %327 = arith.truncf %320 : vector<4x128xf32> to vector<4x128xbf16>
    %cst_305 = arith.constant dense<0.000000e+00> : vector<4x128xf32>
    %328 = tpu.matmul %327, %294, %cst_305 {dimension_numbers = #tpu.dot_dimension_numbers<[1], [0], [0], [1], [0, 0, 1, 1], [], []>} : vector<4x128xbf16>, vector<128x128xbf16>, vector<4x128xf32> -> vector<4x128xf32>
    %329 = arith.addf %328, %324 : vector<4x128xf32>
    %330 = arith.negf %329 : vector<4x128xf32>
    %331 = math.exp %330 : vector<4x128xf32>
    %cst_306 = arith.constant 1.000000e+00 : f32
    %332 = vector.broadcast %cst_306 : f32 to vector<4x128xf32>
    %333 = arith.addf %332, %331 : vector<4x128xf32>
    %334 = arith.divf %332, %333 : vector<4x128xf32>
    %335 = vector.broadcast %326 : vector<4x1xf32> to vector<4x128xf32>
    %336 = arith.mulf %334, %335 : vector<4x128xf32>
    %cst_307 = arith.constant 1.000000e+00 : f32
    %337 = vector.broadcast %cst_307 : f32 to vector<4x1xf32>
    %338 = arith.subf %337, %326 : vector<4x1xf32>
    %339 = vector.broadcast %338 : vector<4x1xf32> to vector<4x128xf32>
    %340 = arith.addf %336, %339 : vector<4x128xf32>
    %341 = arith.mulf %340, %320 : vector<4x128xf32>
    %cst_308 = arith.constant 1.000000e+00 : f32
    %342 = vector.broadcast %cst_308 : f32 to vector<4x128xf32>
    %343 = arith.subf %342, %340 : vector<4x128xf32>
    %344 = arith.mulf %343, %322 : vector<4x128xf32>
    %345 = arith.addf %341, %344 : vector<4x128xf32>
    %c2_309 = arith.constant 2 : index
    %c0_310 = arith.constant 0 : index
    %c0_311 = arith.constant 0 : index
    %346 = vector.load %arg9[%c2_309, %c0_310, %c0_311] : memref<4x4x128xf32, #tpu.memory_space<vmem>>, vector<1x4x128xf32>
    %347 = vector.shape_cast %346 : vector<1x4x128xf32> to vector<4x128xf32>
    %c2_312 = arith.constant 2 : index
    %c0_313 = arith.constant 0 : index
    %c0_314 = arith.constant 0 : index
    %348 = vector.load %arg10[%c2_312, %c0_313, %c0_314] : memref<4x4x128xf32, #tpu.memory_space<vmem>>, vector<1x4x128xf32>
    %349 = vector.shape_cast %348 : vector<1x4x128xf32> to vector<4x128xf32>
    %c2_315 = arith.constant 2 : index
    %c0_316 = arith.constant 0 : index
    %c0_317 = arith.constant 0 : index
    %350 = vector.load %arg2[%c2_315, %c0_316, %c0_317] : memref<4x4x1xf32, #tpu.memory_space<vmem>>, vector<1x4x1xf32>
    %351 = vector.shape_cast %350 : vector<1x4x1xf32> to vector<4x1xf32>
    %352 = arith.truncf %345 : vector<4x128xf32> to vector<4x128xbf16>
    %cst_318 = arith.constant dense<0.000000e+00> : vector<4x128xf32>
    %353 = tpu.matmul %352, %294, %cst_318 {dimension_numbers = #tpu.dot_dimension_numbers<[1], [0], [0], [1], [0, 0, 1, 1], [], []>} : vector<4x128xbf16>, vector<128x128xbf16>, vector<4x128xf32> -> vector<4x128xf32>
    %354 = arith.addf %353, %349 : vector<4x128xf32>
    %355 = arith.negf %354 : vector<4x128xf32>
    %356 = math.exp %355 : vector<4x128xf32>
    %cst_319 = arith.constant 1.000000e+00 : f32
    %357 = vector.broadcast %cst_319 : f32 to vector<4x128xf32>
    %358 = arith.addf %357, %356 : vector<4x128xf32>
    %359 = arith.divf %357, %358 : vector<4x128xf32>
    %360 = vector.broadcast %351 : vector<4x1xf32> to vector<4x128xf32>
    %361 = arith.mulf %359, %360 : vector<4x128xf32>
    %cst_320 = arith.constant 1.000000e+00 : f32
    %362 = vector.broadcast %cst_320 : f32 to vector<4x1xf32>
    %363 = arith.subf %362, %351 : vector<4x1xf32>
    %364 = vector.broadcast %363 : vector<4x1xf32> to vector<4x128xf32>
    %365 = arith.addf %361, %364 : vector<4x128xf32>
    %366 = arith.mulf %365, %345 : vector<4x128xf32>
    %cst_321 = arith.constant 1.000000e+00 : f32
    %367 = vector.broadcast %cst_321 : f32 to vector<4x128xf32>
    %368 = arith.subf %367, %365 : vector<4x128xf32>
    %369 = arith.mulf %368, %347 : vector<4x128xf32>
    %370 = arith.addf %366, %369 : vector<4x128xf32>
    %c3_322 = arith.constant 3 : index
    %c0_323 = arith.constant 0 : index
    %c0_324 = arith.constant 0 : index
    %371 = vector.load %arg9[%c3_322, %c0_323, %c0_324] : memref<4x4x128xf32, #tpu.memory_space<vmem>>, vector<1x4x128xf32>
    %372 = vector.shape_cast %371 : vector<1x4x128xf32> to vector<4x128xf32>
    %c3_325 = arith.constant 3 : index
    %c0_326 = arith.constant 0 : index
    %c0_327 = arith.constant 0 : index
    %373 = vector.load %arg10[%c3_325, %c0_326, %c0_327] : memref<4x4x128xf32, #tpu.memory_space<vmem>>, vector<1x4x128xf32>
    %374 = vector.shape_cast %373 : vector<1x4x128xf32> to vector<4x128xf32>
    %c3_328 = arith.constant 3 : index
    %c0_329 = arith.constant 0 : index
    %c0_330 = arith.constant 0 : index
    %375 = vector.load %arg2[%c3_328, %c0_329, %c0_330] : memref<4x4x1xf32, #tpu.memory_space<vmem>>, vector<1x4x1xf32>
    %376 = vector.shape_cast %375 : vector<1x4x1xf32> to vector<4x1xf32>
    %377 = arith.truncf %370 : vector<4x128xf32> to vector<4x128xbf16>
    %cst_331 = arith.constant dense<0.000000e+00> : vector<4x128xf32>
    %378 = tpu.matmul %377, %294, %cst_331 {dimension_numbers = #tpu.dot_dimension_numbers<[1], [0], [0], [1], [0, 0, 1, 1], [], []>} : vector<4x128xbf16>, vector<128x128xbf16>, vector<4x128xf32> -> vector<4x128xf32>
    %379 = arith.addf %378, %374 : vector<4x128xf32>
    %380 = arith.negf %379 : vector<4x128xf32>
    %381 = math.exp %380 : vector<4x128xf32>
    %cst_332 = arith.constant 1.000000e+00 : f32
    %382 = vector.broadcast %cst_332 : f32 to vector<4x128xf32>
    %383 = arith.addf %382, %381 : vector<4x128xf32>
    %384 = arith.divf %382, %383 : vector<4x128xf32>
    %385 = vector.broadcast %376 : vector<4x1xf32> to vector<4x128xf32>
    %386 = arith.mulf %384, %385 : vector<4x128xf32>
    %cst_333 = arith.constant 1.000000e+00 : f32
    %387 = vector.broadcast %cst_333 : f32 to vector<4x1xf32>
    %388 = arith.subf %387, %376 : vector<4x1xf32>
    %389 = vector.broadcast %388 : vector<4x1xf32> to vector<4x128xf32>
    %390 = arith.addf %386, %389 : vector<4x128xf32>
    %391 = arith.mulf %390, %370 : vector<4x128xf32>
    %cst_334 = arith.constant 1.000000e+00 : f32
    %392 = vector.broadcast %cst_334 : f32 to vector<4x128xf32>
    %393 = arith.subf %392, %390 : vector<4x128xf32>
    %394 = arith.mulf %393, %372 : vector<4x128xf32>
    %395 = arith.addf %391, %394 : vector<4x128xf32>
    %c0_335 = arith.constant 0 : index
    %c0_336 = arith.constant 0 : index
    %396 = vector.load %arg8[%c0_335, %c0_336] : memref<4x128xf32, #tpu.memory_space<vmem>>, vector<4x128xf32>
    tpu.vector_store %arg8[%c0_335, %c0_336], %395 {strides = array<i32>} : memref<4x128xf32, #tpu.memory_space<vmem>>, vector<4x128xf32>,
    return
  }
  func.func @transform_0(%arg0: i32) -> (i32, i32, i32, i32) {
    %c0_i32 = arith.constant 0 : i32
    %c0_i32_0 = arith.constant 0 : i32
    %c0_i32_1 = arith.constant 0 : i32
    %c0_i32_2 = arith.constant 0 : i32
    return %arg0, %c0_i32, %c0_i32_0, %c0_i32_1 : i32, i32, i32, i32
  }
  func.func @transform_1(%arg0: i32) -> (i32, i32, i32) {
    %c0_i32 = arith.constant 0 : i32
    %c0_i32_0 = arith.constant 0 : i32
    %c0_i32_1 = arith.constant 0 : i32
    return %c0_i32, %arg0, %c0_i32_0 : i32, i32, i32
  }
  func.func @transform_2(%arg0: i32) -> (i32, i32, i32, i32) {
    %c0_i32 = arith.constant 0 : i32
    %c0_i32_0 = arith.constant 0 : i32
    %c0_i32_1 = arith.constant 0 : i32
    %c0_i32_2 = arith.constant 0 : i32
    return %arg0, %c0_i32, %c0_i32_0, %c0_i32_1 : i32, i32, i32, i32
  }
  func.func @transform_3(%arg0: i32) -> (i32, i32) {
    %c0_i32 = arith.constant 0 : i32
    %c0_i32_0 = arith.constant 0 : i32
    %c0_i32_1 = arith.constant 0 : i32
    return %c0_i32, %c0_i32_0 : i32, i32
  }
  func.func @transform_4(%arg0: i32) -> (i32, i32) {
    %c0_i32 = arith.constant 0 : i32
    %c0_i32_0 = arith.constant 0 : i32
    %c0_i32_1 = arith.constant 0 : i32
    return %c0_i32, %c0_i32_0 : i32, i32
  }
  func.func @transform_5(%arg0: i32) -> (i32, i32) {
    %c0_i32 = arith.constant 0 : i32
    %c0_i32_0 = arith.constant 0 : i32
    %c0_i32_1 = arith.constant 0 : i32
    return %c0_i32, %c0_i32_0 : i32, i32
  }
  func.func @transform_6(%arg0: i32) -> (i32, i32) {
    %c0_i32 = arith.constant 0 : i32
    %c0_i32_0 = arith.constant 0 : i32
    return %arg0, %c0_i32 : i32, i32
  }
  func.func @transform_7(%arg0: i32) -> (i32, i32) {
    %c0_i32 = arith.constant 0 : i32
    %c0_i32_0 = arith.constant 0 : i32
    return %arg0, %c0_i32 : i32, i32
  }
}

</mosaic_0001>

<bundles_post_ra>
// kernel: tpu_custom_call.1
= control target key start
LH: loop header
LB: loop body
LE: loop exit
PB: predicated region body
PF: predicated region fallthrough
CT: control target
= control target key end

     0   :  { %12 = vsyncpa [#allocation5], 0  ;;  %s4303_s0 = inlined_call_operand.vmem [shape: f32[4,4,8,1], index: 0, kind: input, shape index: {}]   ;;  %s4304_s1 = inlined_call_operand.vmem [shape: f32[4,4,1], index: 1, kind: input, shape index: {}]   ;;  %s4305_s2 = inlined_call_operand.vmem [shape: bf16[4,4,8,128], index: 2, kind: input, shape index: {}]   ;;  %s4306_s3 = inlined_call_operand.vmem [shape: bf16[128,128], index: 3, kind: input, shape index: {}]   ;;  %s4307_s4 = inlined_call_operand.hbm [shape: bf16[128,128], index: 4, kind: input, shape index: {}]   ;;  %s4308_s5 = inlined_call_operand.vmem [shape: f32[1,128], index: 5, kind: input, shape index: {}]   ;;  %s4309_s6 = inlined_call_operand.vmem [shape: f32[4,128], index: 6, kind: input, shape index: {}]   ;;  %s4310_s7 = inlined_call_operand.hbm [shape: f32[4,128], index: 7, kind: output, shape index: {}]  }
   0x1   :  { %13 = vsyncpa [#allocation6], 0  ;;  %s2852_s24 = smov [#allocation4]  }
   0x2   :  { %s27_s25 = sshll.u32 %s2852_s24, 4  ;;  %s28_s25 = int_to_ptr.vmem [resolvable:$true] %s27_s25 }
   0x3   :  { %s2816_s26 = scalar_lea.vmem %s28_s25, 1024  ;;  %p2821_p1 = scmp.lt.s32.totalorder %s28_s25, %s28_s25 }
   0x4   :  { %p2817_p0 = scmp.ne.s32.totalorder %s28_s25, %s2816_s26  ;;  %p2822_p2 = scmp.lt.s32.totalorder %s2816_s26, %s2816_s26 }
   0x6   :  { %p2823_p3 = por %p2822_p2, %p2821_p1 }
   0x8   :  { %p2824_p4 = pnand %p2823_p3, %p2817_p0 }
   0xa   :  { %2827 = shalt.err (!%p2824_p4)
}
   0xb   :  { %s2853_s27 = smov 64   ;;  %s2854_s28 = smov 4  }
   0xc   :  { %33 = dma.hbm_to_vmem [thread:$0]  %s4307_s4, 1024, %s28_s25, [#allocation5], %s2853_s27, %s2853_s27, %s2854_s28  }
   0xd   :  { %2848 = dma.done.wait [#allocation5], 1024  }
   0xe   :  { %2849 = vsyncadd [#allocation5], 4294966272  ;;  %v2855_v0 = vmov 0   ;;  %v96_v1 = vld [vmem:[%s4303_s0 + $0x21] sm:$0x1]  ;;  %v2974_v25 = vld [vmem:[#allocation4 + $0x38] sm:$0xff]  }
   0xf   :  { %2764 = vset.pattern.permute.xlu1 %v2855_v0  ;;  %2763 = vset.pattern.permute.xlu0 %v2855_v0  ;;  %v95_v2 = vld [vmem:[%s4303_s0 + $0x1] sm:$0x1]  ;;  %v152_v5 = vld [vmem:[%s4303_s0 + $0x22] sm:$0x1]  ;;  %v68_v8 = vld [vmem:[%s4303_s0 + $0x20] sm:$0x1] }
  0x10   :  { %105 = vperm.xlu0 %2763, %v96_v1   ;;  %101 = vperm.xlu1 %2764, %v95_v2   ;;  %v97_v3 = vld [vmem:[%s4303_s0 + $0x41] sm:$0x1]  ;;  %v153_v6 = vld [vmem:[%s4303_s0 + $0x42] sm:$0x1]  ;;  %v200_v9 = vld [vmem:[%s4303_s0 + $0x23] sm:$0x1] }
  0x11   :  { %v98_v4 = vld [vmem:[%s4303_s0 + $0x61] sm:$0x1]  ;;  %v151_v7 = vld [vmem:[%s4303_s0 + $0x2] sm:$0x1]  ;;  %v201_v11 = vld [vmem:[%s4303_s0 + $0x43] sm:$0x1] }
  0x12   :  { %v154_v10 = vld [vmem:[%s4303_s0 + $0x62] sm:$0x1]  ;;  %v69_v12 = vld [vmem:[%s4303_s0 + $0x40] sm:$0x1]  ;;  %v202_v15 = vld [vmem:[%s4303_s0 + $0x63] sm:$0x1] }
  0x13   :  { %v70_v13 = vld [vmem:[%s4303_s0 + $0x60] sm:$0x1]  ;;  %v199_v16 = vld [vmem:[%s4303_s0 + $0x3] sm:$0x1]  ;;  %v257_v17 = vld [vmem:[%s4303_s0 + $0x44] sm:$0x1] }
  0x14   :  { %109 = vperm.xlu0 %2763, %v97_v3   ;;  %113 = vperm.xlu1 %2764, %v98_v4   ;;  %v67_v14 = vld [vmem:[%s4303_s0] sm:$0x1]  ;;  %v256_v18 = vld [vmem:[%s4303_s0 + $0x24] sm:$0x1]  ;;  %v305_v21 = vld [vmem:[%s4303_s0 + $0x45] sm:$0x1] }
  0x15   :  { %v258_v19 = vld [vmem:[%s4303_s0 + $0x64] sm:$0x1]  ;;  %v304_v22 = vld [vmem:[%s4303_s0 + $0x25] sm:$0x1]  ;;  %v2856_v26 = vmov 0.0   ;;  %v2982_v27 = vld [vmem:[#allocation4 + $0x30] sm:$0xff]  }
  0x16   :  { %v255_v20 = vld [vmem:[%s4303_s0 + $0x4] sm:$0x1]  ;;  %v306_v23 = vld [vmem:[%s4303_s0 + $0x65] sm:$0x1]  ;;  %2596 = vmatprep.subr.bf16.mxu0 %v2856_v26  ;;  %2616 = vmatprep.subr.bf16.mxu1 %v2856_v26  ;;  %v361_v28 = vld [vmem:[%s4303_s0 + $0x46] sm:$0x1] }
  0x17   :  { %v303_v24 = vld [vmem:[%s4303_s0 + $0x5] sm:$0x1]  ;;  %2597 = vmatpush3.bf16.msra.mxu0 %v2974_v25  ;;  %2617 = vmatpush3.bf16.msra.mxu1 %v2974_v25  ;;  %v360_v29 = vld [vmem:[%s4303_s0 + $0x26] sm:$0x1]  ;;  %v2994_v30 = vld [vmem:[#allocation4 + $0x28] sm:$0xff]   ;;  %vm2857_vm0 = vmmov 0  }
  0x18   :  { %161 = vperm.xlu0 %2763, %v152_v5   ;;  %165 = vperm.xlu1 %2764, %v153_v6   ;;  %v362_v31 = vld [vmem:[%s4303_s0 + $0x66] sm:$0x1]  ;;  %v409_v34 = vld [vmem:[%s4303_s0 + $0x47] sm:$0x1]  ;;  %v3024_v38 = vld [vmem:[#allocation4 + $0x18] sm:$0xff]   ;;  %vm460_vm1 = vcmask 1041409  }
  0x19   :  { %2598 = vmatprep.subr.bf16.mxu0 %v2856_v26  ;;  %2618 = vmatprep.subr.bf16.mxu1 %v2856_v26  ;;  %v359_v32 = vld [vmem:[%s4303_s0 + $0x6] sm:$0x1]  ;;  %v408_v35 = vld [vmem:[%s4303_s0 + $0x27] sm:$0x1]  ;;  %v2423_v39 = vld [vmem:[%s4303_s0 + $0x51] sm:$0x1] }
  0x1a   :  { %v3006_v33 = vld [vmem:[#allocation4 + $0x20] sm:$0xff]   ;;  %v2422_v40 = vld [vmem:[%s4303_s0 + $0x31] sm:$0x1]  ;;  %v3047_v44 = vld [vmem:[#allocation4 + $0x8] sm:$0xff]   ;;  %2612 = vmatprep.mubr.msk.bf16.mxu0 %vm2857_vm0, %v2856_v26  ;;  %2632 = vmatprep.mubr.msk.bf16.mxu1 %vm2857_vm0, %v2856_v26  ;;  %vm463_vm2 = vcmask 1042434   ;;  %vm466_vm3 = vcmask 1043459  }
  0x1b   :  { %2599 = vmatpush3.bf16.msra.mxu0 %v2982_v27  ;;  %2619 = vmatpush3.bf16.msra.mxu1 %v2982_v27  ;;  %v410_v36 = vld [vmem:[%s4303_s0 + $0x67] sm:$0x1]  ;;  %v3035_v41 = vld [vmem:[#allocation4 + $0x10] sm:$0xff]  }
  0x1c   :  { %157 = vperm.xlu1 %2764, %v151_v7   ;;  %78 = vperm.xlu0 %2763, %v68_v8   ;;  %v407_v37 = vld [vmem:[%s4303_s0 + $0x7] sm:$0x1]  ;;  %v2424_v42 = vld [vmem:[%s4303_s0 + $0x71] sm:$0x1]  ;;  %v2431_v45 = vld [vmem:[%s4303_s0 + $0x52] sm:$0x1] }
  0x1d   :  { %2600 = vmatprep.subr.bf16.mxu0 %v2856_v26  ;;  %2620 = vmatprep.subr.bf16.mxu1 %v2856_v26  ;;  %v2421_v43 = vld [vmem:[%s4303_s0 + $0x11] sm:$0x1]  ;;  %v2430_v46 = vld [vmem:[%s4303_s0 + $0x32] sm:$0x1]  ;;  %v3059_v47 = vld [vmem:[#allocation4] sm:$0xff]  }
  0x1e   :  { %v2429_v48 = vld [vmem:[%s4303_s0 + $0x12] sm:$0x1]  ;;  %v2418_v49 = vld [vmem:[%s4303_s0 + $0x30] sm:$0x1]  ;;  %v2434_v50 = vld [vmem:[%s4303_s0 + $0x33] sm:$0x1] }
  0x1f   :  { %2601 = vmatpush3.bf16.msra.mxu0 %v2994_v30  ;;  %2621 = vmatpush3.bf16.msra.mxu1 %v2994_v30  ;;  %v2432_v51 = vld [vmem:[%s4303_s0 + $0x72] sm:$0x1]  ;;  %v2435_v52 = vld [vmem:[%s4303_s0 + $0x53] sm:$0x1]  ;;  %v2419_v53 = vld [vmem:[%s4303_s0 + $0x50] sm:$0x1] }
  0x20   :  { %209 = vperm.xlu1 %2764, %v200_v9   ;;  %169 = vperm.xlu0 %2763, %v154_v10   ;;  %v2420_v54 = vld [vmem:[%s4303_s0 + $0x70] sm:$0x1]  ;;  %v2436_v56 = vld [vmem:[%s4303_s0 + $0x73] sm:$0x1]  ;;  %v2443_v58 = vld [vmem:[%s4303_s0 + $0x54] sm:$0x1] }
  0x21   :  { %2602 = vmatprep.subr.bf16.mxu0 %v2856_v26  ;;  %2622 = vmatprep.subr.bf16.mxu1 %v2856_v26  ;;  %v2417_v55 = vld [vmem:[%s4303_s0 + $0x10] sm:$0x1]  ;;  %v2433_v57 = vld [vmem:[%s4303_s0 + $0x13] sm:$0x1]  ;;  %v2442_v59 = vld [vmem:[%s4303_s0 + $0x34] sm:$0x1] }
  0x22   :  { %v2444_v60 = vld [vmem:[%s4303_s0 + $0x74] sm:$0x1]  ;;  %v2447_v62 = vld [vmem:[%s4303_s0 + $0x55] sm:$0x1]  ;;  %v2455_v2 = vld [vmem:[%s4303_s0 + $0x56] sm:$0x1] }
  0x23   :  { %2603 = vmatpush3.bf16.msra.mxu0 %v3006_v33  ;;  %2623 = vmatpush3.bf16.msra.mxu1 %v3006_v33  ;;  %v2441_v61 = vld [vmem:[%s4303_s0 + $0x14] sm:$0x1]  ;;  %v2446_v63 = vld [vmem:[%s4303_s0 + $0x35] sm:$0x1]  ;;  %v2454_v3 = vld [vmem:[%s4303_s0 + $0x36] sm:$0x1] }
  0x24   :  { %213 = vperm.xlu1 %2764, %v201_v11   ;;  %83 = vperm.xlu0 %2763, %v69_v12   ;;  %v2448_v0 = vld [vmem:[%s4303_s0 + $0x75] sm:$0x1]  ;;  %v2456_v4 = vld [vmem:[%s4303_s0 + $0x76] sm:$0x1]  ;;  %v2459_v6 = vld [vmem:[%s4303_s0 + $0x57] sm:$0x1] }
  0x25   :  { %2604 = vmatprep.subr.bf16.mxu0 %v2856_v26  ;;  %2624 = vmatprep.subr.bf16.mxu1 %v2856_v26  ;;  %v2445_v1 = vld [vmem:[%s4303_s0 + $0x15] sm:$0x1]  ;;  %v2453_v5 = vld [vmem:[%s4303_s0 + $0x16] sm:$0x1]  ;;  %v2458_v7 = vld [vmem:[%s4303_s0 + $0x37] sm:$0x1] }
  0x26   :  { %v2460_v8 = vld [vmem:[%s4303_s0 + $0x77] sm:$0x1]  ;;  %v2375_v12 = vld [vmem:[%s4303_s0 + $0x49] sm:$0x1] }
  0x27   :  { %2605 = vmatpush3.bf16.msra.mxu0 %v3024_v38  ;;  %2625 = vmatpush3.bf16.msra.mxu1 %v3024_v38  ;;  %v2457_v9 = vld [vmem:[%s4303_s0 + $0x17] sm:$0x1] }
  0x28   :  { %88 = vperm.xlu1 %2764, %v70_v13   ;;  %73 = vperm.xlu0 %2763, %v67_v14   ;;  %v2374_v13 = vld [vmem:[%s4303_s0 + $0x29] sm:$0x1] }
  0x29   :  { %2606 = vmatprep.subr.bf16.mxu0 %v2856_v26  ;;  %2626 = vmatprep.subr.bf16.mxu1 %v2856_v26 }
  0x2b   :  { %2607 = vmatpush3.bf16.msra.mxu0 %v3035_v41  ;;  %2627 = vmatpush3.bf16.msra.mxu1 %v3035_v41 }
  0x2c   :  { %217 = vperm.xlu1 %2764, %v202_v15   ;;  %205 = vperm.xlu0 %2763, %v199_v16   ;;  %v2376_v16 = vld [vmem:[%s4303_s0 + $0x69] sm:$0x1] }
  0x2d   :  { %2608 = vmatprep.subr.bf16.mxu0 %v2856_v26  ;;  %2628 = vmatprep.subr.bf16.mxu1 %v2856_v26 }
  0x2f   :  { %2609 = vmatpush3.bf16.msra.mxu0 %v3047_v44  ;;  %2629 = vmatpush3.bf16.msra.mxu1 %v3047_v44 }
  0x30   :  { %269 = vperm.xlu1 %2764, %v257_v17   ;;  %265 = vperm.xlu0 %2763, %v256_v18   ;;  %v2373_v17 = vld [vmem:[%s4303_s0 + $0x9] sm:$0x1] }
  0x31   :  { %2610 = vmatprep.subr.bf16.mxu0 %v2856_v26  ;;  %2630 = vmatprep.subr.bf16.mxu1 %v2856_v26 }
  0x33   :  { %2611 = vmatpush3.bf16.msra.mxu0 %v3059_v47  ;;  %2631 = vmatpush3.bf16.msra.mxu1 %v3059_v47 }
  0x34   :  { %273 = vperm.xlu1 %2764, %v258_v19   ;;  %261 = vperm.xlu0 %2763, %v255_v20   ;;  %v2383_v20 = vld [vmem:[%s4303_s0 + $0x4a] sm:$0x1] }
  0x35   :  { %2636 = vmatprep.subr.bf16.mxu0 %v2856_v26  ;;  %2656 = vmatprep.subr.bf16.mxu1 %v2856_v26 }
  0x38   :  { %317 = vperm.xlu1 %2764, %v305_v21   ;;  %313 = vperm.xlu0 %2763, %v304_v22   ;;  %v2382_v21 = vld [vmem:[%s4303_s0 + $0x2a] sm:$0x1] }
  0x3c   :  { %321 = vperm.xlu1 %2764, %v306_v23   ;;  %309 = vperm.xlu0 %2763, %v303_v24   ;;  %v2381_v24 = vld [vmem:[%s4303_s0 + $0xa] sm:$0x1] }
  0x40   :  { %373 = vperm.xlu1 %2764, %v361_v28   ;;  %369 = vperm.xlu0 %2763, %v360_v29   ;;  %v2370_v28 = vld [vmem:[%s4303_s0 + $0x28] sm:$0x1] }
  0x44   :  { %377 = vperm.xlu1 %2764, %v362_v31   ;;  %365 = vperm.xlu0 %2763, %v359_v32   ;;  %v2386_v32 = vld [vmem:[%s4303_s0 + $0x2b] sm:$0x1] }
  0x48   :  { %421 = vperm.xlu1 %2764, %v409_v34   ;;  %417 = vperm.xlu0 %2763, %v408_v35   ;;  %v2384_v34 = vld [vmem:[%s4303_s0 + $0x6a] sm:$0x1] }
  0x4c   :  { %425 = vperm.xlu1 %2764, %v410_v36   ;;  %413 = vperm.xlu0 %2763, %v407_v37   ;;  %v2387_v37 = vld [vmem:[%s4303_s0 + $0x4b] sm:$0x1] }
  0x50   :  { %1110 = vperm.xlu1 %2764, %v2423_v39   ;;  %1106 = vperm.xlu0 %2763, %v2422_v40   ;;  %v2371_v39 = vld [vmem:[%s4303_s0 + $0x48] sm:$0x1] }
  0x54   :  { %1114 = vperm.xlu1 %2764, %v2424_v42   ;;  %1102 = vperm.xlu0 %2763, %v2421_v43   ;;  %v2372_v43 = vld [vmem:[%s4303_s0 + $0x68] sm:$0x1] }
  0x58   :  { %1166 = vperm.xlu1 %2764, %v2431_v45   ;;  %1162 = vperm.xlu0 %2763, %v2430_v46   ;;  %v2369_v45 = vld [vmem:[%s4303_s0 + $0x8] sm:$0x1]  ;;  %v60_v46 = vld [vmem:[%s4305_s2 + $0x10] sm:$0x1] }
  0x5c   :  { %1158 = vperm.xlu1 %2764, %v2429_v48   ;;  %1079 = vperm.xlu0 %2763, %v2418_v49  }
  0x60   :  { %1210 = vperm.xlu1 %2764, %v2434_v50   ;;  %1170 = vperm.xlu0 %2763, %v2432_v51   ;;  %v61_v50 = vld [vmem:[%s4305_s2 + $0x20] sm:$0x1] }
  0x61   :  { %v3229_v51 = vld [vmem:[%s4305_s2] sm:$0x1] }
  0x64   :  { %1214 = vperm.xlu1 %2764, %v2435_v52   ;;  %1084 = vperm.xlu0 %2763, %v2419_v53   ;;  %v2388_v52 = vld [vmem:[%s4303_s0 + $0x6b] sm:$0x1] }
  0x65   :  { %v2385_v53 = vld [vmem:[%s4303_s0 + $0xb] sm:$0x1] }
  0x68   :  { %1089 = vperm.xlu1 %2764, %v2420_v54   ;;  %1074 = vperm.xlu0 %2763, %v2417_v55   ;;  %v64_v54 = vunpack.c.l.bf16 %v60_v46 }
  0x6c   :  { %1218 = vperm.xlu1 %2764, %v2436_v56   ;;  %1206 = vperm.xlu0 %2763, %v2433_v57   ;;  %v3241_v56 = vld [vmem:[%s4305_s2 + $0x30] sm:$0x1]  ;;  %v144_v57 = vld [vmem:[%s4305_s2 + $0x10] sm:$0x2] }
  0x70   :  { %1270 = vperm.xlu1 %2764, %v2443_v58   ;;  %1266 = vperm.xlu0 %2763, %v2442_v59   ;;  %v65_v58 = vunpack.c.l.bf16 %v61_v50 }
  0x74   :  { %1274 = vperm.xlu1 %2764, %v2444_v60   ;;  %1262 = vperm.xlu0 %2763, %v2441_v61   ;;  %v145_v60 = vld [vmem:[%s4305_s2 + $0x20] sm:$0x2] }
  0x78   :  { %1318 = vperm.xlu1 %2764, %v2447_v62   ;;  %1314 = vperm.xlu0 %2763, %v2446_v63   ;;  %v3257_v63 = vld [vmem:[%s4305_s2] sm:$0x2] }
  0x7c   :  { %1322 = vperm.xlu1 %2764, %v2448_v0   ;;  %1310 = vperm.xlu0 %2763, %v2445_v1   ;;  %v3262_v0 = vld [vmem:[%s4305_s2 + $0x30] sm:$0x2]  ;;  %v3267_v1 = vld [vmem:[%s4305_s2 + $0x20] sm:$0x4] }
  0x80   :  { %1374 = vperm.xlu1 %2764, %v2455_v2   ;;  %1370 = vperm.xlu0 %2763, %v2454_v3   ;;  %v63_v2 = vunpack.c.l.bf16 %v3229_v51  ;;  %v66_v3 = vunpack.c.l.bf16 %v3241_v56  ;;  %v2400_v51 = vld [vmem:[%s4303_s0 + $0x6d] sm:$0x1] }
  0x84   :  { %1378 = vperm.xlu1 %2764, %v2456_v4   ;;  %1366 = vperm.xlu0 %2763, %v2453_v5   ;;  %v148_v5 = vunpack.c.l.bf16 %v144_v57 }
  0x88   :  { %1422 = vperm.xlu1 %2764, %v2459_v6   ;;  %1418 = vperm.xlu0 %2763, %v2458_v7   ;;  %v2395_v6 = vld [vmem:[%s4303_s0 + $0x4c] sm:$0x1] }
  0x89   :  { %v2394_v7 = vld [vmem:[%s4303_s0 + $0x2c] sm:$0x1] }
  0x8b   :  { %v3148_v10 = vpop.permute.xlu0 %105  ;;  %v3150_v11 = vpop.permute.xlu1 %101 }
  0x8c   :  { %1426 = vperm.xlu1 %2764, %v2460_v8   ;;  %1414 = vperm.xlu0 %2763, %v2457_v9   ;;  %v116_v55 = vrot.slane %v3148_v10, 7  ;;  %v149_v10 = vunpack.c.l.bf16 %v145_v60 }
  0x8e   :  { %v124_v8 = vmul.f32 %v116_v55, %v64_v54 }
  0x8f   :  { %v3158_v14 = vpop.permute.xlu0 %109  ;;  %v3160_v15 = vpop.permute.xlu1 %113 }
  0x90   :  { %637 = vperm.xlu1 %2764, %v2375_v12   ;;  %633 = vperm.xlu0 %2763, %v2374_v13   ;;  %v117_v59 = vrot.slane %v3158_v14, 7  ;;  %v118_v4 = vrot.slane %v3160_v15, 7  ;;  %v3283_v13 = vld [vmem:[%s4305_s2 + $0x10] sm:$0x4] }
  0x91   :  { %v3288_v14 = vld [vmem:[%s4305_s2 + $0x30] sm:$0x4] }
  0x92   :  { %v125_v15 = vmul.f32 %v117_v59, %v65_v58 }
  0x93   :  { %v3168_v18 = vpop.permute.xlu0 %161  ;;  %v3170_v19 = vpop.permute.xlu1 %165 }
  0x94   :  { %641 = vperm.xlu1 %2764, %v2376_v16   ;;  %629 = vperm.xlu0 %2763, %v2373_v17   ;;  %v172_v9 = vrot.slane %v3168_v18, 6  ;;  %v173_v12 = vrot.slane %v3170_v19, 6  ;;  %v147_v16 = vunpack.c.l.bf16 %v3257_v63  ;;  %v150_v18 = vunpack.c.l.bf16 %v3262_v0  ;;  %v3298_v19 = vld [vmem:[%s4305_s2] sm:$0x4] }
  0x95   :  { %v251_v50 = vunpack.c.l.bf16 %v3298_v19  ;;  %v2411_v19 = vld [vmem:[%s4303_s0 + $0x4f] sm:$0x1] }
  0x96   :  { %v180_v46 = vmul.f32 %v172_v9, %v148_v5 }
  0x97   :  { %v3178_v22 = vpop.permute.xlu1 %157  ;;  %v3180_v23 = vpop.permute.xlu0 %78 }
  0x98   :  { %693 = vperm.xlu1 %2764, %v2383_v20   ;;  %689 = vperm.xlu0 %2763, %v2382_v21  }
  0x9b   :  { %v3188_v29 = vpop.permute.xlu1 %209  ;;  %v3190_v31 = vpop.permute.xlu0 %169 }
  0x9c   :  { %685 = vperm.xlu1 %2764, %v2381_v24   ;;  %606 = vperm.xlu0 %2763, %v2370_v28   ;;  %v220_v17 = vrot.slane %v3188_v29, 5  ;;  %v115_v24 = vrot.slane %v3150_v11, 7  ;;  %v92_v28 = vmul.f32 %v3180_v23, %v64_v54  ;;  %v126_v29 = vmul.f32 %v118_v4, %v66_v3  ;;  %v2393_v11 = vld [vmem:[%s4303_s0 + $0xc] sm:$0x1]  ;;  %v3317_v23 = vld [vmem:[%s4305_s2 + $0x20] sm:$0x8] }
  0x9d   :  { %v171_v54 = vrot.slane %v3178_v22, 6  ;;  %v174_v56 = vrot.slane %v3190_v31, 6  ;;  %v2398_v31 = vld [vmem:[%s4303_s0 + $0x2d] sm:$0x1] }
  0x9e   :  { %v228_v55 = vmul.f32 %v220_v17, %v148_v5  ;;  %v123_v59 = vmul.f32 %v115_v24, %v63_v2 }
  0x9f   :  { %v3198_v35 = vpop.permute.xlu1 %213  ;;  %v84_v36 = vpop.permute.xlu0 %83 }
  0xa0   :  { %737 = vperm.xlu1 %2764, %v2386_v32   ;;  %697 = vperm.xlu0 %2763, %v2384_v34   ;;  %v221_v32 = vrot.slane %v3198_v35, 5  ;;  %v253_v34 = vunpack.c.l.bf16 %v3267_v1  ;;  %v132_v35 = vrot.slane %v124_v8, 1  ;;  %v134_v8 = vrot.slane %v126_v29, 1 }
  0xa2   :  { %v140_v60 = vadd.f32 %v132_v35, %v92_v28  ;;  %v229_v4 = vmul.f32 %v221_v32, %v149_v10  ;;  %v182_v28 = vmul.f32 %v174_v56, %v150_v18 }
  0xa3   :  { %v3206_v40 = vpop.permute.xlu1 %88  ;;  %v3208_v42 = vpop.permute.xlu0 %73 }
  0xa4   :  { %741 = vperm.xlu1 %2764, %v2387_v37   ;;  %611 = vperm.xlu0 %2763, %v2371_v39   ;;  %v93_v37 = vmul.f32 %v84_v36, %v65_v58  ;;  %v252_v39 = vunpack.c.l.bf16 %v3283_v13  ;;  %v181_v36 = vmul.f32 %v173_v12, %v149_v10  ;;  %v94_v5 = vmul.f32 %v3206_v40, %v66_v3  ;;  %v3341_v10 = vld [vmem:[%s4305_s2 + $0x30] sm:$0x8] }
  0xa5   :  { %v188_v12 = vrot.slane %v180_v46, 2  ;;  %v179_v40 = vmul.f32 %v171_v54, %v147_v16  ;;  %v236_v3 = vrot.slane %v228_v55, 3  ;;  %v91_v32 = vmul.f32 %v3208_v42, %v63_v2  ;;  %v2397_v42 = vld [vmem:[%s4303_s0 + $0xd] sm:$0x1] }
  0xa6   :  { %v142_v46 = vadd.f32 %v134_v8, %v94_v5 }
  0xa7   :  { %v3219_v48 = vpop.permute.xlu1 %217  ;;  %v3221_v49 = vpop.permute.xlu0 %205 }
  0xa8   :  { %616 = vperm.xlu1 %2764, %v2372_v43   ;;  %601 = vperm.xlu0 %2763, %v2369_v45   ;;  %v254_v43 = vunpack.c.l.bf16 %v3288_v14  ;;  %v2396_v45 = vld [vmem:[%s4303_s0 + $0x6c] sm:$0x1]  ;;  %v222_v2 = vrot.slane %v3219_v48, 5  ;;  %v219_v54 = vrot.slane %v3221_v49, 5 }
  0xaa   :  { %v230_v1 = vmul.f32 %v222_v2, %v150_v18  ;;  %v227_v13 = vmul.f32 %v219_v54, %v147_v16  ;;  %v2408_v18 = vld [vmem:[%s4303_s0 + $0x6e] sm:$0x1] }
  0xab   :  { %v3250_v61 = vpop.permute.xlu1 %269  ;;  %v3252_v62 = vpop.permute.xlu0 %265 }
  0xac   :  { %745 = vperm.xlu1 %2764, %v2388_v52   ;;  %733 = vperm.xlu0 %2763, %v2385_v53   ;;  %v3323_v52 = vld [vmem:[%s4305_s2 + $0x10] sm:$0x8]  ;;  %v133_v53 = vrot.slane %v125_v15, 1  ;;  %v189_v15 = vrot.slane %v181_v36, 2  ;;  %v277_v17 = vrot.slane %v3250_v61, 4  ;;  %v276_v24 = vrot.slane %v3252_v62, 4 }
  0xad   :  { %v356_v9 = vunpack.c.l.bf16 %v3323_v52  ;;  %v237_v61 = vrot.slane %v229_v4, 3  ;;  %v358_v62 = vunpack.c.l.bf16 %v3341_v10  ;;  %v2412_v52 = vld [vmem:[%s4303_s0 + $0x6f] sm:$0x1]  ;;  %v2471_v10 = vld [vmem:[%s4303_s0 + $0x59] sm:$0x1] }
  0xae   :  { %v141_v22 = vadd.f32 %v133_v53, %v93_v37  ;;  %v285_v55 = vmul.f32 %v277_v17, %v253_v34  ;;  %v284_v56 = vmul.f32 %v276_v24, %v252_v39  ;;  %v3378_v17 = vld [vmem:[%s4305_s2] sm:$0x8] }
  0xaf   :  { %v3293_v20 = vpop.permute.xlu1 %273  ;;  %v3300_v21 = vpop.permute.xlu0 %261  ;;  %v355_v16 = vunpack.c.l.bf16 %v3378_v17 }
  0xb0   :  { %797 = vperm.xlu1 %2764, %v2395_v6   ;;  %793 = vperm.xlu0 %2763, %v2394_v7   ;;  %v2399_v6 = vld [vmem:[%s4303_s0 + $0x4d] sm:$0x1]  ;;  %v357_v7 = vunpack.c.l.bf16 %v3317_v23  ;;  %v197_v35 = vadd.f32 %v189_v15, %v141_v22  ;;  %v278_v8 = vrot.slane %v3293_v20, 4  ;;  %v275_v22 = vrot.slane %v3300_v21, 4  ;;  %v2407_v20 = vld [vmem:[%s4303_s0 + $0x4e] sm:$0x1] }
  0xb1   :  { %v2406_v21 = vld [vmem:[%s4303_s0 + $0x2e] sm:$0x1] }
  0xb2   :  { %v245_v49 = vadd.f32 %v237_v61, %v197_v35  ;;  %v286_v0 = vmul.f32 %v278_v8, %v254_v43  ;;  %v283_v63 = vmul.f32 %v275_v22, %v251_v50 }
  0xb3   :  { %v318_v57 = vpop.permute.xlu1 %317  ;;  %v314_v58 = vpop.permute.xlu0 %313 }
  0xb4   :  { %801 = vperm.xlu1 %2764, %v2396_v45   ;;  %789 = vperm.xlu0 %2763, %v2393_v11   ;;  %v131_v45 = vrot.slane %v123_v59, 1  ;;  %v196_v11 = vadd.f32 %v188_v12, %v140_v60  ;;  %v325_v36 = vrot.slane %v318_v57, 3  ;;  %v324_v53 = vrot.slane %v314_v58, 3 }
  0xb5   :  { %v187_v57 = vrot.slane %v179_v40, 2  ;;  %v190_v59 = vrot.slane %v182_v28, 2 }
  0xb6   :  { %v244_v58 = vadd.f32 %v236_v3, %v196_v11  ;;  %v139_v60 = vadd.f32 %v131_v45, %v91_v32  ;;  %v333_v12 = vmul.f32 %v325_v36, %v253_v34  ;;  %v332_v15 = vmul.f32 %v324_v53, %v252_v39 }
  0xb7   :  { %v3352_v29 = vpop.permute.xlu1 %321  ;;  %v3354_v37 = vpop.permute.xlu0 %309  ;;  %v293_v34 = vrot.slane %v285_v55, 4  ;;  %v292_v39 = vrot.slane %v284_v56, 4  ;;  %v238_v36 = vrot.slane %v230_v1, 3  ;;  %v235_v53 = vrot.slane %v227_v13, 3 }
  0xb8   :  { %845 = vperm.xlu1 %2764, %v2399_v6   ;;  %841 = vperm.xlu0 %2763, %v2398_v31   ;;  %v198_v31 = vadd.f32 %v190_v59, %v142_v46  ;;  %v326_v24 = vrot.slane %v3352_v29, 3  ;;  %v323_v40 = vrot.slane %v3354_v37, 3  ;;  %v195_v11 = vadd.f32 %v187_v57, %v139_v60  ;;  %v2405_v46 = vld [vmem:[%s4303_s0 + $0xe] sm:$0x1] }
  0xb9   :  { %v341_v29 = vrot.slane %v333_v12, 5  ;;  %v340_v37 = vrot.slane %v332_v15, 5  ;;  %v294_v60 = vrot.slane %v286_v0, 4 }
  0xba   :  { %v334_v2 = vmul.f32 %v326_v24, %v254_v43  ;;  %v331_v54 = vmul.f32 %v323_v40, %v251_v50  ;;  %v2410_v43 = vld [vmem:[%s4303_s0 + $0x2f] sm:$0x1]  ;;  %v246_v50 = vadd.f32 %v238_v36, %v198_v31 }
  0xbb   :  { %v374_v4 = vpop.permute.xlu1 %373  ;;  %v370_v6 = vpop.permute.xlu0 %369 }
  0xbc   :  { %v381_v5 = vrot.slane %v374_v4, 2  ;;  %v380_v48 = vrot.slane %v370_v6, 2  ;;  %849 = vperm.xlu1 %2764, %v2400_v51   ;;  %837 = vperm.xlu0 %2763, %v2397_v42   ;;  %v301_v51 = vadd.f32 %v293_v34, %v245_v49  ;;  %v300_v42 = vadd.f32 %v292_v39, %v244_v58 }
  0xbd   :  { %v291_v4 = vrot.slane %v283_v63, 4  ;;  %v342_v15 = vrot.slane %v334_v2, 5  ;;  %v339_v17 = vrot.slane %v331_v54, 5  ;;  %v302_v31 = vadd.f32 %v294_v60, %v246_v50 }
  0xbe   :  { %v389_v3 = vmul.f32 %v381_v5, %v357_v7  ;;  %v388_v28 = vmul.f32 %v380_v48, %v356_v9  ;;  %v349_v22 = vadd.f32 %v341_v29, %v301_v51  ;;  %v348_v5 = vadd.f32 %v340_v37, %v300_v42 }
  0xbf   :  { %v378_v32 = vpop.permute.xlu1 %377  ;;  %v366_v45 = vpop.permute.xlu0 %365  ;;  %v243_v48 = vadd.f32 %v235_v53, %v195_v11  ;;  %v350_v0 = vadd.f32 %v342_v15, %v302_v31  ;;  %v2478_v15 = vld [vmem:[%s4303_s0 + $0x3a] sm:$0x1] }
  0xc0   :  { %901 = vperm.xlu1 %2764, %v2407_v20   ;;  %897 = vperm.xlu0 %2763, %v2406_v21   ;;  %v382_v61 = vrot.slane %v378_v32, 2  ;;  %v379_v35 = vrot.slane %v366_v45, 2  ;;  %v397_v55 = vrot.slane %v389_v3, 6  ;;  %v396_v56 = vrot.slane %v388_v28, 6 }
  0xc1   :  { %v299_v3 = vadd.f32 %v291_v4, %v243_v48 }
  0xc2   :  { %v390_v58 = vmul.f32 %v382_v61, %v358_v62  ;;  %v387_v14 = vmul.f32 %v379_v35, %v355_v16  ;;  %v405_v20 = vadd.f32 %v397_v55, %v349_v22  ;;  %v404_v21 = vadd.f32 %v396_v56, %v348_v5  ;;  %v2469_v22 = vld [vmem:[%s4303_s0 + $0x19] sm:$0x1] }
  0xc3   :  { %v422_v57 = vpop.permute.xlu1 %421  ;;  %v418_v59 = vpop.permute.xlu0 %417  ;;  %v347_v63 = vadd.f32 %v339_v17, %v299_v3 }
  0xc4   :  { %v429_v6 = vrot.slane %v422_v57, 1  ;;  %v428_v8 = vrot.slane %v418_v59, 1  ;;  %905 = vperm.xlu1 %2764, %v2408_v18   ;;  %893 = vperm.xlu0 %2763, %v2405_v46   ;;  %v398_v28 = vrot.slane %v390_v58, 6  ;;  %v395_v23 = vrot.slane %v387_v14, 6 }
  0xc6   :  { %v437_v49 = vmul.f32 %v429_v6, %v357_v7  ;;  %v436_v12 = vmul.f32 %v428_v8, %v356_v9  ;;  %v2409_v7 = vld [vmem:[%s4303_s0 + $0xf] sm:$0x1]  ;;  %v406_v35 = vadd.f32 %v398_v28, %v350_v0  ;;  %v403_v46 = vadd.f32 %v395_v23, %v347_v63  ;;  %v2472_v8 = vld [vmem:[%s4303_s0 + $0x79] sm:$0x1]  ;;  %v2482_v28 = vld [vmem:[%s4303_s0 + $0x3b] sm:$0x1] }
  0xc7   :  { %v426_v1 = vpop.permute.xlu1 %425  ;;  %v414_v13 = vpop.permute.xlu0 %413  ;;  %v2480_v23 = vld [vmem:[%s4303_s0 + $0x7a] sm:$0x1]  ;;  %v2465_v0 = vld [vmem:[%s4303_s0 + $0x18] sm:$0x1] }
  0xc8   :  { %v445_v34 = vrot.slane %v437_v49, 7  ;;  %v444_v39 = vrot.slane %v436_v12, 7  ;;  %v430_v24 = vrot.slane %v426_v1, 1  ;;  %v427_v40 = vrot.slane %v414_v13, 1  ;;  %949 = vperm.xlu1 %2764, %v2411_v19   ;;  %945 = vperm.xlu0 %2763, %v2410_v43   ;;  %v2479_v12 = vld [vmem:[%s4303_s0 + $0x5a] sm:$0x1] }
  0xca   :  { %v453_v9 = vadd.f32 %v445_v34, %v405_v20  ;;  %v452_v32 = vadd.f32 %v444_v39, %v404_v21  ;;  %v438_v45 = vmul.f32 %v430_v24, %v358_v62  ;;  %v435_v11 = vmul.f32 %v427_v40, %v355_v16  ;;  %v2470_v62 = vld [vmem:[%s4303_s0 + $0x39] sm:$0x1]  ;;  %v2477_v24 = vld [vmem:[%s4303_s0 + $0x1a] sm:$0x1]  ;;  %v2466_v40 = vld [vmem:[%s4303_s0 + $0x38] sm:$0x1] }
  0xcb   :  { %v3431_v18 = vpop.permute.xlu1 %1110  ;;  %v3433_v29 = vpop.permute.xlu0 %1106 }
  0xcc   :  { %v472_v37 = vpack.c.bf16 %v453_v9, %v453_v9  ;;  %v471_v61 = vpack.c.bf16 %v452_v32, %v452_v32  ;;  %953 = vperm.xlu1 %2764, %v2412_v52   ;;  %941 = vperm.xlu0 %2763, %v2409_v7   ;;  %v446_v36 = vrot.slane %v438_v45, 7  ;;  %v443_v53 = vrot.slane %v435_v11, 7  ;;  %v2468_v11 = vld [vmem:[%s4303_s0 + $0x78] sm:$0x1] }
  0xcd   :  { %v459_v16 = vrot.slane %v452_v32, 7  ;;  %v462_v56 = vrot.slane %v453_v9, 6  ;;  %v2483_v9 = vld [vmem:[%s4303_s0 + $0x5b] sm:$0x1]  ;;  %v2467_v32 = vld [vmem:[%s4303_s0 + $0x58] sm:$0x1] }
  0xce   :  { %v485_v51 = vunpack.c.l.b16 %v471_v61  ;;  %v454_v42 = vadd.f32 %v446_v36, %v406_v35  ;;  %v451_v2 = vadd.f32 %v443_v53, %v403_v46  ;;  %v486_v57 = vunpack.c.l.b16 %v472_v37  ;;  %v2415_v61 = vld [vmem:[%s4305_s2 + $0x28] sm:$0x1]  ;;  %v2484_v35 = vld [vmem:[%s4303_s0 + $0x7b] sm:$0x1]  ;;  %v3541_v53 = vld [vmem:[%s4305_s2 + $0x28] sm:$0x2] }
  0xcf   :  { %v3441_v54 = vpop.permute.xlu1 %1114  ;;  %v3443_v55 = vpop.permute.xlu0 %1102  ;;  %v2481_v46 = vld [vmem:[%s4303_s0 + $0x1b] sm:$0x1]  ;;  %v1117_v36 = vrot.slane %v3433_v29, 7  ;;  %v1065_v29 = vunpack.c.l.bf16 %v2415_v61 }
  0xd0   :  { %1583 = vperm.xlu1 %2764, %v2471_v10   ;;  %1579 = vperm.xlu0 %2763, %v2470_v62   ;;  %v465_v59 = vrot.slane %v454_v42, 5  ;;  %v473_v60 = vpack.c.bf16 %v454_v42, %v454_v42  ;;  %v461_v4 = vsel %vm460_vm1, %v459_v16, %v451_v2  ;;  %v470_v6 = vpack.c.bf16 %v451_v2, %v451_v2  ;;  %v3546_v62 = vld [vmem:[%s4305_s2 + $0x8] sm:$0x1]  ;;  %v3560_v2 = vld [vmem:[%s4305_s2 + $0x8] sm:$0x2] }
  0xd1   :  { %v464_v5 = vsel %vm463_vm2, %v462_v56, %v461_v4  ;;  %v488_v58 = vrot.slane %v485_v51, 7  ;;  %v490_v49 = vrot.slane %v486_v57, 6  ;;  %v1118_v16 = vrot.slane %v3431_v18, 7  ;;  %v3565_v56 = vld [vmem:[%s4305_s2 + $0x38] sm:$0x2] }
  0xd2   :  { %v487_v14 = vunpack.c.l.b16 %v473_v60  ;;  %v467_v19 = vsel %vm466_vm3, %v465_v59, %v464_v5  ;;  %v484_v43 = vunpack.c.l.b16 %v470_v6  ;;  %v3570_v18 = vld [vmem:[%s4305_s2 + $0x28] sm:$0x4]  ;;  %v1119_v57 = vrot.slane %v3441_v54, 7  ;;  %v2491_v6 = vld [vmem:[%s4303_s0 + $0x5c] sm:$0x1] }
  0xd3   :  { %v3454_v50 = vpop.permute.xlu1 %1166  ;;  %v3456_v48 = vpop.permute.xlu0 %1162  ;;  %469 = vst [vmem:[#allocation2] sm:$0xf] %v467_v19  ;;  %v1150_v59 = vunpack.c.l.bf16 %v3541_v53  ;;  %v1063_v4 = vunpack.c.l.bf16 %v3546_v62  ;;  %v3593_v19 = vld [vmem:[%s4305_s2 + $0x38] sm:$0x4]  ;;  %v2495_v53 = vld [vmem:[%s4303_s0 + $0x5d] sm:$0x1] }
  0xd4   :  { %1587 = vperm.xlu1 %2764, %v2472_v8   ;;  %1575 = vperm.xlu0 %2763, %v2469_v22   ;;  %v489_v17 = vsel %vm460_vm1, %v488_v58, %v484_v43  ;;  %v492_v20 = vrot.slane %v487_v14, 5  ;;  %v2490_v8 = vld [vmem:[%s4303_s0 + $0x3c] sm:$0x1]  ;;  %v1174_v22 = vrot.slane %v3454_v50, 6  ;;  %v1173_v54 = vrot.slane %v3456_v48, 6 }
  0xd5   :  { %v491_v21 = vsel %vm463_vm2, %v490_v49, %v489_v17  ;;  %v3588_v14 = vld [vmem:[%s4305_s2 + $0x18] sm:$0x4]  ;;  %v1151_v50 = vunpack.c.l.bf16 %v3565_v56  ;;  %v1126_v48 = vmul.f32 %v1118_v16, %v1065_v29  ;;  %v1116_v17 = vrot.slane %v3443_v55, 7  ;;  %v2489_v55 = vld [vmem:[%s4303_s0 + $0x1c] sm:$0x1] }
  0xd6   :  { %v493_v34 = vsel %vm466_vm3, %v492_v20, %v491_v21  ;;  %v2496_v62 = vld [vmem:[%s4303_s0 + $0x7d] sm:$0x1] }
  0xd7   :  { %v3466_v1 = vpop.permute.xlu1 %1158  ;;  %v3468_v13 = vpop.permute.xlu0 %1079  ;;  %v494_v39 = vpack.c.b16 %v493_v34, %v493_v34  ;;  %v1254_v34 = vunpack.c.l.bf16 %v3570_v18  ;;  %v1134_v61 = vrot.slane %v1126_v48, 1 }
  0xd8   :  { %1639 = vperm.xlu1 %2764, %v2479_v12   ;;  %1635 = vperm.xlu0 %2763, %v2478_v15   ;;  %v3604_v12 = vld [vmem:[%s4305_s2 + $0x8] sm:$0x4] }
  0xd9   :  { %2613 = vmatmul.mubr.bf16.vlgmr.msra.gmra.mxu0 %v494_v39 }
  0xda   :  { %2637 = vmatpush3.bf16.msra.mxu0 %v2974_v25  ;;  %2652 = vmatprep.mubr.msk.bf16.mxu0 %vm2857_vm0, %v2856_v26 }
  0xdb   :  { %v3477_v31 = vpop.permute.xlu1 %1210  ;;  %v3479_v3 = vpop.permute.xlu0 %1170  ;;  %2638 = vmatprep.subr.bf16.mxu0 %v2856_v26 }
  0xdc   :  { %1631 = vperm.xlu1 %2764, %v2477_v24   ;;  %1552 = vperm.xlu0 %2763, %v2466_v40   ;;  %v1221_v43 = vrot.slane %v3477_v31, 5  ;;  %v1253_v40 = vunpack.c.l.bf16 %v3588_v14  ;;  %v1255_v31 = vunpack.c.l.bf16 %v3593_v19 }
  0xde   :  { %2639 = vmatpush3.bf16.msra.mxu0 %v2982_v27  ;;  %v2414_v27 = vld [vmem:[%s4305_s2 + $0x18] sm:$0x1] }
  0xdf   :  { %v3491_v52 = vpop.permute.xlu1 %1214  ;;  %v3493_v7 = vpop.permute.xlu0 %1084  ;;  %2640 = vmatprep.subr.bf16.mxu0 %v2856_v26  ;;  %v1064_v10 = vunpack.c.l.bf16 %v2414_v27  ;;  %v1175_v27 = vrot.slane %v3479_v3, 6 }
  0xe0   :  { %1683 = vperm.xlu1 %2764, %v2482_v28   ;;  %1643 = vperm.xlu0 %2763, %v2480_v23   ;;  %v1222_v21 = vrot.slane %v3491_v52, 5  ;;  %v1094_v39 = vmul.f32 %v3493_v7, %v1065_v29  ;;  %v2492_v28 = vld [vmem:[%s4303_s0 + $0x7c] sm:$0x1]  ;;  %v1182_v23 = vmul.f32 %v1174_v22, %v1150_v59 }
  0xe1   :  { %v1125_v58 = vmul.f32 %v1117_v36, %v1064_v10  ;;  %v1093_v20 = vmul.f32 %v3468_v13, %v1064_v10  ;;  %v3624_v13 = vld [vmem:[%s4305_s2 + $0x28] sm:$0x8]  ;;  %v1124_v36 = vmul.f32 %v1116_v17, %v1063_v4 }
  0xe2   :  { %2641 = vmatpush3.bf16.msra.mxu0 %v2994_v30  ;;  %v3528_v30 = vld [vmem:[%s4305_s2 + $0x38] sm:$0x1]  ;;  %v1358_v10 = vunpack.c.l.bf16 %v3624_v13  ;;  %v2508_v13 = vld [vmem:[%s4303_s0 + $0x7f] sm:$0x1] }
  0xe3   :  { %v3503_v25 = vpop.permute.xlu1 %1089  ;;  %v3505_v45 = vpop.permute.xlu0 %1074  ;;  %2642 = vmatprep.subr.bf16.mxu0 %v2856_v26  ;;  %v1066_v60 = vunpack.c.l.bf16 %v3528_v30  ;;  %v1133_v7 = vrot.slane %v1125_v58, 1 }
  0xe4   :  { %1687 = vperm.xlu1 %2764, %v2483_v9   ;;  %1557 = vperm.xlu0 %2763, %v2467_v32   ;;  %v1252_v9 = vunpack.c.l.bf16 %v3604_v12  ;;  %v3631_v32 = vld [vmem:[%s4305_s2 + $0x18] sm:$0x8]  ;;  %v2507_v12 = vld [vmem:[%s4303_s0 + $0x5f] sm:$0x1] }
  0xe5   :  { %v1127_v24 = vmul.f32 %v1119_v57, %v1066_v60  ;;  %v1095_v3 = vmul.f32 %v3503_v25, %v1066_v60  ;;  %v1357_v29 = vunpack.c.l.bf16 %v3631_v32  ;;  %v3650_v57 = vld [vmem:[%s4305_s2 + $0x38] sm:$0x8] }
  0xe6   :  { %2643 = vmatpush3.bf16.msra.mxu0 %v3006_v33  ;;  %v2426_v33 = vld [vmem:[%s4305_s2 + $0x18] sm:$0x2]  ;;  %v1359_v48 = vunpack.c.l.bf16 %v3650_v57  ;;  %v2518_v57 = vld [vmem:[%s4304_s1 + $0x4] sm:$0xf] }
  0xe7   :  { %v3518_v63 = vpop.permute.xlu1 %1218  ;;  %v3520_v37 = vpop.permute.xlu0 %1206  ;;  %2644 = vmatprep.subr.bf16.mxu0 %v2856_v26  ;;  %v1149_v5 = vunpack.c.l.bf16 %v2426_v33  ;;  %v1135_v16 = vrot.slane %v1127_v24, 1  ;;  %v2494_v33 = vld [vmem:[%s4303_s0 + $0x3d] sm:$0x1] }
  0xe8   :  { %1562 = vperm.xlu1 %2764, %v2468_v11   ;;  %1547 = vperm.xlu0 %2763, %v2465_v0   ;;  %v1172_v11 = vrot.slane %v3466_v1, 6  ;;  %v1142_v1 = vadd.f32 %v1134_v61, %v1094_v39  ;;  %v1220_v24 = vrot.slane %v3520_v37, 5 }
  0xe9   :  { %v1181_v52 = vmul.f32 %v1173_v54, %v1149_v5  ;;  %v1229_v0 = vmul.f32 %v1221_v43, %v1149_v5  ;;  %v1183_v5 = vmul.f32 %v1175_v27, %v1151_v50  ;;  %v1092_v54 = vmul.f32 %v3505_v45, %v1063_v4  ;;  %v2493_v45 = vld [vmem:[%s4303_s0 + $0x1d] sm:$0x1] }
  0xea   :  { %2645 = vmatpush3.bf16.msra.mxu0 %v3024_v38  ;;  %v1148_v38 = vunpack.c.l.bf16 %v3560_v2  ;;  %v1223_v4 = vrot.slane %v3518_v63, 5 }
  0xeb   :  { %v3553_v51 = vpop.permute.xlu1 %1270  ;;  %v3555_v42 = vpop.permute.xlu0 %1266  ;;  %2646 = vmatprep.subr.bf16.mxu0 %v2856_v26  ;;  %v1237_v60 = vrot.slane %v1229_v0, 3 }
  0xec   :  { %1691 = vperm.xlu1 %2764, %v2484_v35   ;;  %1679 = vperm.xlu0 %2763, %v2481_v46   ;;  %v1141_v35 = vadd.f32 %v1133_v7, %v1093_v20  ;;  %v1230_v46 = vmul.f32 %v1222_v21, %v1150_v59  ;;  %v1190_v59 = vrot.slane %v1182_v23, 2  ;;  %v1277_v22 = vrot.slane %v3555_v42, 4 }
  0xed   :  { %v1180_v25 = vmul.f32 %v1172_v11, %v1148_v38  ;;  %v1132_v42 = vrot.slane %v1124_v36, 1  ;;  %v1143_v20 = vadd.f32 %v1135_v16, %v1095_v3  ;;  %v1191_v7 = vrot.slane %v1183_v5, 2  ;;  %v3691_v36 = vld [vmem:[%s4305_s2 + $0x8] sm:$0x8]  ;;  %v2501_v5 = vld [vmem:[%s4303_s0 + $0x1e] sm:$0x1] }
  0xee   :  { %2647 = vmatpush3.bf16.msra.mxu0 %v3035_v41  ;;  %v1238_v43 = vrot.slane %v1230_v46, 3  ;;  %v1198_v17 = vadd.f32 %v1190_v59, %v1142_v1  ;;  %v1231_v18 = vmul.f32 %v1223_v4, %v1151_v50  ;;  %v1228_v14 = vmul.f32 %v1220_v24, %v1148_v38  ;;  %v2504_v50 = vld [vmem:[%s4303_s0 + $0x7e] sm:$0x1] }
  0xef   :  { %v3599_v49 = vpop.permute.xlu1 %1274  ;;  %v3606_v15 = vpop.permute.xlu0 %1262  ;;  %2648 = vmatprep.subr.bf16.mxu0 %v2856_v26  ;;  %v1188_v23 = vrot.slane %v1180_v25, 2  ;;  %v1140_v11 = vadd.f32 %v1132_v42, %v1092_v54  ;;  %v1356_v38 = vunpack.c.l.bf16 %v3691_v36 }
  0xf0   :  { %1743 = vperm.xlu1 %2764, %v2491_v6   ;;  %1739 = vperm.xlu0 %2763, %v2490_v8   ;;  %v1189_v6 = vrot.slane %v1181_v52, 2  ;;  %v1278_v8 = vrot.slane %v3553_v51, 4  ;;  %v1276_v63 = vrot.slane %v3606_v15, 4  ;;  %v2502_v15 = vld [vmem:[%s4303_s0 + $0x3e] sm:$0x1]  ;;  %v1239_v54 = vrot.slane %v1231_v18, 3 }
  0xf2   :  { %2649 = vmatpush3.bf16.msra.mxu0 %v3047_v44  ;;  %v1197_v51 = vadd.f32 %v1189_v6, %v1141_v35  ;;  %v1196_v6 = vadd.f32 %v1188_v23, %v1140_v11  ;;  %v1284_v2 = vmul.f32 %v1276_v63, %v1252_v9 }
  0xf3   :  { %v1319_v30 = vpop.permute.xlu1 %1318  ;;  %v1315_v41 = vpop.permute.xlu0 %1314  ;;  %2650 = vmatprep.subr.bf16.mxu0 %v2856_v26 }
  0xf4   :  { %1747 = vperm.xlu1 %2764, %v2492_v28   ;;  %1735 = vperm.xlu0 %2763, %v2489_v55   ;;  %v1326_v21 = vrot.slane %v1319_v30, 3  ;;  %v1325_v39 = vrot.slane %v1315_v41, 3  ;;  %v1286_v28 = vmul.f32 %v1278_v8, %v1254_v34  ;;  %v1285_v55 = vmul.f32 %v1277_v22, %v1253_v40 }
  0xf5   :  { %v1245_v52 = vadd.f32 %v1237_v60, %v1197_v51  ;;  %v1246_v30 = vadd.f32 %v1238_v43, %v1198_v17  ;;  %v1199_v41 = vadd.f32 %v1191_v7, %v1143_v20 }
  0xf6   :  { %2651 = vmatpush3.bf16.msra.mxu0 %v3059_v47  ;;  %v1279_v47 = vrot.slane %v3599_v49, 4  ;;  %v1334_v35 = vmul.f32 %v1326_v21, %v1254_v34  ;;  %v1333_v46 = vmul.f32 %v1325_v39, %v1253_v40  ;;  %v2503_v49 = vld [vmem:[%s4303_s0 + $0x5e] sm:$0x1]  ;;  %v1294_v34 = vrot.slane %v1286_v28, 4 }
  0xf7   :  { %v3663_v44 = vpop.permute.xlu1 %1322  ;;  %v3665_v58 = vpop.permute.xlu0 %1310  ;;  %2676 = vmatprep.subr.bf16.mxu0 %v2856_v26  ;;  %v1293_v40 = vrot.slane %v1285_v55, 4 }
  0xf8   :  { %1791 = vperm.xlu1 %2764, %v2495_v53   ;;  %1787 = vperm.xlu0 %2763, %v2494_v33   ;;  %v1327_v53 = vrot.slane %v3663_v44, 3  ;;  %v1324_v1 = vrot.slane %v3665_v58, 3  ;;  %v1287_v56 = vmul.f32 %v1279_v47, %v1255_v31  ;;  %v1342_v8 = vrot.slane %v1334_v35, 5 }
  0xf9   :  { %v1341_v22 = vrot.slane %v1333_v46, 5  ;;  %v1236_v44 = vrot.slane %v1228_v14, 3  ;;  %v1302_v58 = vadd.f32 %v1294_v34, %v1246_v30  ;;  %v1301_v51 = vadd.f32 %v1293_v40, %v1245_v52 }
  0xfa   :  { %v1335_v43 = vmul.f32 %v1327_v53, %v1255_v31  ;;  %v1332_v42 = vmul.f32 %v1324_v1, %v1252_v9  ;;  %v2506_v31 = vld [vmem:[%s4303_s0 + $0x3f] sm:$0x1]  ;;  %v1247_v9 = vadd.f32 %v1239_v54, %v1199_v41 }
  0xfb   :  { %v1375_v0 = vpop.permute.xlu1 %1374  ;;  %v1371_v27 = vpop.permute.xlu0 %1370  ;;  %v1350_v28 = vadd.f32 %v1342_v8, %v1302_v58  ;;  %v1349_v55 = vadd.f32 %v1341_v22, %v1301_v51  ;;  %v1244_v52 = vadd.f32 %v1236_v44, %v1196_v6  ;;  %v2193_v58 = vsub.f32 1.0, %v2518_v57 }
  0xfc   :  { %v1382_v61 = vrot.slane %v1375_v0, 2  ;;  %v1381_v37 = vrot.slane %v1371_v27, 2  ;;  %1795 = vperm.xlu1 %2764, %v2496_v62   ;;  %1783 = vperm.xlu0 %2763, %v2493_v45   ;;  %v1295_v62 = vrot.slane %v1287_v56, 4  ;;  %v1292_v45 = vrot.slane %v1284_v2, 4 }
  0xfd   :  { %v1343_v0 = vrot.slane %v1335_v43, 5  ;;  %v1340_v27 = vrot.slane %v1332_v42, 5 }
  0xfe   :  { %v1390_v16 = vmul.f32 %v1382_v61, %v1358_v10  ;;  %v1389_v3 = vmul.f32 %v1381_v37, %v1357_v29  ;;  %v1300_v41 = vadd.f32 %v1292_v45, %v1244_v52 }
  0xff   :  { %v1379_v33 = vpop.permute.xlu1 %1378  ;;  %v1367_v59 = vpop.permute.xlu0 %1366 }
 0x100   :  { %1847 = vperm.xlu1 %2764, %v2503_v49   ;;  %1843 = vperm.xlu0 %2763, %v2502_v15   ;;  %v1383_v25 = vrot.slane %v1379_v33, 2  ;;  %v1380_v60 = vrot.slane %v1367_v59, 2  ;;  %v1398_v17 = vrot.slane %v1390_v16, 6  ;;  %v1397_v20 = vrot.slane %v1389_v3, 6  ;;  %v2505_v49 = vld [vmem:[%s4303_s0 + $0x1f] sm:$0x1] }
 0x101   :  { %v2023_v15 = vld [vmem:[%s4304_s1] sm:$0xf]  ;;  %v1348_v1 = vadd.f32 %v1340_v27, %v1300_v41 }
 0x102   :  { %v1391_v23 = vmul.f32 %v1383_v25, %v1359_v48  ;;  %v1388_v19 = vmul.f32 %v1380_v60, %v1356_v38  ;;  %v1406_v47 = vadd.f32 %v1398_v17, %v1350_v28  ;;  %v1405_v63 = vadd.f32 %v1397_v20, %v1349_v55  ;;  %v2520_v20 = vld [vmem:[%s4304_s1 + $0x8] sm:$0xf] }
 0x103   :  { %v1423_v21 = vpop.permute.xlu1 %1422  ;;  %v1419_v39 = vpop.permute.xlu0 %1418  ;;  %v2125_v6 = vsub.f32 1.0, %v2023_v15 }
 0x104   :  { %v1430_v4 = vrot.slane %v1423_v21, 1  ;;  %v1429_v24 = vrot.slane %v1419_v39, 1  ;;  %1851 = vperm.xlu1 %2764, %v2504_v50   ;;  %1839 = vperm.xlu0 %2763, %v2501_v5   ;;  %v1399_v32 = vrot.slane %v1391_v23, 6  ;;  %v2261_v23 = vsub.f32 1.0, %v2520_v20 }
 0x106   :  { %v1438_v7 = vmul.f32 %v1430_v4, %v1358_v10  ;;  %v1437_v11 = vmul.f32 %v1429_v24, %v1357_v29  ;;  %v1303_v10 = vadd.f32 %v1295_v62, %v1247_v9  ;;  %v1396_v29 = vrot.slane %v1388_v19, 6 }
 0x107   :  { %v1427_v61 = vpop.permute.xlu1 %1426  ;;  %v1415_v37 = vpop.permute.xlu0 %1414 }
 0x108   :  { %v1446_v30 = vrot.slane %v1438_v7, 7  ;;  %v1445_v35 = vrot.slane %v1437_v11, 7  ;;  %v1431_v46 = vrot.slane %v1427_v61, 1  ;;  %v1428_v36 = vrot.slane %v1415_v37, 1  ;;  %1895 = vperm.xlu1 %2764, %v2507_v12   ;;  %1891 = vperm.xlu0 %2763, %v2506_v31   ;;  %v2522_v31 = vld [vmem:[%s4304_s1 + $0xc] sm:$0xf] }
 0x109   :  { %v1351_v53 = vadd.f32 %v1343_v0, %v1303_v10  ;;  %v1404_v2 = vadd.f32 %v1396_v29, %v1348_v1  ;;  %v3781_v0 = vld [vmem:[%s4306_s3 + $0x38] sm:$0xff]   ;;  %v2329_v27 = vsub.f32 1.0, %v2522_v31  ;;  %v3791_v37 = vld [vmem:[%s4306_s3 + $0x30] sm:$0xff]   ;;  %v3813_v10 = vld [vmem:[%s4306_s3 + $0x20] sm:$0xff]  }
 0x10a   :  { %v1454_v18 = vadd.f32 %v1446_v30, %v1406_v47  ;;  %v1453_v14 = vadd.f32 %v1445_v35, %v1405_v63  ;;  %v1439_v34 = vmul.f32 %v1431_v46, %v1359_v48  ;;  %v1436_v40 = vmul.f32 %v1428_v36, %v1356_v38  ;;  %v3802_v46 = vld [vmem:[%s4306_s3 + $0x28] sm:$0xff]   ;;  %v2367_v29 = vld [vmem:[%s4305_s2 + $0x24] sm:$0x1]  ;;  %v3859_v1 = vld [vmem:[%s4305_s2 + $0x34] sm:$0x2] }
 0x10b   :  { %v3747_v16 = vpop.permute.xlu1 %637  ;;  %v3749_v3 = vpop.permute.xlu0 %633  ;;  %v1407_v56 = vadd.f32 %v1399_v32, %v1351_v53  ;;  %v3854_v53 = vld [vmem:[%s4305_s2 + $0x4] sm:$0x2] }
 0x10c   :  { %v1471_v33 = vpack.c.bf16 %v1454_v18, %v1454_v18  ;;  %v1470_v59 = vpack.c.bf16 %v1453_v14, %v1453_v14  ;;  %1899 = vperm.xlu1 %2764, %v2508_v13   ;;  %1887 = vperm.xlu0 %2763, %v2505_v49   ;;  %v1447_v50 = vrot.slane %v1439_v34, 7  ;;  %v1444_v8 = vrot.slane %v1436_v40, 7  ;;  %v2366_v49 = vld [vmem:[%s4305_s2 + $0x14] sm:$0x1]  ;;  %v3845_v34 = vld [vmem:[%s4305_s2 + $0x24] sm:$0x2] }
 0x10d   :  { %v1460_v48 = vrot.slane %v1453_v14, 7  ;;  %v1462_v54 = vrot.slane %v1454_v18, 6  ;;  %v3835_v18 = vld [vmem:[%s4305_s2 + $0x34] sm:$0x1]  ;;  %v3840_v14 = vld [vmem:[%s4305_s2 + $0x4] sm:$0x1] }
 0x10e   :  { %v1478_v38 = vunpack.c.l.b16 %v1470_v59  ;;  %v1455_v22 = vadd.f32 %v1447_v50, %v1407_v56  ;;  %v1452_v25 = vadd.f32 %v1444_v8, %v1404_v2  ;;  %v1479_v44 = vunpack.c.l.b16 %v1471_v33  ;;  %v2378_v40 = vld [vmem:[%s4305_s2 + $0x14] sm:$0x2]  ;;  %v3872_v2 = vld [vmem:[%s4305_s2 + $0x14] sm:$0x4] }
 0x10f   :  { %v3754_v60 = vpop.permute.xlu1 %641  ;;  %v3756_v5 = vpop.permute.xlu0 %629  ;;  %v592_v33 = vunpack.c.l.bf16 %v2367_v29  ;;  %v645_v59 = vrot.slane %v3747_v16, 7  ;;  %v591_v8 = vunpack.c.l.bf16 %v2366_v49  ;;  %v3882_v16 = vld [vmem:[%s4306_s3 + $0x10] sm:$0xff]   ;;  %v3950_v49 = vld [vmem:[%s4305_s2 + $0x4] sm:$0x8] }
 0x110   :  { %2128 = vperm.xlu1 %2764, %v2125_v6   ;;  %2121 = vperm.xlu0 %2763, %v2023_v15   ;;  %v1464_v51 = vrot.slane %v1455_v22, 5  ;;  %v1472_v43 = vpack.c.bf16 %v1455_v22, %v1455_v22  ;;  %v1461_v42 = vsel %vm460_vm1, %v1460_v48, %v1452_v25  ;;  %v1469_v17 = vpack.c.bf16 %v1452_v25, %v1452_v25  ;;  %v3830_v15 = vld [vmem:[%s4306_s3 + $0x18] sm:$0xff]   ;;  %v3865_v6 = vld [vmem:[%s4305_s2 + $0x24] sm:$0x4] }
 0x111   :  { %v1463_v21 = vsel %vm463_vm2, %v1462_v54, %v1461_v42  ;;  %v1481_v39 = vrot.slane %v1478_v38, 7  ;;  %v1483_v55 = vrot.slane %v1479_v44, 6  ;;  %v590_v48 = vunpack.c.l.bf16 %v3840_v14  ;;  %v3887_v38 = vld [vmem:[%s4305_s2 + $0x34] sm:$0x4]  ;;  %v3892_v22 = vld [vmem:[%s4305_s2 + $0x4] sm:$0x4] }
 0x112   :  { %v1480_v62 = vunpack.c.l.b16 %v1472_v43  ;;  %v1465_v45 = vsel %vm466_vm3, %v1464_v51, %v1463_v21  ;;  %v1477_v4 = vunpack.c.l.b16 %v1469_v17  ;;  %v644_v25 = vrot.slane %v3749_v3, 7 }
 0x113   :  { %v3764_v24 = vpop.permute.xlu1 %693  ;;  %v3766_v28 = vpop.permute.xlu0 %689  ;;  %1468 = vst [vmem:[#allocation2 + $0x8] sm:$0xf] %v1465_v45  ;;  %v677_v54 = vunpack.c.l.bf16 %v3845_v34  ;;  %v676_v44 = vunpack.c.l.bf16 %v2378_v40  ;;  %v646_v51 = vrot.slane %v3754_v60, 7  ;;  %v678_v42 = vunpack.c.l.bf16 %v3859_v1 }
 0x114   :  { %2196 = vperm.xlu1 %2764, %v2193_v58   ;;  %2189 = vperm.xlu0 %2763, %v2518_v57   ;;  %v1485_v19 = vrot.slane %v1480_v62, 5  ;;  %v1482_v12 = vsel %vm460_vm1, %v1481_v39, %v1477_v4  ;;  %v593_v57 = vunpack.c.l.bf16 %v3835_v18  ;;  %v675_v58 = vunpack.c.l.bf16 %v3854_v53  ;;  %v3917_v4 = vld [vmem:[%s4306_s3 + $0x8] sm:$0xff]  }
 0x115   :  { %v1484_v9 = vsel %vm463_vm2, %v1483_v55, %v1482_v12  ;;  %v701_v43 = vrot.slane %v3764_v24, 6  ;;  %v781_v17 = vunpack.c.l.bf16 %v3865_v6  ;;  %v653_v3 = vmul.f32 %v645_v59, %v592_v33  ;;  %v3922_v24 = vld [vmem:[%s4305_s2 + $0x24] sm:$0x8]  ;;  %v3927_v55 = vld [vmem:[%s4305_s2 + $0x14] sm:$0x8] }
 0x116   :  { %v1486_v11 = vsel %vm466_vm3, %v1485_v19, %v1484_v9  ;;  %v780_v21 = vunpack.c.l.bf16 %v3872_v2  ;;  %v700_v19 = vrot.slane %v3766_v28, 6  ;;  %v3937_v9 = vld [vmem:[%s4305_s2 + $0x34] sm:$0x8]  ;;  %v654_v28 = vmul.f32 %v646_v51, %v593_v57 }
 0x117   :  { %v3773_v52 = vpop.permute.xlu1 %685  ;;  %v3775_v7 = vpop.permute.xlu0 %606  ;;  %v1487_v47 = vpack.c.b16 %v1486_v11, %v1486_v11  ;;  %v652_v11 = vmul.f32 %v644_v25, %v591_v8  ;;  %v884_v29 = vunpack.c.l.bf16 %v3927_v55  ;;  %v4311_v1 = vunpack.c.l.bf16 %v3887_v38 }
 0x118   :  { %2264 = vperm.xlu1 %2764, %v2261_v23   ;;  %2257 = vperm.xlu0 %2763, %v2520_v20   ;;  %v3905_v20 = vld [vmem:[%s4309_s6] sm:$0xf]  ;;  %v643_v23 = vrot.slane %v3756_v5, 7  ;;  %v699_v12 = vrot.slane %v3773_v52, 6  ;;  %v709_v52 = vmul.f32 %v701_v43, %v677_v54  ;;  %v708_v51 = vmul.f32 %v700_v19, %v676_v44 }
 0x119   :  { %2653 = vmatmul.mubr.bf16.vlgmr.msra.gmra.mxu0 %v1487_v47  ;;  %v2024_v5 = vpack.c.bf16 %v3905_v20, %v3905_v20  ;;  %v662_v19 = vrot.slane %v654_v28, 1  ;;  %v4312_v53 = vunpack.c.l.bf16 %v3892_v22 }
 0x11a   :  { %2677 = vmatpush3.bf16.msra.mxu0 %v3781_v0  ;;  %2692 = vmatprep.mubr.msk.bf16.mxu0 %vm2857_vm0, %v2856_v26  ;;  %v651_v25 = vmul.f32 %v643_v23, %v590_v48  ;;  %v3959_v43 = vmul.f32 %v699_v12, %v675_v58  ;;  %v883_v23 = vunpack.c.l.bf16 %v3950_v49  ;;  %v717_v59 = vrot.slane %v709_v52, 2 }
 0x11b   :  { %v3783_v63 = vpop.permute.xlu1 %737  ;;  %v3785_v61 = vpop.permute.xlu0 %697  ;;  %2678 = vmatprep.subr.bf16.mxu0 %v2856_v26  ;;  %v716_v52 = vrot.slane %v708_v51, 2 }
 0x11c   :  { %2332 = vperm.xlu1 %2764, %v2329_v27   ;;  %2325 = vperm.xlu0 %2763, %v2522_v31   ;;  %v748_v31 = vrot.slane %v3783_v63, 5  ;;  %v885_v63 = vunpack.c.l.bf16 %v3922_v24  ;;  %v702_v34 = vrot.slane %v3785_v61, 6  ;;  %v660_v61 = vrot.slane %v652_v11, 1 }
 0x11d   :  { %v659_v28 = vrot.slane %v651_v25, 1 }
 0x11e   :  { %2679 = vmatpush3.bf16.msra.mxu0 %v3791_v37  ;;  %v756_v60 = vmul.f32 %v748_v31, %v676_v44  ;;  %v710_v39 = vmul.f32 %v702_v34, %v678_v42 }
 0x11f   :  { %v3796_v30 = vpop.permute.xlu1 %741  ;;  %v612_v35 = vpop.permute.xlu0 %611  ;;  %2680 = vmatprep.subr.bf16.mxu0 %v2856_v26 }
 0x120   :  { %v749_v27 = vrot.slane %v3796_v30, 5  ;;  %v621_v47 = vmul.f32 %v612_v35, %v592_v33  ;;  %v661_v30 = vrot.slane %v653_v3, 1  ;;  %v620_v35 = vmul.f32 %v3775_v7, %v591_v8  ;;  %v3965_v7 = vld [vmem:[%s4306_s3] sm:$0xff]  }
 0x122   :  { %2681 = vmatpush3.bf16.msra.mxu0 %v3802_v46  ;;  %v757_v8 = vmul.f32 %v749_v27, %v677_v54  ;;  %v669_v3 = vadd.f32 %v661_v30, %v621_v47  ;;  %v668_v31 = vadd.f32 %v660_v61, %v620_v35  ;;  %v764_v30 = vrot.slane %v756_v60, 3 }
 0x123   :  { %v3805_v36 = vpop.permute.xlu1 %616  ;;  %v3807_v13 = vpop.permute.xlu0 %601  ;;  %2682 = vmatprep.subr.bf16.mxu0 %v2856_v26 }
 0x124   :  { %v622_v11 = vmul.f32 %v3805_v36, %v593_v57  ;;  %v619_v54 = vmul.f32 %v3807_v13, %v590_v48  ;;  %v725_v35 = vadd.f32 %v717_v59, %v669_v3  ;;  %v724_v57 = vadd.f32 %v716_v52, %v668_v31 }
 0x125   :  { %v718_v48 = vrot.slane %v710_v39, 2 }
 0x126   :  { %2683 = vmatpush3.bf16.msra.mxu0 %v3813_v10  ;;  %v670_v60 = vadd.f32 %v662_v19, %v622_v11  ;;  %v667_v25 = vadd.f32 %v659_v28, %v619_v54 }
 0x127   :  { %v3816_v41 = vpop.permute.xlu1 %745  ;;  %v3818_v32 = vpop.permute.xlu0 %733  ;;  %2684 = vmatprep.subr.bf16.mxu0 %v2856_v26 }
 0x128   :  { %v750_v36 = vrot.slane %v3816_v41, 5  ;;  %v747_v18 = vrot.slane %v3818_v32, 5  ;;  %v772_v32 = vadd.f32 %v764_v30, %v724_v57 }
 0x12a   :  { %2685 = vmatpush3.bf16.msra.mxu0 %v3830_v15 }
 0x12b   :  { %v3867_v56 = vpop.permute.xlu1 %797  ;;  %v3874_v50 = vpop.permute.xlu0 %793  ;;  %2686 = vmatprep.subr.bf16.mxu0 %v2856_v26 }
 0x12c   :  { %v805_v12 = vrot.slane %v3867_v56, 4  ;;  %v804_v44 = vrot.slane %v3874_v50, 4  ;;  %v715_v56 = vrot.slane %v3959_v43, 2  ;;  %v765_v50 = vrot.slane %v757_v8, 3 }
 0x12e   :  { %2687 = vmatpush3.bf16.msra.mxu0 %v3882_v16  ;;  %v813_v13 = vmul.f32 %v805_v12, %v781_v17  ;;  %v812_v14 = vmul.f32 %v804_v44, %v780_v21  ;;  %v773_v8 = vadd.f32 %v765_v50, %v725_v35  ;;  %v723_v11 = vadd.f32 %v715_v56, %v667_v25 }
 0x12f   :  { %v3909_v62 = vpop.permute.xlu1 %801  ;;  %v3912_v45 = vpop.permute.xlu0 %789  ;;  %2688 = vmatprep.subr.bf16.mxu0 %v2856_v26  ;;  %v4313_v56 = vmov %v4311_v1 }
 0x130   :  { %v803_v51 = vrot.slane %v3912_v45, 4  ;;  %v755_v45 = vmul.f32 %v747_v18, %v675_v58  ;;  %v821_v3 = vrot.slane %v813_v13, 4  ;;  %v820_v19 = vrot.slane %v812_v14, 4 }
 0x132   :  { %2689 = vmatpush3.bf16.msra.mxu0 %v3917_v4  ;;  %v811_v58 = vmul.f32 %v803_v51, %v4312_v53  ;;  %v763_v30 = vrot.slane %v755_v45, 3  ;;  %v829_v50 = vadd.f32 %v821_v3, %v773_v8  ;;  %v828_v35 = vadd.f32 %v820_v19, %v772_v32 }
 0x133   :  { %v846_v40 = vpop.permute.xlu1 %845  ;;  %v842_v33 = vpop.permute.xlu0 %841  ;;  %2690 = vmatprep.subr.bf16.mxu0 %v2856_v26  ;;  %v4315_v51 = vunpack.c.l.bf16 %v3937_v9 }
 0x134   :  { %v853_v34 = vrot.slane %v846_v40, 3  ;;  %v852_v61 = vrot.slane %v842_v33, 3  ;;  %v806_v33 = vrot.slane %v3909_v62, 4  ;;  %v758_v62 = vmul.f32 %v750_v36, %v678_v42 }
 0x136   :  { %2691 = vmatpush3.bf16.msra.mxu0 %v3965_v7  ;;  %v861_v39 = vmul.f32 %v853_v34, %v781_v17  ;;  %v814_v42 = vmul.f32 %v806_v33, %v4311_v1  ;;  %v766_v52 = vrot.slane %v758_v62, 3 }
 0x137   :  { %v850_v27 = vpop.permute.xlu1 %849  ;;  %v838_v47 = vpop.permute.xlu0 %837  ;;  %2716 = vmatprep.subr.bf16.mxu0 %v2856_v26 }
 0x138   :  { %v854_v12 = vrot.slane %v850_v27, 3  ;;  %v851_v44 = vrot.slane %v838_v47, 3  ;;  %v869_v54 = vrot.slane %v861_v39, 5 }
 0x139   :  { %2693 = vmatmul.mubr.bf16.vlgmr.msra.gmra.mxu0 %v2024_v5  ;;  %v860_v5 = vmul.f32 %v852_v61, %v780_v21  ;;  %v726_v21 = vadd.f32 %v718_v48, %v670_v60  ;;  %v4314_v61 = vmov %v4312_v53  ;;  %v822_v48 = vrot.slane %v814_v42, 4 }
 0x13a   :  { %2717 = vmatpush3.bf16.msra.mxu0 %v3781_v0  ;;  %2732 = vmatprep.mubr.msk.bf16.mxu0 %vm2857_vm0, %v2856_v26  ;;  %v862_v34 = vmul.f32 %v854_v12, %v4313_v56  ;;  %v859_v36 = vmul.f32 %v851_v44, %v4314_v61  ;;  %v819_v60 = vrot.slane %v811_v58, 4 }
 0x13b   :  { %v902_v59 = vpop.permute.xlu1 %901  ;;  %v898_v40 = vpop.permute.xlu0 %897  ;;  %2718 = vmatprep.subr.bf16.mxu0 %v2856_v26  ;;  %v868_v27 = vrot.slane %v860_v5, 5  ;;  %v774_v22 = vadd.f32 %v766_v52, %v726_v21 }
 0x13c   :  { %v909_v41 = vrot.slane %v902_v59, 2  ;;  %v908_v43 = vrot.slane %v898_v40, 2  ;;  %v877_v40 = vadd.f32 %v869_v54, %v829_v50  ;;  %v870_v39 = vrot.slane %v862_v34, 5 }
 0x13d   :  { %v876_v33 = vadd.f32 %v868_v27, %v828_v35  ;;  %v867_v5 = vrot.slane %v859_v36, 5 }
 0x13e   :  { %v917_v31 = vmul.f32 %v909_v41, %v885_v63  ;;  %v916_v6 = vmul.f32 %v908_v43, %v884_v29  ;;  %2719 = vmatpush3.bf16.msra.mxu0 %v3791_v37  ;;  %v771_v43 = vadd.f32 %v763_v30, %v723_v11 }
 0x13f   :  { %v906_v2 = vpop.permute.xlu1 %905  ;;  %v894_v17 = vpop.permute.xlu0 %893  ;;  %2720 = vmatprep.subr.bf16.mxu0 %v2856_v26 }
 0x140   :  { %v910_v47 = vrot.slane %v906_v2, 2  ;;  %v907_v28 = vrot.slane %v894_v17, 2  ;;  %v925_v18 = vrot.slane %v917_v31, 6  ;;  %v924_v13 = vrot.slane %v916_v6, 6 }
 0x141   :  { %v830_v2 = vadd.f32 %v822_v48, %v774_v22  ;;  %v827_v17 = vadd.f32 %v819_v60, %v771_v43 }
 0x142   :  { %2721 = vmatpush3.bf16.msra.mxu0 %v3802_v46  ;;  %v918_v41 = vmul.f32 %v910_v47, %v4315_v51  ;;  %v915_v38 = vmul.f32 %v907_v28, %v883_v23  ;;  %v933_v62 = vadd.f32 %v925_v18, %v877_v40  ;;  %v932_v45 = vadd.f32 %v924_v13, %v876_v33 }
 0x143   :  { %v950_v14 = vpop.permute.xlu1 %949  ;;  %v946_v57 = vpop.permute.xlu0 %945  ;;  %2722 = vmatprep.subr.bf16.mxu0 %v2856_v26  ;;  %v878_v42 = vadd.f32 %v870_v39, %v830_v2  ;;  %v875_v53 = vadd.f32 %v867_v5, %v827_v17  ;;  %v2799_v2 = vld [vmem:[#allocation4 + $0x28] sm:$0xff]  }
 0x144   :  { %v957_v25 = vrot.slane %v950_v14, 1  ;;  %v956_v59 = vrot.slane %v946_v57, 1  ;;  %v926_v21 = vrot.slane %v918_v41, 6  ;;  %v923_v24 = vrot.slane %v915_v38, 6 }
 0x146   :  { %v965_v32 = vmul.f32 %v957_v25, %v885_v63  ;;  %v964_v8 = vmul.f32 %v956_v59, %v884_v29  ;;  %2723 = vmatpush3.bf16.msra.mxu0 %v3813_v10  ;;  %v4316_v29 = vmov %v4315_v51  ;;  %v934_v28 = vadd.f32 %v926_v21, %v878_v42  ;;  %v2474_v42 = vld [vmem:[%s4305_s2 + $0x1c] sm:$0x2] }
 0x147   :  { %v954_v3 = vpop.permute.xlu1 %953  ;;  %v942_v19 = vpop.permute.xlu0 %941  ;;  %2724 = vmatprep.subr.bf16.mxu0 %v2856_v26  ;;  %v931_v52 = vadd.f32 %v923_v24, %v875_v53  ;;  %v2463_v24 = vld [vmem:[%s4305_s2 + $0x2c] sm:$0x1] }
 0x148   :  { %v973_v12 = vrot.slane %v965_v32, 7  ;;  %v972_v44 = vrot.slane %v964_v8, 7  ;;  %v958_v31 = vrot.slane %v954_v3, 1  ;;  %v955_v6 = vrot.slane %v942_v19, 1  ;;  %v2797_v3 = vld [vmem:[#allocation4 + $0x38] sm:$0xff]  }
 0x149   :  { %v1538_v53 = vunpack.c.l.bf16 %v2463_v24 }
 0x14a   :  { %v981_v55 = vadd.f32 %v973_v12, %v933_v62  ;;  %v980_v63 = vadd.f32 %v972_v44, %v932_v45  ;;  %v966_v11 = vmul.f32 %v958_v31, %v4316_v29  ;;  %v963_v1 = vmul.f32 %v955_v6, %v883_v23  ;;  %2725 = vmatpush3.bf16.msra.mxu0 %v3830_v15  ;;  %v2798_v44 = vld [vmem:[#allocation4 + $0x30] sm:$0xff]   ;;  %v4089_v29 = vld [vmem:[%s4305_s2 + $0x3c] sm:$0x1] }
 0x14b   :  { %v4032_v58 = vpop.permute.xlu1 %1583  ;;  %v4034_v54 = vpop.permute.xlu0 %1579  ;;  %2726 = vmatprep.subr.bf16.mxu0 %v2856_v26 }
 0x14c   :  { %v998_v27 = vpack.c.bf16 %v981_v55, %v981_v55  ;;  %v997_v47 = vpack.c.bf16 %v980_v63, %v980_v63  ;;  %v974_v30 = vrot.slane %v966_v11, 7  ;;  %v971_v50 = vrot.slane %v963_v1, 7  ;;  %v4095_v11 = vld [vmem:[%s4305_s2 + $0xc] sm:$0x1]  ;;  %v4100_v1 = vld [vmem:[%s4305_s2 + $0x2c] sm:$0x2] }
 0x14d   :  { %v987_v9 = vrot.slane %v980_v63, 7  ;;  %v989_v61 = vrot.slane %v981_v55, 6  ;;  %v2800_v55 = vld [vmem:[#allocation4 + $0x20] sm:$0xff]   ;;  %v2462_v63 = vld [vmem:[%s4305_s2 + $0x1c] sm:$0x1] }
 0x14e   :  { %v1005_v35 = vunpack.c.l.b16 %v997_v47  ;;  %v982_v49 = vadd.f32 %v974_v30, %v934_v28  ;;  %v979_v23 = vadd.f32 %v971_v50, %v931_v52  ;;  %v1006_v36 = vunpack.c.l.b16 %v998_v27  ;;  %2727 = vmatpush3.bf16.msra.mxu0 %v3882_v16  ;;  %v4109_v47 = vld [vmem:[%s4305_s2 + $0xc] sm:$0x2]  ;;  %v4114_v28 = vld [vmem:[%s4305_s2 + $0x3c] sm:$0x2] }
 0x14f   :  { %v4038_v56 = vpop.permute.xlu1 %1587  ;;  %v4040_v34 = vpop.permute.xlu0 %1575  ;;  %2728 = vmatprep.subr.bf16.mxu0 %v2856_v26  ;;  %v1591_v27 = vrot.slane %v4032_v58, 7  ;;  %v1537_v50 = vunpack.c.l.bf16 %v2462_v63  ;;  %v4124_v58 = vld [vmem:[%s4305_s2 + $0x2c] sm:$0x4] }
 0x150   :  { %v991_v18 = vrot.slane %v982_v49, 5  ;;  %v999_v13 = vpack.c.bf16 %v982_v49, %v982_v49  ;;  %v988_v14 = vsel %vm460_vm1, %v987_v9, %v979_v23  ;;  %v996_v57 = vpack.c.bf16 %v979_v23, %v979_v23  ;;  %v4134_v49 = vld [vmem:[%s4305_s2 + $0x3c] sm:$0x4] }
 0x151   :  { %v990_v48 = vsel %vm463_vm2, %v989_v61, %v988_v14  ;;  %v1008_v60 = vrot.slane %v1005_v35, 7  ;;  %v1010_v41 = vrot.slane %v1006_v36, 6  ;;  %v1539_v9 = vunpack.c.l.bf16 %v4089_v29  ;;  %v4129_v35 = vld [vmem:[%s4305_s2 + $0x1c] sm:$0x4] }
 0x152   :  { %v1007_v25 = vunpack.c.l.b16 %v999_v13  ;;  %v992_v59 = vsel %vm466_vm3, %v991_v18, %v990_v48  ;;  %v1004_v40 = vunpack.c.l.b16 %v996_v57  ;;  %2729 = vmatpush3.bf16.msra.mxu0 %v3917_v4  ;;  %v2801_v23 = vld [vmem:[#allocation4 + $0x18] sm:$0xff]   ;;  %v1590_v61 = vrot.slane %v4034_v54, 7 }
 0x153   :  { %v4047_v33 = vpop.permute.xlu1 %1639  ;;  %v4049_v51 = vpop.permute.xlu0 %1635  ;;  %995 = vst [vmem:[#allocation2 + $0x4] sm:$0xf] %v992_v59  ;;  %2730 = vmatprep.subr.bf16.mxu0 %v2856_v26  ;;  %v1536_v36 = vunpack.c.l.bf16 %v4095_v11  ;;  %v1623_v18 = vunpack.c.l.bf16 %v4100_v1  ;;  %v1622_v13 = vunpack.c.l.bf16 %v2474_v42  ;;  %v1592_v14 = vrot.slane %v4038_v56, 7  ;;  %v4185_v1 = vld [vmem:[%s4305_s2 + $0xc] sm:$0x8] }
 0x154   :  { %v1012_v38 = vrot.slane %v1007_v25, 5  ;;  %v1009_v22 = vsel %vm460_vm1, %v1008_v60, %v1004_v40  ;;  %v1647_v57 = vrot.slane %v4047_v33, 6  ;;  %v1621_v48 = vunpack.c.l.bf16 %v4109_v47  ;;  %v4147_v25 = vld [vmem:[%s4305_s2 + $0xc] sm:$0x4]  ;;  %v4159_v33 = vld [vmem:[%s4305_s2 + $0x2c] sm:$0x8] }
 0x155   :  { %v1011_v43 = vsel %vm463_vm2, %v1010_v41, %v1009_v22  ;;  %v1624_v60 = vunpack.c.l.bf16 %v4114_v28  ;;  %v1599_v54 = vmul.f32 %v1591_v27, %v1538_v53  ;;  %v1727_v59 = vunpack.c.l.bf16 %v4124_v58  ;;  %v4164_v22 = vld [vmem:[%s4305_s2 + $0x1c] sm:$0x8]  ;;  %v2803_v11 = vld [vmem:[#allocation4 + $0x8] sm:$0xff]  }
 0x156   :  { %v1013_v39 = vsel %vm466_vm3, %v1012_v38, %v1011_v43  ;;  %2731 = vmatpush3.bf16.msra.mxu0 %v3965_v7  ;;  %v1726_v40 = vunpack.c.l.bf16 %v4129_v35  ;;  %v1589_v43 = vrot.slane %v4040_v34, 7  ;;  %v1598_v24 = vmul.f32 %v1590_v61, %v1537_v50 }
 0x157   :  { %v4055_v32 = vpop.permute.xlu1 %1631  ;;  %v4057_v8 = vpop.permute.xlu0 %1552  ;;  %v1014_v5 = vpack.c.b16 %v1013_v39, %v1013_v39  ;;  %v1646_v39 = vrot.slane %v4049_v51, 6  ;;  %v1600_v34 = vmul.f32 %v1592_v14, %v1539_v9  ;;  %v1655_v51 = vmul.f32 %v1647_v57, %v1623_v18 }
 0x158   :  { %v1607_v42 = vrot.slane %v1599_v54, 1  ;;  %v1597_v61 = vmul.f32 %v1589_v43, %v1536_v36  ;;  %v1606_v41 = vrot.slane %v1598_v24, 1  ;;  %v1829_v54 = vunpack.c.l.bf16 %v4185_v1 }
 0x159   :  { %2633 = vmatmul.mubr.bf16.vlgmr.msra.gmra.mxu1 %v1014_v5  ;;  %v1645_v5 = vrot.slane %v4055_v32, 6  ;;  %v1654_v14 = vmul.f32 %v1646_v39, %v1622_v13  ;;  %v4319_v28 = vunpack.c.l.bf16 %v4134_v49  ;;  %v4320_v47 = vunpack.c.l.bf16 %v4147_v25 }
 0x15a   :  { %2657 = vmatpush3.bf16.msra.mxu1 %v2797_v3  ;;  %2672 = vmatprep.mubr.msk.bf16.mxu1 %vm2857_vm0, %v2856_v26 }
 0x15b   :  { %v4061_v62 = vpop.permute.xlu1 %1683  ;;  %v4063_v45 = vpop.permute.xlu0 %1643  ;;  %2658 = vmatprep.subr.bf16.mxu1 %v2856_v26  ;;  %v1653_v57 = vmul.f32 %v1645_v5, %v1621_v48 }
 0x15c   :  { %v1694_v3 = vrot.slane %v4061_v62, 5 }
 0x15e   :  { %2659 = vmatpush3.bf16.msra.mxu1 %v2798_v44  ;;  %v4173_v44 = vld [vmem:[%s4305_s2 + $0x3c] sm:$0x8] }
 0x15f   :  { %v4068_v19 = vpop.permute.xlu1 %1687  ;;  %v1558_v12 = vpop.permute.xlu0 %1557  ;;  %2660 = vmatprep.subr.bf16.mxu1 %v2856_v26 }
 0x160   :  { %v1567_v63 = vmul.f32 %v1558_v12, %v1538_v53  ;;  %v1648_v12 = vrot.slane %v4063_v45, 6  ;;  %v1663_v45 = vrot.slane %v1655_v51, 2  ;;  %v2804_v51 = vld [vmem:[#allocation4] sm:$0xff]  }
 0x162   :  { %2661 = vmatpush3.bf16.msra.mxu1 %v2799_v2  ;;  %v2802_v2 = vld [vmem:[#allocation4 + $0x10] sm:$0xff]   ;;  %v1615_v32 = vadd.f32 %v1607_v42, %v1567_v63  ;;  %v1656_v5 = vmul.f32 %v1648_v12, %v1624_v60  ;;  %v1662_v63 = vrot.slane %v1654_v14, 2 }
 0x163   :  { %v4071_v31 = vpop.permute.xlu1 %1562  ;;  %v4073_v6 = vpop.permute.xlu0 %1547  ;;  %2662 = vmatprep.subr.bf16.mxu1 %v2856_v26 }
 0x166   :  { %2663 = vmatpush3.bf16.msra.mxu1 %v2800_v55  ;;  %v1695_v55 = vrot.slane %v4068_v19, 5  ;;  %v1566_v19 = vmul.f32 %v4057_v8, %v1537_v50  ;;  %v1608_v8 = vrot.slane %v1600_v34, 1 }
 0x167   :  { %v4076_v17 = vpop.permute.xlu1 %1691  ;;  %v4078_v21 = vpop.permute.xlu0 %1679  ;;  %2664 = vmatprep.subr.bf16.mxu1 %v2856_v26 }
 0x168   :  { %v1703_v62 = vmul.f32 %v1695_v55, %v1623_v18  ;;  %v1614_v39 = vadd.f32 %v1606_v41, %v1566_v19  ;;  %v1565_v18 = vmul.f32 %v4073_v6, %v1536_v36  ;;  %v1605_v55 = vrot.slane %v1597_v61, 1 }
 0x169   :  { %v1696_v29 = vrot.slane %v4076_v17, 5  ;;  %v1664_v19 = vrot.slane %v1656_v5, 2  ;;  %v4317_v5 = vunpack.c.l.bf16 %v4159_v33 }
 0x16a   :  { %2665 = vmatpush3.bf16.msra.mxu1 %v2801_v23  ;;  %v1832_v23 = vunpack.c.l.bf16 %v4173_v44  ;;  %v1670_v36 = vadd.f32 %v1662_v63, %v1614_v39  ;;  %v1613_v61 = vadd.f32 %v1605_v55, %v1565_v18  ;;  %v4318_v18 = vunpack.c.l.bf16 %v4164_v22 }
 0x16b   :  { %v4116_v52 = vpop.permute.xlu1 %1743  ;;  %v4118_v30 = vpop.permute.xlu0 %1739  ;;  %2666 = vmatprep.subr.bf16.mxu1 %v2856_v26  ;;  %v4323_v25 = vmov %v4317_v5 }
 0x16c   :  { %v1751_v50 = vrot.slane %v4116_v52, 4  ;;  %v1750_v43 = vrot.slane %v4118_v30, 4  ;;  %v1711_v52 = vrot.slane %v1703_v62, 3  ;;  %v1671_v30 = vadd.f32 %v1663_v45, %v1615_v32 }
 0x16e   :  { %2667 = vmatpush3.bf16.msra.mxu1 %v2802_v2  ;;  %v1702_v2 = vmul.f32 %v1694_v3, %v1622_v13  ;;  %v1568_v13 = vmul.f32 %v4071_v31, %v1539_v9  ;;  %v1693_v31 = vrot.slane %v4078_v21, 5  ;;  %v1759_v6 = vmul.f32 %v1751_v50, %v1727_v59 }
 0x16f   :  { %v4152_v38 = vpop.permute.xlu1 %1747  ;;  %v4154_v56 = vpop.permute.xlu0 %1735  ;;  %2668 = vmatprep.subr.bf16.mxu1 %v2856_v26  ;;  %v1758_v9 = vmul.f32 %v1750_v43, %v1726_v40  ;;  %v1719_v21 = vadd.f32 %v1711_v52, %v1671_v30 }
 0x170   :  { %v1710_v34 = vrot.slane %v1702_v2, 3  ;;  %v1616_v12 = vadd.f32 %v1608_v8, %v1568_v13  ;;  %v1704_v8 = vmul.f32 %v1696_v29, %v1624_v60  ;;  %v1701_v50 = vmul.f32 %v1693_v31, %v1621_v48 }
 0x171   :  { %v1767_v43 = vrot.slane %v1759_v6, 4  ;;  %v4322_v31 = vmov %v4320_v47 }
 0x172   :  { %2669 = vmatpush3.bf16.msra.mxu1 %v2803_v11  ;;  %v1661_v11 = vrot.slane %v1653_v57, 2  ;;  %v1718_v57 = vadd.f32 %v1710_v34, %v1670_v36  ;;  %v1672_v35 = vadd.f32 %v1664_v19, %v1616_v12  ;;  %v1709_v52 = vrot.slane %v1701_v50, 3 }
 0x173   :  { %v1792_v53 = vpop.permute.xlu1 %1791  ;;  %v1788_v27 = vpop.permute.xlu0 %1787  ;;  %2670 = vmatprep.subr.bf16.mxu1 %v2856_v26  ;;  %v1775_v30 = vadd.f32 %v1767_v43, %v1719_v21 }
 0x174   :  { %v1799_v41 = vrot.slane %v1792_v53, 3  ;;  %v1798_v42 = vrot.slane %v1788_v27, 3  ;;  %v1752_v53 = vrot.slane %v4152_v38, 4  ;;  %v1749_v27 = vrot.slane %v4154_v56, 4 }
 0x175   :  { %v1766_v38 = vrot.slane %v1758_v9, 4 }
 0x176   :  { %2671 = vmatpush3.bf16.msra.mxu1 %v2804_v51  ;;  %v1807_v2 = vmul.f32 %v1799_v41, %v1727_v59  ;;  %v1806_v45 = vmul.f32 %v1798_v42, %v1726_v40  ;;  %v1669_v40 = vadd.f32 %v1661_v11, %v1613_v61  ;;  %v1760_v60 = vmul.f32 %v1752_v53, %v4319_v28 }
 0x177   :  { %v1796_v3 = vpop.permute.xlu1 %1795  ;;  %v1784_v24 = vpop.permute.xlu0 %1783  ;;  %2696 = vmatprep.subr.bf16.mxu1 %v2856_v26  ;;  %v1757_v48 = vmul.f32 %v1749_v27, %v4320_v47  ;;  %v1712_v51 = vrot.slane %v1704_v8, 3  ;;  %v1774_v41 = vadd.f32 %v1766_v38, %v1718_v57  ;;  %v4321_v42 = vmov %v4319_v28 }
 0x178   :  { %v1800_v39 = vrot.slane %v1796_v3, 3  ;;  %v1797_v56 = vrot.slane %v1784_v24, 3  ;;  %v1815_v63 = vrot.slane %v1807_v2, 5  ;;  %v1814_v34 = vrot.slane %v1806_v45, 5 }
 0x179   :  { %v1768_v12 = vrot.slane %v1760_v60, 4  ;;  %v1765_v61 = vrot.slane %v1757_v48, 4  ;;  %v1717_v57 = vadd.f32 %v1709_v52, %v1669_v40  ;;  %v4324_v2 = vmov %v4318_v18 }
 0x17a   :  { %v1808_v29 = vmul.f32 %v1800_v39, %v4321_v42  ;;  %v1805_v11 = vmul.f32 %v1797_v56, %v4322_v31  ;;  %v1823_v53 = vadd.f32 %v1815_v63, %v1775_v30  ;;  %v1822_v27 = vadd.f32 %v1814_v34, %v1774_v41 }
 0x17b   :  { %v1848_v62 = vpop.permute.xlu1 %1847  ;;  %v1844_v32 = vpop.permute.xlu0 %1843 }
 0x17c   :  { %v1855_v14 = vrot.slane %v1848_v62, 2  ;;  %v1854_v17 = vrot.slane %v1844_v32, 2  ;;  %v1816_v8 = vrot.slane %v1808_v29, 5  ;;  %v1813_v50 = vrot.slane %v1805_v11, 5 }
 0x17e   :  { %v1863_v13 = vmul.f32 %v1855_v14, %v4317_v5  ;;  %v1862_v58 = vmul.f32 %v1854_v17, %v4318_v18  ;;  %v1720_v17 = vadd.f32 %v1712_v51, %v1672_v35 }
 0x17f   :  { %v1852_v59 = vpop.permute.xlu1 %1851  ;;  %v1840_v55 = vpop.permute.xlu0 %1839 }
 0x180   :  { %v1856_v3 = vrot.slane %v1852_v59, 2  ;;  %v1853_v24 = vrot.slane %v1840_v55, 2  ;;  %v1871_v6 = vrot.slane %v1863_v13, 6  ;;  %v1870_v9 = vrot.slane %v1862_v58, 6 }
 0x181   :  { %v1776_v59 = vadd.f32 %v1768_v12, %v1720_v17  ;;  %v1773_v55 = vadd.f32 %v1765_v61, %v1717_v57 }
 0x182   :  { %v1864_v14 = vmul.f32 %v1856_v3, %v1832_v23  ;;  %v1861_v49 = vmul.f32 %v1853_v24, %v1829_v54  ;;  %v1879_v43 = vadd.f32 %v1871_v6, %v1823_v53  ;;  %v1878_v38 = vadd.f32 %v1870_v9, %v1822_v27 }
 0x183   :  { %v1896_v36 = vpop.permute.xlu1 %1895  ;;  %v1892_v19 = vpop.permute.xlu0 %1891  ;;  %v1824_v47 = vadd.f32 %v1816_v8, %v1776_v59  ;;  %v1821_v48 = vadd.f32 %v1813_v50, %v1773_v55 }
 0x184   :  { %v1903_v62 = vrot.slane %v1896_v36, 1  ;;  %v1902_v32 = vrot.slane %v1892_v19, 1  ;;  %v1872_v35 = vrot.slane %v1864_v14, 6  ;;  %v1869_v40 = vrot.slane %v1861_v49, 6  ;;  %v4252_v49 = vld [vmem:[%s4308_s5] ss:$0 sm:$0xff] }
 0x186   :  { %v1911_v21 = vmul.f32 %v1903_v62, %v4323_v25  ;;  %v1910_v45 = vmul.f32 %v1902_v32, %v4324_v2  ;;  %v1880_v3 = vadd.f32 %v1872_v35, %v1824_v47  ;;  %v1877_v24 = vadd.f32 %v1869_v40, %v1821_v48 }
 0x187   :  { %v1900_v39 = vpop.permute.xlu1 %1899  ;;  %v1888_v56 = vpop.permute.xlu0 %1887 }
 0x188   :  { %v1919_v5 = vrot.slane %v1911_v21, 7  ;;  %v1918_v13 = vrot.slane %v1910_v45, 7  ;;  %v1904_v18 = vrot.slane %v1900_v39, 1  ;;  %v1901_v58 = vrot.slane %v1888_v56, 1 }
 0x18a   :  { %v1927_v28 = vadd.f32 %v1919_v5, %v1879_v43  ;;  %v1926_v33 = vadd.f32 %v1918_v13, %v1878_v38  ;;  %v1912_v22 = vmul.f32 %v1904_v18, %v1832_v23  ;;  %v1909_v60 = vmul.f32 %v1901_v58, %v1829_v54 }
 0x18b   :  { %v2122_v40 = vpop.permute.xlu0 %2121 }
 0x18c   :  { %v1944_v63 = vpack.c.bf16 %v1927_v28, %v1927_v28  ;;  %v1943_v34 = vpack.c.bf16 %v1926_v33, %v1926_v33  ;;  %v1920_v51 = vrot.slane %v1912_v22, 7  ;;  %v1917_v52 = vrot.slane %v1909_v60, 7  ;;  %v2129_v22 = vpop.permute.xlu1 %2128 }
 0x18d   :  { %v1933_v30 = vrot.slane %v1926_v33, 7  ;;  %v1935_v31 = vrot.slane %v1927_v28, 6 }
 0x18e   :  { %v1951_v41 = vunpack.c.l.b16 %v1943_v34  ;;  %v1928_v42 = vadd.f32 %v1920_v51, %v1880_v3  ;;  %v1925_v29 = vadd.f32 %v1917_v52, %v1877_v24  ;;  %v1952_v11 = vunpack.c.l.b16 %v1944_v63  ;;  %v2021_v34 = vld [vmem:[#allocation2] sm:$0xf] }
 0x190   :  { %v1937_v6 = vrot.slane %v1928_v42, 5  ;;  %v1945_v44 = vpack.c.bf16 %v1928_v42, %v1928_v42  ;;  %v1934_v23 = vsel %vm460_vm1, %v1933_v30, %v1925_v29  ;;  %v1942_v1 = vpack.c.bf16 %v1925_v29, %v1925_v29  ;;  %v2805_v30 = vld [vmem:[%s4306_s3 + $0x38] sm:$0xff]  }
 0x191   :  { %v1936_v54 = vsel %vm463_vm2, %v1935_v31, %v1934_v23  ;;  %v1954_v9 = vrot.slane %v1951_v41, 7  ;;  %v1956_v61 = vrot.slane %v1952_v11, 6  ;;  %v2806_v41 = vld [vmem:[%s4306_s3 + $0x30] sm:$0xff]  }
 0x192   :  { %v1953_v36 = vunpack.c.l.b16 %v1945_v44  ;;  %v1938_v19 = vsel %vm466_vm3, %v1937_v6, %v1936_v54  ;;  %v1950_v12 = vunpack.c.l.b16 %v1942_v1 }
 0x193   :  { %1941 = vst [vmem:[#allocation2 + $0xc] sm:$0xf] %v1938_v19  ;;  %v2197_v19 = vpop.permute.xlu1 %2196 }
 0x194   :  { %v1958_v62 = vrot.slane %v1953_v36, 5  ;;  %v1955_v32 = vsel %vm460_vm1, %v1954_v9, %v1950_v12 }
 0x195   :  { %v1957_v53 = vsel %vm463_vm2, %v1956_v61, %v1955_v32 }
 0x196   :  { %v1959_v27 = vsel %vm466_vm3, %v1958_v62, %v1957_v53  ;;  %v2136_v62 = vld [vmem:[#allocation2 + $0x4] sm:$0xf] }
 0x197   :  { %v1960_v14 = vpack.c.b16 %v1959_v27, %v1959_v27 }
 0x199   :  { %2673 = vmatmul.mubr.bf16.vlgmr.msra.gmra.mxu1 %v1960_v14  ;;  %v578_v17 = vpop.f32.mrf.mxu0 }
 0x19a   :  { %2697 = vmatpush3.bf16.msra.mxu1 %v3781_v0  ;;  %2712 = vmatprep.mubr.msk.bf16.mxu1 %vm2857_vm0, %v2856_v26  ;;  %v579_v57 = vadd.f32 %v4252_v49, %v578_v17 }
 0x19b   :  { %2698 = vmatprep.subr.bf16.mxu1 %v2856_v26  ;;  %v2614_v25 = vpop.f32.mrf.mxu0 }
 0x19c   :  { %584 = vst [vmem:[#allocation3] sm:$0xf] %v579_v57 }
 0x19d   :  { %v581_v21 = vpop.f32.mrf.mxu0 }
 0x19e   :  { %2699 = vmatpush3.bf16.msra.mxu1 %v3791_v37 }
 0x19f   :  { %2700 = vmatprep.subr.bf16.mxu1 %v2856_v26  ;;  %v2615_v2 = vpop.f32.mrf.mxu0 }
 0x1a2   :  { %2701 = vmatpush3.bf16.msra.mxu1 %v3802_v46 }
 0x1a3   :  { %2702 = vmatprep.subr.bf16.mxu1 %v2856_v26  ;;  %v2022_v50 = vld [vmem:[#allocation3] sm:$0xf] }
 0x1a6   :  { %2703 = vmatpush3.bf16.msra.mxu1 %v3813_v10 }
 0x1a7   :  { %2704 = vmatprep.subr.bf16.mxu1 %v2856_v26 }
 0x1aa   :  { %2705 = vmatpush3.bf16.msra.mxu1 %v3830_v15 }
 0x1ab   :  { %2706 = vmatprep.subr.bf16.mxu1 %v2856_v26 }
 0x1ae   :  { %2707 = vmatpush3.bf16.msra.mxu1 %v3882_v16 }
 0x1af   :  { %2708 = vmatprep.subr.bf16.mxu1 %v2856_v26 }
 0x1b2   :  { %2709 = vmatpush3.bf16.msra.mxu1 %v3917_v4 }
 0x1b3   :  { %2710 = vmatprep.subr.bf16.mxu1 %v2856_v26 }
 0x1b6   :  { %2711 = vmatpush3.bf16.msra.mxu1 %v3965_v7 }
 0x1b7   :  { %2736 = vmatprep.subr.bf16.mxu1 %v2856_v26 }
 0x1d9   :  { %v1523_v0 = vpop.f32.mrf.mxu0 }
 0x1da   :  { %v1524_v37 = vadd.f32 %v4252_v49, %v1523_v0 }
 0x1db   :  { %v2654_v46 = vpop.f32.mrf.mxu0 }
 0x1dc   :  { %1530 = vst [vmem:[#allocation3 + $0x8] sm:$0xf] %v1524_v37 }
 0x1dd   :  { %v1526_v45 = vpop.f32.mrf.mxu0 }
 0x1df   :  { %v2655_v8 = vpop.f32.mrf.mxu0 }
 0x1f9   :  { %v2107_v43 = vpop.f32.mrf.mxu0 }
 0x1fa   :  { %v2108_v38 = vadd.f32 %v2107_v43, %v2022_v50  ;;  %v2265_v43 = vpop.permute.xlu1 %2264 }
 0x1fb   :  { %v2694_v39 = vpop.f32.mrf.mxu0 }
 0x1fc   :  { %v2517_v56 = vmul.f32 -1.442695, %v2108_v38 }
 0x1fd   :  { %v2110_v5 = vpop.f32.mrf.mxu0 }
 0x1fe   :  { %2781 = vpow2.f32 %v2517_v56  ;;  %v2204_v56 = vld [vmem:[#allocation2 + $0x8] sm:$0xf] }
 0x1ff   :  { %v2695_v13 = vpop.f32.mrf.mxu0 }
 0x20b   :  { %v2782_v18 = vpop.eup %2781 }
 0x20c   :  { %v2116_v58 = vadd.f32 1.0, %v2782_v18 }
 0x20e   :  { %2783 = vrcp.f32 %v2116_v58 }
 0x219   :  { %v1050_v59 = vpop.f32.mrf.mxu1 }
 0x21a   :  { %v1051_v55 = vadd.f32 %v4252_v49, %v1050_v59 }
 0x21b   :  { %v2784_v35 = vpop.eup %2783  ;;  %v2634_v28 = vpop.f32.mrf.mxu1 }
 0x21c   :  { %1057 = vst [vmem:[#allocation3 + $0x4] sm:$0xf] %v1051_v55  ;;  %v2124_v33 = vmul.f32 %v2784_v35, %v2122_v40 }
 0x21d   :  { %v1053_v60 = vpop.f32.mrf.mxu1 }
 0x21e   :  { %v2131_v47 = vadd.f32 %v2129_v22, %v2124_v33 }
 0x21f   :  { %v2635_v48 = vpop.f32.mrf.mxu1 }
 0x220   :  { %v2133_v63 = vsub.f32 1.0, %v2131_v47  ;;  %v2132_v3 = vmul.f32 %v2131_v47, %v3905_v20  ;;  %v2807_v20 = vld [vmem:[%s4306_s3 + $0x28] sm:$0xff]   ;;  %s2858_s3 = smov [#allocation7]  }
 0x221   :  { %s2347_s29 = sshll.u32 %s2858_s3, 4  ;;  %s2348_s29 = int_to_ptr.vmem [resolvable:$true] %s2347_s29 }
 0x222   :  { %v2134_v24 = vmul.f32 %v2133_v63, %v2021_v34  ;;  %s2828_s30 = scalar_lea.vmem %s2348_s29, 64  ;;  %p2833_p6 = scmp.lt.s32.totalorder %s2348_s29, %s2348_s29 }
 0x223   :  { %p2829_p5 = scmp.ne.s32.totalorder %s2348_s29, %s2828_s30  ;;  %p2834_p7 = scmp.lt.s32.totalorder %s2828_s30, %s2828_s30 }
 0x224   :  { %v2135_v51 = vadd.f32 %v2134_v24, %v2132_v3  ;;  %v2333_v3 = vpop.permute.xlu1 %2332 }
 0x225   :  { %p2835_p8 = por %p2834_p7, %p2833_p6 }
 0x226   :  { %v2140_v52 = vpack.c.bf16 %v2135_v51, %v2135_v51 }
 0x227   :  { %p2836_p9 = pnand %p2835_p8, %p2829_p5 }
 0x228   :  { %2713 = vmatmul.mubr.bf16.vlgmr.msra.gmra.mxu1 %v2140_v52  ;;  %v2272_v52 = vld [vmem:[#allocation2 + $0xc] sm:$0xf] }
 0x229   :  { %2737 = vmatpush3.bf16.msra.mxu1 %v2805_v30  ;;  %2752 = vmatprep.mubr.msk.bf16.mxu1 %vm2857_vm0, %v2856_v26 }
 0x22a   :  { %2738 = vmatprep.subr.bf16.mxu1 %v2856_v26 }
 0x22d   :  { %2739 = vmatpush3.bf16.msra.mxu1 %v2806_v41 }
 0x22e   :  { %2740 = vmatprep.subr.bf16.mxu1 %v2856_v26 }
 0x231   :  { %2741 = vmatpush3.bf16.msra.mxu1 %v2807_v20 }
 0x232   :  { %2742 = vmatprep.subr.bf16.mxu1 %v2856_v26 }
 0x235   :  { %2743 = vmatpush3.bf16.msra.mxu1 %v3813_v10 }
 0x236   :  { %2744 = vmatprep.subr.bf16.mxu1 %v2856_v26 }
 0x239   :  { %2745 = vmatpush3.bf16.msra.mxu1 %v3830_v15  ;;  %v2137_v15 = vld [vmem:[#allocation3 + $0x4] sm:$0xf] }
 0x23a   :  { %2746 = vmatprep.subr.bf16.mxu1 %v2856_v26 }
 0x23d   :  { %2747 = vmatpush3.bf16.msra.mxu1 %v3882_v16 }
 0x23e   :  { %2748 = vmatprep.subr.bf16.mxu1 %v2856_v26 }
 0x241   :  { %2749 = vmatpush3.bf16.msra.mxu1 %v3917_v4 }
 0x242   :  { %2750 = vmatprep.subr.bf16.mxu1 %v2856_v26 }
 0x245   :  { %2751 = vmatpush3.bf16.msra.mxu1 %v3965_v7  ;;  %v2190_v7 = vpop.permute.xlu0 %2189 }
 0x249   :  { %v2258_v8 = vpop.permute.xlu0 %2257 }
 0x24d   :  { %v2326_v63 = vpop.permute.xlu0 %2325 }
 0x259   :  { %v1996_v42 = vpop.f32.mrf.mxu1 }
 0x25a   :  { %v1997_v29 = vadd.f32 %v4252_v49, %v1996_v42  ;;  %v2205_v49 = vld [vmem:[#allocation3 + $0x8] sm:$0xf] }
 0x25b   :  { %v2674_v10 = vpop.f32.mrf.mxu1 }
 0x25c   :  { %2003 = vst [vmem:[#allocation3 + $0xc] sm:$0xf] %v1997_v29 }
 0x25d   :  { %v1999_v31 = vpop.f32.mrf.mxu1 }
 0x25f   :  { %v2675_v11 = vpop.f32.mrf.mxu1 }
 0x263   :  { %v2273_v59 = vld [vmem:[#allocation3 + $0xc] sm:$0xf] }
 0x2e8   :  { %v2175_v6 = vpop.f32.mrf.mxu1 }
 0x2e9   :  { %v2176_v44 = vadd.f32 %v2175_v6, %v2137_v15 }
 0x2ea   :  { %v2714_v23 = vpop.f32.mrf.mxu1 }
 0x2eb   :  { %v2519_v16 = vmul.f32 -1.442695, %v2176_v44 }
 0x2ec   :  { %v2178_v1 = vpop.f32.mrf.mxu1 }
 0x2ed   :  { %2785 = vpow2.f32 %v2519_v16 }
 0x2ee   :  { %v2715_v54 = vpop.f32.mrf.mxu1 }
 0x2fa   :  { %v2786_v4 = vpop.eup %2785 }
 0x2fb   :  { %v2184_v9 = vadd.f32 1.0, %v2786_v4 }
 0x2fd   :  { %2787 = vrcp.f32 %v2184_v9 }
 0x30a   :  { %v2788_v26 = vpop.eup %2787 }
 0x30b   :  { %v2192_v36 = vmul.f32 %v2788_v26, %v2190_v7 }
 0x30d   :  { %v2199_v12 = vadd.f32 %v2197_v19, %v2192_v36 }
 0x30f   :  { %v2201_v61 = vsub.f32 1.0, %v2199_v12  ;;  %v2200_v32 = vmul.f32 %v2199_v12, %v2135_v51 }
 0x311   :  { %v2202_v53 = vmul.f32 %v2201_v61, %v2136_v62 }
 0x313   :  { %v2203_v27 = vadd.f32 %v2202_v53, %v2200_v32 }
 0x315   :  { %v2208_v14 = vpack.c.bf16 %v2203_v27, %v2203_v27 }
 0x317   :  { %2733 = vmatmul.mubr.bf16.vlgmr.msra.gmra.mxu0 %v2208_v14 }
 0x3d7   :  { %v2243_v17 = vpop.f32.mrf.mxu0 }
 0x3d8   :  { %v2244_v57 = vadd.f32 %v2243_v17, %v2205_v49 }
 0x3d9   :  { %v2734_v25 = vpop.f32.mrf.mxu0 }
 0x3da   :  { %v2521_v21 = vmul.f32 -1.442695, %v2244_v57 }
 0x3db   :  { %v2246_v2 = vpop.f32.mrf.mxu0 }
 0x3dc   :  { %2789 = vpow2.f32 %v2521_v21 }
 0x3dd   :  { %v2735_v0 = vpop.f32.mrf.mxu0 }
 0x3e9   :  { %v2790_v37 = vpop.eup %2789 }
 0x3ea   :  { %v2252_v46 = vadd.f32 1.0, %v2790_v37 }
 0x3ec   :  { %2791 = vrcp.f32 %v2252_v46 }
 0x3f9   :  { %v2792_v45 = vpop.eup %2791 }
 0x3fa   :  { %v2260_v50 = vmul.f32 %v2792_v45, %v2258_v8 }
 0x3fc   :  { %v2267_v38 = vadd.f32 %v2265_v43, %v2260_v50 }
 0x3fe   :  { %v2269_v39 = vsub.f32 1.0, %v2267_v38  ;;  %v2268_v5 = vmul.f32 %v2267_v38, %v2203_v27 }
 0x400   :  { %v2270_v13 = vmul.f32 %v2269_v39, %v2204_v56 }
 0x402   :  { %v2271_v18 = vadd.f32 %v2270_v13, %v2268_v5 }
 0x404   :  { %v2276_v58 = vpack.c.bf16 %v2271_v18, %v2271_v18 }
 0x406   :  { %2753 = vmatmul.mubr.bf16.vlgmr.msra.gmra.mxu1 %v2276_v58 }
 0x4c6   :  { %v2311_v55 = vpop.f32.mrf.mxu1 }
 0x4c7   :  { %v2312_v35 = vadd.f32 %v2311_v55, %v2273_v59 }
 0x4c8   :  { %v2754_v40 = vpop.f32.mrf.mxu1 }
 0x4c9   :  { %v2523_v28 = vmul.f32 -1.442695, %v2312_v35 }
 0x4ca   :  { %v2314_v33 = vpop.f32.mrf.mxu1 }
 0x4cb   :  { %2793 = vpow2.f32 %v2523_v28 }
 0x4cc   :  { %v2755_v22 = vpop.f32.mrf.mxu1 }
 0x4d8   :  { %v2794_v60 = vpop.eup %2793 }
 0x4d9   :  { %v2320_v47 = vadd.f32 1.0, %v2794_v60 }
 0x4db   :  { %2795 = vrcp.f32 %v2320_v47 }
 0x4e8   :  { %v2796_v48 = vpop.eup %2795 }
 0x4e9   :  { %v2328_v34 = vmul.f32 %v2796_v48, %v2326_v63 }
 0x4eb   :  { %v2335_v24 = vadd.f32 %v2333_v3, %v2328_v34 }
 0x4ed   :  { %v2337_v51 = vsub.f32 1.0, %v2335_v24  ;;  %v2336_v30 = vmul.f32 %v2335_v24, %v2271_v18 }
 0x4ef   :  { %v2338_v41 = vmul.f32 %v2337_v51, %v2272_v52 }
 0x4f1   :  { %v2339_v20 = vadd.f32 %v2338_v41, %v2336_v30 }
 0x4f3   :  { %2340 = vst [vmem:[#allocation7] sm:$0xf] %v2339_v20 }
 0x4f4   :  { %2839 = shalt.err (!%p2836_p9)
}
 0x4f5   :  { %2350 = dma.vmem_to_hbm [thread:$0]  %s2348_s29, 64, %s4310_s7, [#allocation6]  }
 0x4f6   :  { %2850 = dma.done.wait [#allocation6], 64  }
 0x4f7   :  { %2851 = vsyncadd [#allocation6], 4294967232 }
 0x4f8   :  { %2354 = vsyncpa [#allocation5], 1 }
 0x4f9   :  { %2355 = vsyncpa [#allocation6], 1 }

</bundles_post_ra>
